<compile_context>
chip_gen: v7x
topology: tpu7x:2x2x1
jax: 0.10.0
libtpu: 0.0.40
codegen_flags: <defaults>
</compile_context>

<pallas_src>
import math

import jax
import jax.numpy as jnp
from jax.experimental import pallas as pl
from jax.experimental.pallas import tpu as pltpu


# ----------------------------- shared math helpers --------------------------

def _layernorm(x, gamma, beta, eps):
    m = jnp.mean(x, axis=-1, keepdims=True)
    c = x - m
    v = jnp.mean(c * c, axis=-1, keepdims=True)
    return c * jax.lax.rsqrt(v + eps) * gamma + beta


def _skew_rel_scores(s2, t):
    """Per-row skew of relative-position scores.

    s2[i, j] = q_i . pe_rev[j], where row j of the (lane-padded) pe table corresponds to
    relative offset (t-1) - j (rows j >= 2t-1 are zero padding).  Returns
    b_rel[i, k] = q_i . pe[rel = i - k]  of shape (t, t), i.e. b_rel[i, k] = s2[i, k + t-1 - i].

    Implemented as one static column rotation plus a per-row barrel shifter
    (ceil(log2(t)) stages of static lane slices + selects), so it lowers reliably on
    all TPU generations (a strided lane rotation would do the same in one XLU op).
    """
    width = s2.shape[-1]
    if t == 1:
        return s2[:, :1]
    # static part: left-rotate columns by (t-1):  z[i, j] = s2[i, (j + t - 1) mod width]
    z = jnp.concatenate([s2[:, t - 1:], s2[:, :t - 1]], axis=1)
    # per-row part: right-rotate row i by i  ->  z[i, k] = s2[i, k + t - 1 - i]
    row = jax.lax.broadcasted_iota(jnp.int32, (s2.shape[0], 1), 0)
    for bit in range((t - 1).bit_length()):
        amt = 1 << bit
        rolled = jnp.concatenate([z[:, width - amt:], z[:, :width - amt]], axis=1)
        z = jnp.where((row & amt) != 0, rolled, z)
    return z[:, :t]


# --------------------------------- kernel -----------------------------------

def _fused_forward_kernel(
    f_ref, ib_ref, isc_ref, ew_ref, eb_ref, eg_ref, ebt_ref,       # input + embed
    pe_ref,                                                        # rel-pos table (per layer)
    l1g_ref, l1b_ref, wqkv_ref, bqkv_ref, wo_ref, bo_ref,          # attention (per layer)
    l2g_ref, l2b_ref, w1_ref, b1_ref, w2_ref, b2_ref,              # feed-forward (per layer)
    ang_ref, anb_ref, cw_ref, cb_ref,                              # after_norm + classifier
    o_ref,                                                         # (BT, T, OUT_PAD)
    x_vmem,                                                        # VMEM (BT*T, D) resident activation
):
    layer = pl.program_id(1)
    n_layers = pl.num_programs(1)
    bt, t, f_in = f_ref.shape
    d = wqkv_ref.shape[1]
    d_k = pe_ref.shape[2]
    h = d // d_k
    scale = 1.0 / math.sqrt(d_k)

    # ---- stage 0 (first layer step only): input bias/scale + embed ----------
    @pl.when(layer == 0)
    def _embed():
        xf = (f_ref[...].reshape(bt * t, f_in) + ib_ref[...]) * isc_ref[...]
        y = jnp.dot(xf, ew_ref[...], preferred_element_type=jnp.float32) + eb_ref[...]
        x_vmem[...] = jnp.maximum(_layernorm(y, eg_ref[...], ebt_ref[...], 1e-5), 0.0)

    # ---- encoder layer `layer` (pre-norm, rel-pos MHA, FFN) ------------------
    x = x_vmem[...]                                                # (bt*t, d) f32
    xn = _layernorm(x, l1g_ref[0], l1b_ref[0], 1e-12)
    qkv = jnp.dot(xn, wqkv_ref[0], preferred_element_type=jnp.float32) + bqkv_ref[0]
    pe = pe_ref[0]                                                 # (W, d_k), pre-norm_k'ed

    ctx_parts = []
    for b in range(bt):                                            # static (unrolled) loops
        r0 = b * t
        head_parts = []
        for hh in range(h):
            qh = qkv[r0:r0 + t, hh * d_k:(hh + 1) * d_k]
            kh = qkv[r0:r0 + t, d + hh * d_k:d + (hh + 1) * d_k]
            vh = qkv[r0:r0 + t, 2 * d + hh * d_k:2 * d + (hh + 1) * d_k]
            a = jax.lax.dot_general(qh, kh, (((1,), (1,)), ((), ())),
                                    preferred_element_type=jnp.float32)   # (t, t)
            s2 = jax.lax.dot_general(qh, pe, (((1,), (1,)), ((), ())),
                                     preferred_element_type=jnp.float32)  # (t, W) on MXU
            s = (a + _skew_rel_scores(s2, t)) * scale
            s = s - jnp.max(s, axis=-1, keepdims=True)
            e = jnp.exp(s)
            p = e * pl.reciprocal(jnp.sum(e, axis=-1, keepdims=True), approx=True)
            head_parts.append(jnp.dot(p, vh, preferred_element_type=jnp.float32))
        ctx_parts.append(head_parts[0] if h == 1
                         else jnp.concatenate(head_parts, axis=-1))
    ctx = ctx_parts[0] if bt == 1 else jnp.concatenate(ctx_parts, axis=0)  # (bt*t, d)

    att = jnp.dot(ctx, wo_ref[0], preferred_element_type=jnp.float32) + bo_ref[0]
    x = x + att
    xn2 = _layernorm(x, l2g_ref[0], l2b_ref[0], 1e-12)
    hid = jnp.maximum(
        jnp.dot(xn2, w1_ref[0], preferred_element_type=jnp.float32) + b1_ref[0], 0.0)
    x = x + jnp.dot(hid, w2_ref[0], preferred_element_type=jnp.float32) + b2_ref[0]
    x_vmem[...] = x

    # ---- final stage (last layer step only): after_norm + exit classifier ---
    @pl.when(layer == n_layers - 1)
    def _classify():
        xo = _layernorm(x, ang_ref[...], anb_ref[...], 1e-12)
        logits = jnp.dot(xo, cw_ref[...], preferred_element_type=jnp.float32) + cb_ref[...]
        o_ref[...] = jax.nn.sigmoid(logits).reshape(bt, t, -1)


# ------------------------------- wrapper -------------------------------------

def eetransformer_css_forward(f, params, num_spks=2, num_nois=1, batch_tile=1):
    """f: (N, F_in, T) -> tuple of (num_spks + num_nois) masks, each (N, num_bins, T)."""
    n, f_in, t = f.shape
    x_in = jnp.transpose(f, (0, 2, 1)).astype(jnp.float32)         # (N, T, F_in)

    layers = params["layers"]
    n_layers = len(layers)
    d = params["embed_w"].shape[1]
    maxlen = params["maxlen"]
    out_dim = params["cls_w"].shape[1]
    out_pad = pl.cdiv(out_dim, 128) * 128                          # lane-dense classifier store
    w_rel = max(128, pl.cdiv(2 * t - 1, 128) * 128)                # lane-aligned rel-pos width

    # Relative-position table: gather the 2T-1 needed rows (exact clip(-maxlen, maxlen-1)
    # mapping of RelativePositionalEncoding) in *reversed* order (row j <-> rel = T-1-j),
    # apply each layer's norm_k once here (hoisted), zero-pad to the lane-aligned width.
    rel = (t - 1) - jnp.arange(2 * t - 1)
    idx = jnp.clip(rel, -maxlen, maxlen - 1) + maxlen
    pe_rows = jnp.take(params["pe_k"], idx, axis=0)                # (2T-1, d_k) glue gather
    pe_stack = jnp.stack(
        [jnp.pad(_layernorm(pe_rows, lp["lnk_g"], lp["lnk_b"], 1e-12),
                 ((0, w_rel - (2 * t - 1)), (0, 0)))
         for lp in layers], axis=0)                                # (L, W, d_k)

    # Stack per-layer weights along a leading layer axis; fuse the Q/K/V projections.
    wqkv = jnp.stack([jnp.concatenate([lp["wq"], lp["wk"], lp["wv"]], axis=1)
                      for lp in layers], axis=0)                   # (L, D, 3D)
    bqkv = jnp.stack([jnp.concatenate([lp["bq"], lp["bk"], lp["bv"]], axis=1)
                      for lp in layers], axis=0)                   # (L, 1, 3D)
    st = lambda name: jnp.stack([lp[name] for lp in layers], axis=0)
    ln1_g, ln1_b = st("ln1_g"), st("ln1_b")
    wo, bo = st("wo"), st("bo")
    ln2_g, ln2_b = st("ln2_g"), st("ln2_b")
    w1, b1, w2, b2 = st("w1"), st("b1"), st("w2"), st("b2")

    cls_w = jnp.pad(params["cls_w"], ((0, 0), (0, out_pad - out_dim)))
    cls_b = jnp.pad(params["cls_b"], ((0, 0), (0, out_pad - out_dim)))

    bt = batch_tile
    assert n % bt == 0, "batch_tile must divide the batch size"
    grid = (n // bt, n_layers)

    batch_map = lambda b, l: (b, 0, 0)
    layer_map = lambda b, l: (l, 0, 0)
    const_map = lambda b, l: (0, 0)
    full2 = lambda a: pl.BlockSpec(a.shape, const_map)
    per_layer = lambda a: pl.BlockSpec((1,) + a.shape[1:], layer_map)

    in_specs = [
        pl.BlockSpec((bt, t, f_in), batch_map),                    # f (per batch tile)
        full2(params["input_bias"]), full2(params["input_scale"]),
        full2(params["embed_w"]), full2(params["embed_b"]),
        full2(params["embed_ln_g"]), full2(params["embed_ln_b"]),
        per_layer(pe_stack),
        per_layer(ln1_g), per_layer(ln1_b),
        per_layer(wqkv), per_layer(bqkv), per_layer(wo), per_layer(bo),
        per_layer(ln2_g), per_layer(ln2_b),
        per_layer(w1), per_layer(b1), per_layer(w2), per_layer(b2),
        full2(params["after_norm_g"]), full2(params["after_norm_b"]),
        full2(cls_w), full2(cls_b),
    ]

    out = pl.pallas_call(
        _fused_forward_kernel,
        grid=grid,
        in_specs=in_specs,
        out_specs=pl.BlockSpec((bt, t, out_pad), batch_map),
        out_shape=jax.ShapeDtypeStruct((n, t, out_pad), jnp.float32),
        scratch_shapes=[pltpu.VMEM((bt * t, d), jnp.float32)],
        compiler_params=pltpu.CompilerParams(
            dimension_semantics=("parallel", "arbitrary")),
    )(x_in, params["input_bias"], params["input_scale"],
      params["embed_w"], params["embed_b"],
      params["embed_ln_g"], params["embed_ln_b"],
      pe_stack,
      ln1_g, ln1_b, wqkv, bqkv, wo, bo, ln2_g, ln2_b, w1, b1, w2, b2,
      params["after_norm_g"], params["after_norm_b"], cls_w, cls_b)

    m = jnp.transpose(out[:, :, :out_dim], (0, 2, 1))              # (N, out_dim, T)
    return tuple(jnp.split(m, num_spks + num_nois, axis=1))


# ------------------------- pure-JAX reference (verification) -----------------

def reference_forward(f, params, num_spks=2, num_nois=1):
    """Pure-JAX (XLA) reference of the same eval-mode forward, for in-script checking."""
    with jax.default_matmul_precision("highest"):
        x = jnp.transpose(f, (0, 2, 1)).astype(jnp.float32)
        x = (x + params["input_bias"]) * params["input_scale"]
        x = x @ params["embed_w"] + params["embed_b"]
        x = jnp.maximum(_layernorm(x, params["embed_ln_g"], params["embed_ln_b"], 1e-5), 0.0)
        n, t, d = x.shape
        d_k = params["pe_k"].shape[1]
        h = d // d_k
        maxlen = params["maxlen"]
        pos = jnp.arange(t)
        rel = jnp.clip(pos[:, None] - pos[None, :], -maxlen, maxlen - 1) + maxlen
        pos_k = params["pe_k"][rel]                                # (T, T, d_k)
        for lp in params["layers"]:
            xn = _layernorm(x, lp["ln1_g"], lp["ln1_b"], 1e-12)
            pk = _layernorm(pos_k, lp["lnk_g"], lp["lnk_b"], 1e-12)
            q = (xn @ lp["wq"] + lp["bq"]).reshape(n, t, h, d_k).transpose(0, 2, 1, 3)
            k = (xn @ lp["wk"] + lp["bk"]).reshape(n, t, h, d_k).transpose(0, 2, 1, 3)
            v = (xn @ lp["wv"] + lp["bv"]).reshape(n, t, h, d_k).transpose(0, 2, 1, 3)
            a = jnp.einsum("nhqd,nhkd->nhqk", q, k)
            b = jnp.einsum("nhqd,qkd->nhqk", q, pk)
            att = jax.nn.softmax((a + b) / math.sqrt(d_k), axis=-1)
            ctx = jnp.einsum("nhqk,nhkd->nhqd", att, v)
            ctx = ctx.transpose(0, 2, 1, 3).reshape(n, t, d)
            x = x + ctx @ lp["wo"] + lp["bo"]
            xn2 = _layernorm(x, lp["ln2_g"], lp["ln2_b"], 1e-12)
            x = x + jnp.maximum(xn2 @ lp["w1"] + lp["b1"], 0.0) @ lp["w2"] + lp["b2"]
        x = _layernorm(x, params["after_norm_g"], params["after_norm_b"], 1e-12)
        m = jax.nn.sigmoid(x @ params["cls_w"] + params["cls_b"])
        m = jnp.transpose(m, (0, 2, 1))
        return tuple(jnp.split(m, num_spks + num_nois, axis=1))


# --------------------------- deterministic params ----------------------------

def init_params(key, f_in, d, heads, hidden, num_blocks, out_dim, maxlen=1000):
    d_k = d // heads
    keys = jax.random.split(key, 5 + num_blocks)

    def dense(k, i, o, scale=0.02):
        return jax.random.normal(k, (i, o), jnp.float32) * scale

    def bias(k, o, scale=0.02):
        return jax.random.normal(k, (1, o), jnp.float32) * scale

    params = {
        "maxlen": maxlen,
        "input_bias": jnp.zeros((1, f_in), jnp.float32),           # stats_file=None case
        "input_scale": jnp.ones((1, f_in), jnp.float32),
        "embed_w": dense(keys[0], f_in, d),
        "embed_b": bias(keys[1], d),
        "embed_ln_g": jnp.ones((1, d), jnp.float32),
        "embed_ln_b": jnp.zeros((1, d), jnp.float32),
        "pe_k": jax.random.normal(keys[2], (2 * maxlen, d_k), jnp.float32),  # nn.Embedding ~ N(0,1)
        "after_norm_g": jnp.ones((1, d), jnp.float32),
        "after_norm_b": jnp.zeros((1, d), jnp.float32),
        "cls_w": dense(keys[3], d, out_dim),
        "cls_b": bias(keys[4], out_dim),
        "layers": [],
    }
    for i in range(num_blocks):
        lk = jax.random.split(keys[5 + i], 12)
        params["layers"].append({
            "ln1_g": jnp.ones((1, d), jnp.float32), "ln1_b": jnp.zeros((1, d), jnp.float32),
            "lnk_g": jnp.ones((1, d_k), jnp.float32), "lnk_b": jnp.zeros((1, d_k), jnp.float32),
            "ln2_g": jnp.ones((1, d), jnp.float32), "ln2_b": jnp.zeros((1, d), jnp.float32),
            "wq": dense(lk[0], d, d), "bq": bias(lk[1], d),
            "wk": dense(lk[2], d, d), "bk": bias(lk[3], d),
            "wv": dense(lk[4], d, d), "bv": bias(lk[5], d),
            "wo": dense(lk[6], d, d), "bo": bias(lk[7], d),
            "w1": dense(lk[8], d, hidden), "b1": bias(lk[9], hidden),
            "w2": dense(lk[10], hidden, d), "b2": bias(lk[11], d),
        })
    return params


# ----------------------------------- main -------------------------------------

if __name__ == "__main__":
    # Small, TPU-friendly config consistent with the module's structure.
    N, T = 2, 16
    F_IN = 128          # in_features   (original default 1799)
    D = 128             # attention_dim (original default 256)
    HEADS = 4           # attention_heads -> d_k = 32
    HIDDEN = 256        # linear_units  (original default 2048)
    NUM_BLOCKS = 2      # num_blocks    (original default 16)
    NUM_BINS = 8        # num_bins      (original default 257)
    NUM_SPKS, NUM_NOIS = 2, 1
    OUT_DIM = NUM_BINS * (NUM_SPKS + NUM_NOIS)

    key = jax.random.PRNGKey(0)
    kp, kf = jax.random.split(key)
    params = init_params(kp, F_IN, D, HEADS, HIDDEN, NUM_BLOCKS, OUT_DIM, maxlen=1000)
    f = jax.random.normal(kf, (N, F_IN, T), jnp.float32)           # PyTorch layout: N x F_in x T

    masks = eetransformer_css_forward(f, params, num_spks=NUM_SPKS, num_nois=NUM_NOIS,
                                      batch_tile=1)                # batch axis -> parallel grid
    masks = jax.block_until_ready(masks)

    assert len(masks) == NUM_SPKS + NUM_NOIS
    for m in masks:
        assert m.shape == (N, NUM_BINS, T)
        assert bool(jnp.all(jnp.isfinite(m)))
        assert bool(jnp.all((m >= 0.0) & (m <= 1.0)))              # sigmoid outputs

    # Verify the fused Pallas kernel against a pure-JAX reference of the same forward.
    ref = reference_forward(f, params, num_spks=NUM_SPKS, num_nois=NUM_NOIS)
    for m, r in zip(masks, ref):
        assert bool(jnp.allclose(m, r, atol=2e-2, rtol=2e-2)), \
            float(jnp.max(jnp.abs(m - r)))

    print("KERNEL_OK")
</pallas_src>

<mosaic_0001>
module attributes {stable_mosaic.version = 11 : i64} {
  func.func @_fused_forward_kernel(%arg0: i32, %arg1: i32, %arg2: memref<1x16x128xf32, #tpu.memory_space<vmem>>, %arg3: memref<1x128xf32, #tpu.memory_space<vmem>>, %arg4: memref<1x128xf32, #tpu.memory_space<vmem>>, %arg5: memref<128x128xf32, #tpu.memory_space<vmem>>, %arg6: memref<1x128xf32, #tpu.memory_space<vmem>>, %arg7: memref<1x128xf32, #tpu.memory_space<vmem>>, %arg8: memref<1x128xf32, #tpu.memory_space<vmem>>, %arg9: memref<1x128x32xf32, #tpu.memory_space<vmem>>, %arg10: memref<1x1x128xf32, #tpu.memory_space<vmem>>, %arg11: memref<1x1x128xf32, #tpu.memory_space<vmem>>, %arg12: memref<1x128x384xf32, #tpu.memory_space<vmem>>, %arg13: memref<1x1x384xf32, #tpu.memory_space<vmem>>, %arg14: memref<1x128x128xf32, #tpu.memory_space<vmem>>, %arg15: memref<1x1x128xf32, #tpu.memory_space<vmem>>, %arg16: memref<1x1x128xf32, #tpu.memory_space<vmem>>, %arg17: memref<1x1x128xf32, #tpu.memory_space<vmem>>, %arg18: memref<1x128x256xf32, #tpu.memory_space<vmem>>, %arg19: memref<1x1x256xf32, #tpu.memory_space<vmem>>, %arg20: memref<1x256x128xf32, #tpu.memory_space<vmem>>, %arg21: memref<1x1x128xf32, #tpu.memory_space<vmem>>, %arg22: memref<1x128xf32, #tpu.memory_space<vmem>>, %arg23: memref<1x128xf32, #tpu.memory_space<vmem>>, %arg24: memref<128x128xf32, #tpu.memory_space<vmem>>, %arg25: memref<1x128xf32, #tpu.memory_space<vmem>>, %arg26: memref<1x16x128xf32, #tpu.memory_space<vmem>>, %arg27: memref<16x128xf32, #tpu.memory_space<vmem>>) attributes {dimension_semantics = [#tpu.dimension_semantics<parallel>, #tpu.dimension_semantics<arbitrary>], iteration_bounds = array<i64: 2, 2>, scalar_prefetch = 0 : i64, scratch_operands = 1 : i64, tpu.core_type = #tpu.core_type<tc>, window_params = [{transform_indices = @transform_0, window_bounds = array<i64: 1, 16, 128>}, {pipeline_mode = #tpu.pipeline_mode<synchronous>, transform_indices = @transform_1, window_bounds = array<i64: 1, 128>}, {pipeline_mode = #tpu.pipeline_mode<synchronous>, transform_indices = @transform_2, window_bounds = array<i64: 1, 128>}, {pipeline_mode = #tpu.pipeline_mode<synchronous>, transform_indices = @transform_3, window_bounds = array<i64: 128, 128>}, {pipeline_mode = #tpu.pipeline_mode<synchronous>, transform_indices = @transform_4, window_bounds = array<i64: 1, 128>}, {pipeline_mode = #tpu.pipeline_mode<synchronous>, transform_indices = @transform_5, window_bounds = array<i64: 1, 128>}, {pipeline_mode = #tpu.pipeline_mode<synchronous>, transform_indices = @transform_6, window_bounds = array<i64: 1, 128>}, {transform_indices = @transform_7, window_bounds = array<i64: 1, 128, 32>}, {transform_indices = @transform_8, window_bounds = array<i64: 1, 1, 128>}, {transform_indices = @transform_9, window_bounds = array<i64: 1, 1, 128>}, {transform_indices = @transform_10, window_bounds = array<i64: 1, 128, 384>}, {transform_indices = @transform_11, window_bounds = array<i64: 1, 1, 384>}, {transform_indices = @transform_12, window_bounds = array<i64: 1, 128, 128>}, {transform_indices = @transform_13, window_bounds = array<i64: 1, 1, 128>}, {transform_indices = @transform_14, window_bounds = array<i64: 1, 1, 128>}, {transform_indices = @transform_15, window_bounds = array<i64: 1, 1, 128>}, {transform_indices = @transform_16, window_bounds = array<i64: 1, 128, 256>}, {transform_indices = @transform_17, window_bounds = array<i64: 1, 1, 256>}, {transform_indices = @transform_18, window_bounds = array<i64: 1, 256, 128>}, {transform_indices = @transform_19, window_bounds = array<i64: 1, 1, 128>}, {pipeline_mode = #tpu.pipeline_mode<synchronous>, transform_indices = @transform_20, window_bounds = array<i64: 1, 128>}, {pipeline_mode = #tpu.pipeline_mode<synchronous>, transform_indices = @transform_21, window_bounds = array<i64: 1, 128>}, {pipeline_mode = #tpu.pipeline_mode<synchronous>, transform_indices = @transform_22, window_bounds = array<i64: 128, 128>}, {pipeline_mode = #tpu.pipeline_mode<synchronous>, transform_indices = @transform_23, window_bounds = array<i64: 1, 128>}, {transform_indices = @transform_24, window_bounds = array<i64: 1, 16, 128>}]} {
    %c0_i32 = arith.constant 0 : i32
    %0 = arith.cmpi eq, %arg1, %c0_i32 : i32
    %1 = arith.extui %0 : i1 to i32
    %c0_i32_0 = arith.constant 0 : i32
    %2 = arith.cmpi ne, %1, %c0_i32_0 : i32
    scf.if %2 {
      %c0_111 = arith.constant 0 : index
      %c0_112 = arith.constant 0 : index
      %c0_113 = arith.constant 0 : index
      %347 = vector.load %arg2[%c0_111, %c0_112, %c0_113] : memref<1x16x128xf32, #tpu.memory_space<vmem>>, vector<1x16x128xf32>
      %348 = vector.shape_cast %347 : vector<1x16x128xf32> to vector<16x128xf32>
      %c0_114 = arith.constant 0 : index
      %c0_115 = arith.constant 0 : index
      %349 = vector.load %arg3[%c0_114, %c0_115] : memref<1x128xf32, #tpu.memory_space<vmem>>, vector<1x128xf32>
      %350 = vector.broadcast %349 : vector<1x128xf32> to vector<16x128xf32>
      %351 = arith.addf %348, %350 : vector<16x128xf32>
      %c0_116 = arith.constant 0 : index
      %c0_117 = arith.constant 0 : index
      %352 = vector.load %arg4[%c0_116, %c0_117] : memref<1x128xf32, #tpu.memory_space<vmem>>, vector<1x128xf32>
      %353 = vector.broadcast %352 : vector<1x128xf32> to vector<16x128xf32>
      %354 = arith.mulf %351, %353 : vector<16x128xf32>
      %c0_118 = arith.constant 0 : index
      %c0_119 = arith.constant 0 : index
      %355 = vector.load %arg5[%c0_118, %c0_119] : memref<128x128xf32, #tpu.memory_space<vmem>>, vector<128x128xf32>
      %cst_120 = arith.constant dense<0.000000e+00> : vector<16x128xf32>
      %356 = tpu.matmul %354, %355, %cst_120 {dimension_numbers = #tpu.dot_dimension_numbers<[1], [0], [0], [1], [0, 0, 1, 1], [], []>} : vector<16x128xf32>, vector<128x128xf32>, vector<16x128xf32> -> vector<16x128xf32>
      %c0_121 = arith.constant 0 : index
      %c0_122 = arith.constant 0 : index
      %357 = vector.load %arg6[%c0_121, %c0_122] : memref<1x128xf32, #tpu.memory_space<vmem>>, vector<1x128xf32>
      %358 = vector.broadcast %357 : vector<1x128xf32> to vector<16x128xf32>
      %359 = arith.addf %356, %358 : vector<16x128xf32>
      %c0_123 = arith.constant 0 : index
      %c0_124 = arith.constant 0 : index
      %360 = vector.load %arg7[%c0_123, %c0_124] : memref<1x128xf32, #tpu.memory_space<vmem>>, vector<1x128xf32>
      %c0_125 = arith.constant 0 : index
      %c0_126 = arith.constant 0 : index
      %361 = vector.load %arg8[%c0_125, %c0_126] : memref<1x128xf32, #tpu.memory_space<vmem>>, vector<1x128xf32>
      %cst_127 = arith.constant dense<0.000000e+00> : vector<16xf32>
      %362 = vector.multi_reduction <add>, %359, %cst_127 [1] : vector<16x128xf32> to vector<16xf32>
      %363 = vector.shape_cast %362 : vector<16xf32> to vector<16x1xf32>
      %cst_128 = arith.constant 1.280000e+02 : f32
      %364 = vector.broadcast %cst_128 : f32 to vector<16x1xf32>
      %365 = arith.divf %363, %364 : vector<16x1xf32>
      %366 = vector.broadcast %365 : vector<16x1xf32> to vector<16x128xf32>
      %367 = arith.subf %359, %366 : vector<16x128xf32>
      %368 = arith.mulf %367, %367 : vector<16x128xf32>
      %cst_129 = arith.constant dense<0.000000e+00> : vector<16xf32>
      %369 = vector.multi_reduction <add>, %368, %cst_129 [1] : vector<16x128xf32> to vector<16xf32>
      %370 = vector.shape_cast %369 : vector<16xf32> to vector<16x1xf32>
      %cst_130 = arith.constant 1.280000e+02 : f32
      %371 = vector.broadcast %cst_130 : f32 to vector<16x1xf32>
      %372 = arith.divf %370, %371 : vector<16x1xf32>
      %cst_131 = arith.constant 9.99999974E-6 : f32
      %373 = vector.broadcast %cst_131 : f32 to vector<16x1xf32>
      %374 = arith.addf %372, %373 : vector<16x1xf32>
      %375 = math.rsqrt %374 : vector<16x1xf32>
      %376 = vector.broadcast %375 : vector<16x1xf32> to vector<16x128xf32>
      %377 = arith.mulf %367, %376 : vector<16x128xf32>
      %378 = vector.broadcast %360 : vector<1x128xf32> to vector<16x128xf32>
      %379 = arith.mulf %377, %378 : vector<16x128xf32>
      %380 = vector.broadcast %361 : vector<1x128xf32> to vector<16x128xf32>
      %381 = arith.addf %379, %380 : vector<16x128xf32>
      %cst_132 = arith.constant 0.000000e+00 : f32
      %382 = vector.broadcast %cst_132 : f32 to vector<16x128xf32>
      %383 = arith.maximumf %381, %382 : vector<16x128xf32>
      %c0_133 = arith.constant 0 : index
      %c0_134 = arith.constant 0 : index
      %384 = vector.load %arg27[%c0_133, %c0_134] : memref<16x128xf32, #tpu.memory_space<vmem>>, vector<16x128xf32>
      tpu.vector_store %arg27[%c0_133, %c0_134], %383 {strides = array<i32>} : memref<16x128xf32, #tpu.memory_space<vmem>>, vector<16x128xf32>,
    } else {
    }
    %c0 = arith.constant 0 : index
    %c0_1 = arith.constant 0 : index
    %3 = vector.load %arg27[%c0, %c0_1] : memref<16x128xf32, #tpu.memory_space<vmem>>, vector<16x128xf32>
    %c0_2 = arith.constant 0 : index
    %c0_3 = arith.constant 0 : index
    %c0_4 = arith.constant 0 : index
    %4 = vector.load %arg10[%c0_2, %c0_3, %c0_4] : memref<1x1x128xf32, #tpu.memory_space<vmem>>, vector<1x1x128xf32>
    %5 = vector.shape_cast %4 : vector<1x1x128xf32> to vector<1x128xf32>
    %c0_5 = arith.constant 0 : index
    %c0_6 = arith.constant 0 : index
    %c0_7 = arith.constant 0 : index
    %6 = vector.load %arg11[%c0_5, %c0_6, %c0_7] : memref<1x1x128xf32, #tpu.memory_space<vmem>>, vector<1x1x128xf32>
    %7 = vector.shape_cast %6 : vector<1x1x128xf32> to vector<1x128xf32>
    %cst = arith.constant dense<0.000000e+00> : vector<16xf32>
    %8 = vector.multi_reduction <add>, %3, %cst [1] : vector<16x128xf32> to vector<16xf32>
    %9 = vector.shape_cast %8 : vector<16xf32> to vector<16x1xf32>
    %cst_8 = arith.constant 1.280000e+02 : f32
    %10 = vector.broadcast %cst_8 : f32 to vector<16x1xf32>
    %11 = arith.divf %9, %10 : vector<16x1xf32>
    %12 = vector.broadcast %11 : vector<16x1xf32> to vector<16x128xf32>
    %13 = arith.subf %3, %12 : vector<16x128xf32>
    %14 = arith.mulf %13, %13 : vector<16x128xf32>
    %cst_9 = arith.constant dense<0.000000e+00> : vector<16xf32>
    %15 = vector.multi_reduction <add>, %14, %cst_9 [1] : vector<16x128xf32> to vector<16xf32>
    %16 = vector.shape_cast %15 : vector<16xf32> to vector<16x1xf32>
    %cst_10 = arith.constant 1.280000e+02 : f32
    %17 = vector.broadcast %cst_10 : f32 to vector<16x1xf32>
    %18 = arith.divf %16, %17 : vector<16x1xf32>
    %cst_11 = arith.constant 9.99999996E-13 : f32
    %19 = vector.broadcast %cst_11 : f32 to vector<16x1xf32>
    %20 = arith.addf %18, %19 : vector<16x1xf32>
    %21 = math.rsqrt %20 : vector<16x1xf32>
    %22 = vector.broadcast %21 : vector<16x1xf32> to vector<16x128xf32>
    %23 = arith.mulf %13, %22 : vector<16x128xf32>
    %24 = vector.broadcast %5 : vector<1x128xf32> to vector<16x128xf32>
    %25 = arith.mulf %23, %24 : vector<16x128xf32>
    %26 = vector.broadcast %7 : vector<1x128xf32> to vector<16x128xf32>
    %27 = arith.addf %25, %26 : vector<16x128xf32>
    %c0_12 = arith.constant 0 : index
    %c0_13 = arith.constant 0 : index
    %c0_14 = arith.constant 0 : index
    %28 = vector.load %arg12[%c0_12, %c0_13, %c0_14] : memref<1x128x384xf32, #tpu.memory_space<vmem>>, vector<1x128x384xf32>
    %29 = vector.shape_cast %28 : vector<1x128x384xf32> to vector<128x384xf32>
    %cst_15 = arith.constant dense<0.000000e+00> : vector<16x384xf32>
    %30 = tpu.matmul %27, %29, %cst_15 {dimension_numbers = #tpu.dot_dimension_numbers<[1], [0], [0], [1], [0, 0, 1, 1], [], []>} : vector<16x128xf32>, vector<128x384xf32>, vector<16x384xf32> -> vector<16x384xf32>
    %c0_16 = arith.constant 0 : index
    %c0_17 = arith.constant 0 : index
    %c0_18 = arith.constant 0 : index
    %31 = vector.load %arg13[%c0_16, %c0_17, %c0_18] : memref<1x1x384xf32, #tpu.memory_space<vmem>>, vector<1x1x384xf32>
    %32 = vector.shape_cast %31 : vector<1x1x384xf32> to vector<1x384xf32>
    %33 = vector.broadcast %32 : vector<1x384xf32> to vector<16x384xf32>
    %34 = arith.addf %30, %33 : vector<16x384xf32>
    %c0_19 = arith.constant 0 : index
    %c0_20 = arith.constant 0 : index
    %c0_21 = arith.constant 0 : index
    %35 = vector.load %arg9[%c0_19, %c0_20, %c0_21] : memref<1x128x32xf32, #tpu.memory_space<vmem>>, vector<1x128x32xf32>
    %36 = vector.shape_cast %35 : vector<1x128x32xf32> to vector<128x32xf32>
    %37 = vector.extract_strided_slice %34 {offsets = [0, 0], sizes = [16, 32], strides = [1, 1]} : vector<16x384xf32> to vector<16x32xf32>
    %38 = vector.extract_strided_slice %34 {offsets = [0, 128], sizes = [16, 32], strides = [1, 1]} : vector<16x384xf32> to vector<16x32xf32>
    %39 = vector.extract_strided_slice %34 {offsets = [0, 256], sizes = [16, 32], strides = [1, 1]} : vector<16x384xf32> to vector<16x32xf32>
    %cst_22 = arith.constant dense<0.000000e+00> : vector<16x16xf32>
    %40 = tpu.matmul %37, %38, %cst_22 {dimension_numbers = #tpu.dot_dimension_numbers<[1], [1], [0], [0], [0, 0, 1, 0], [], []>} : vector<16x32xf32>, vector<16x32xf32>, vector<16x16xf32> -> vector<16x16xf32>
    %cst_23 = arith.constant dense<0.000000e+00> : vector<16x128xf32>
    %41 = tpu.matmul %37, %36, %cst_23 {dimension_numbers = #tpu.dot_dimension_numbers<[1], [1], [0], [0], [0, 0, 1, 0], [], []>} : vector<16x32xf32>, vector<128x32xf32>, vector<16x128xf32> -> vector<16x128xf32>
    %42 = vector.extract_strided_slice %41 {offsets = [0, 15], sizes = [16, 113], strides = [1, 1]} : vector<16x128xf32> to vector<16x113xf32>
    %43 = vector.extract_strided_slice %41 {offsets = [0, 0], sizes = [16, 15], strides = [1, 1]} : vector<16x128xf32> to vector<16x15xf32>
    %44 = tpu.concatenate %42, %43 in 1 : vector<16x113xf32>, vector<16x15xf32> -> vector<16x128xf32>
    %45 = tpu.iota {dimensions = array<i32: 0>} : vector<16x1xi32>
    %46 = vector.extract_strided_slice %44 {offsets = [0, 127], sizes = [16, 1], strides = [1, 1]} : vector<16x128xf32> to vector<16x1xf32>
    %47 = vector.extract_strided_slice %44 {offsets = [0, 0], sizes = [16, 127], strides = [1, 1]} : vector<16x128xf32> to vector<16x127xf32>
    %48 = tpu.concatenate %46, %47 in 1 : vector<16x1xf32>, vector<16x127xf32> -> vector<16x128xf32>
    %c1_i32 = arith.constant 1 : i32
    %49 = vector.broadcast %c1_i32 : i32 to vector<16x1xi32>
    %50 = arith.andi %45, %49 : vector<16x1xi32>
    %c0_i32_24 = arith.constant 0 : i32
    %51 = vector.broadcast %c0_i32_24 : i32 to vector<16x1xi32>
    %52 = arith.cmpi ne, %50, %51 : vector<16x1xi32>
    %53 = vector.shape_cast %52 : vector<16x1xi1> to vector<16x1xi1>
    %54 = vector.broadcast %53 : vector<16x1xi1> to vector<16x128xi1>
    %55 = arith.select %54, %48, %44 : vector<16x128xi1>, vector<16x128xf32>
    %56 = vector.extract_strided_slice %55 {offsets = [0, 126], sizes = [16, 2], strides = [1, 1]} : vector<16x128xf32> to vector<16x2xf32>
    %57 = vector.extract_strided_slice %55 {offsets = [0, 0], sizes = [16, 126], strides = [1, 1]} : vector<16x128xf32> to vector<16x126xf32>
    %58 = tpu.concatenate %56, %57 in 1 : vector<16x2xf32>, vector<16x126xf32> -> vector<16x128xf32>
    %c2_i32 = arith.constant 2 : i32
    %59 = vector.broadcast %c2_i32 : i32 to vector<16x1xi32>
    %60 = arith.andi %45, %59 : vector<16x1xi32>
    %c0_i32_25 = arith.constant 0 : i32
    %61 = vector.broadcast %c0_i32_25 : i32 to vector<16x1xi32>
    %62 = arith.cmpi ne, %60, %61 : vector<16x1xi32>
    %63 = vector.shape_cast %62 : vector<16x1xi1> to vector<16x1xi1>
    %64 = vector.broadcast %63 : vector<16x1xi1> to vector<16x128xi1>
    %65 = arith.select %64, %58, %55 : vector<16x128xi1>, vector<16x128xf32>
    %66 = vector.extract_strided_slice %65 {offsets = [0, 124], sizes = [16, 4], strides = [1, 1]} : vector<16x128xf32> to vector<16x4xf32>
    %67 = vector.extract_strided_slice %65 {offsets = [0, 0], sizes = [16, 124], strides = [1, 1]} : vector<16x128xf32> to vector<16x124xf32>
    %68 = tpu.concatenate %66, %67 in 1 : vector<16x4xf32>, vector<16x124xf32> -> vector<16x128xf32>
    %c4_i32 = arith.constant 4 : i32
    %69 = vector.broadcast %c4_i32 : i32 to vector<16x1xi32>
    %70 = arith.andi %45, %69 : vector<16x1xi32>
    %c0_i32_26 = arith.constant 0 : i32
    %71 = vector.broadcast %c0_i32_26 : i32 to vector<16x1xi32>
    %72 = arith.cmpi ne, %70, %71 : vector<16x1xi32>
    %73 = vector.shape_cast %72 : vector<16x1xi1> to vector<16x1xi1>
    %74 = vector.broadcast %73 : vector<16x1xi1> to vector<16x128xi1>
    %75 = arith.select %74, %68, %65 : vector<16x128xi1>, vector<16x128xf32>
    %76 = vector.extract_strided_slice %75 {offsets = [0, 120], sizes = [16, 8], strides = [1, 1]} : vector<16x128xf32> to vector<16x8xf32>
    %77 = vector.extract_strided_slice %75 {offsets = [0, 0], sizes = [16, 120], strides = [1, 1]} : vector<16x128xf32> to vector<16x120xf32>
    %78 = tpu.concatenate %76, %77 in 1 : vector<16x8xf32>, vector<16x120xf32> -> vector<16x128xf32>
    %c8_i32 = arith.constant 8 : i32
    %79 = vector.broadcast %c8_i32 : i32 to vector<16x1xi32>
    %80 = arith.andi %45, %79 : vector<16x1xi32>
    %c0_i32_27 = arith.constant 0 : i32
    %81 = vector.broadcast %c0_i32_27 : i32 to vector<16x1xi32>
    %82 = arith.cmpi ne, %80, %81 : vector<16x1xi32>
    %83 = vector.shape_cast %82 : vector<16x1xi1> to vector<16x1xi1>
    %84 = vector.broadcast %83 : vector<16x1xi1> to vector<16x128xi1>
    %85 = arith.select %84, %78, %75 : vector<16x128xi1>, vector<16x128xf32>
    %86 = vector.extract_strided_slice %85 {offsets = [0, 0], sizes = [16, 16], strides = [1, 1]} : vector<16x128xf32> to vector<16x16xf32>
    %87 = arith.addf %40, %86 : vector<16x16xf32>
    %cst_28 = arith.constant 0.176776692 : f32
    %88 = vector.broadcast %cst_28 : f32 to vector<16x16xf32>
    %89 = arith.mulf %87, %88 : vector<16x16xf32>
    %cst_29 = arith.constant dense<0xFF800000> : vector<16xf32>
    %90 = vector.multi_reduction <maximumf>, %89, %cst_29 [1] : vector<16x16xf32> to vector<16xf32>
    %91 = vector.shape_cast %90 : vector<16xf32> to vector<16x1xf32>
    %92 = vector.broadcast %91 : vector<16x1xf32> to vector<16x16xf32>
    %93 = arith.subf %89, %92 : vector<16x16xf32>
    %94 = math.exp %93 : vector<16x16xf32>
    %cst_30 = arith.constant dense<0.000000e+00> : vector<16xf32>
    %95 = vector.multi_reduction <add>, %94, %cst_30 [1] : vector<16x16xf32> to vector<16xf32>
    %96 = vector.shape_cast %95 : vector<16xf32> to vector<16x1xf32>
    %97 = tpu.reciprocal %96 {approx = true} : vector<16x1xf32> -> vector<16x1xf32>
    %98 = vector.broadcast %97 : vector<16x1xf32> to vector<16x16xf32>
    %99 = arith.mulf %94, %98 : vector<16x16xf32>
    %cst_31 = arith.constant dense<0.000000e+00> : vector<16x32xf32>
    %100 = tpu.matmul %99, %39, %cst_31 {dimension_numbers = #tpu.dot_dimension_numbers<[1], [0], [0], [1], [0, 0, 1, 1], [], []>} : vector<16x16xf32>, vector<16x32xf32>, vector<16x32xf32> -> vector<16x32xf32>
    %101 = vector.extract_strided_slice %34 {offsets = [0, 32], sizes = [16, 32], strides = [1, 1]} : vector<16x384xf32> to vector<16x32xf32>
    %102 = vector.extract_strided_slice %34 {offsets = [0, 160], sizes = [16, 32], strides = [1, 1]} : vector<16x384xf32> to vector<16x32xf32>
    %103 = vector.extract_strided_slice %34 {offsets = [0, 288], sizes = [16, 32], strides = [1, 1]} : vector<16x384xf32> to vector<16x32xf32>
    %cst_32 = arith.constant dense<0.000000e+00> : vector<16x16xf32>
    %104 = tpu.matmul %101, %102, %cst_32 {dimension_numbers = #tpu.dot_dimension_numbers<[1], [1], [0], [0], [0, 0, 1, 0], [], []>} : vector<16x32xf32>, vector<16x32xf32>, vector<16x16xf32> -> vector<16x16xf32>
    %cst_33 = arith.constant dense<0.000000e+00> : vector<16x128xf32>
    %105 = tpu.matmul %101, %36, %cst_33 {dimension_numbers = #tpu.dot_dimension_numbers<[1], [1], [0], [0], [0, 0, 1, 0], [], []>} : vector<16x32xf32>, vector<128x32xf32>, vector<16x128xf32> -> vector<16x128xf32>
    %106 = vector.extract_strided_slice %105 {offsets = [0, 15], sizes = [16, 113], strides = [1, 1]} : vector<16x128xf32> to vector<16x113xf32>
    %107 = vector.extract_strided_slice %105 {offsets = [0, 0], sizes = [16, 15], strides = [1, 1]} : vector<16x128xf32> to vector<16x15xf32>
    %108 = tpu.concatenate %106, %107 in 1 : vector<16x113xf32>, vector<16x15xf32> -> vector<16x128xf32>
    %109 = tpu.iota {dimensions = array<i32: 0>} : vector<16x1xi32>
    %110 = vector.extract_strided_slice %108 {offsets = [0, 127], sizes = [16, 1], strides = [1, 1]} : vector<16x128xf32> to vector<16x1xf32>
    %111 = vector.extract_strided_slice %108 {offsets = [0, 0], sizes = [16, 127], strides = [1, 1]} : vector<16x128xf32> to vector<16x127xf32>
    %112 = tpu.concatenate %110, %111 in 1 : vector<16x1xf32>, vector<16x127xf32> -> vector<16x128xf32>
    %c1_i32_34 = arith.constant 1 : i32
    %113 = vector.broadcast %c1_i32_34 : i32 to vector<16x1xi32>
    %114 = arith.andi %109, %113 : vector<16x1xi32>
    %c0_i32_35 = arith.constant 0 : i32
    %115 = vector.broadcast %c0_i32_35 : i32 to vector<16x1xi32>
    %116 = arith.cmpi ne, %114, %115 : vector<16x1xi32>
    %117 = vector.shape_cast %116 : vector<16x1xi1> to vector<16x1xi1>
    %118 = vector.broadcast %117 : vector<16x1xi1> to vector<16x128xi1>
    %119 = arith.select %118, %112, %108 : vector<16x128xi1>, vector<16x128xf32>
    %120 = vector.extract_strided_slice %119 {offsets = [0, 126], sizes = [16, 2], strides = [1, 1]} : vector<16x128xf32> to vector<16x2xf32>
    %121 = vector.extract_strided_slice %119 {offsets = [0, 0], sizes = [16, 126], strides = [1, 1]} : vector<16x128xf32> to vector<16x126xf32>
    %122 = tpu.concatenate %120, %121 in 1 : vector<16x2xf32>, vector<16x126xf32> -> vector<16x128xf32>
    %c2_i32_36 = arith.constant 2 : i32
    %123 = vector.broadcast %c2_i32_36 : i32 to vector<16x1xi32>
    %124 = arith.andi %109, %123 : vector<16x1xi32>
    %c0_i32_37 = arith.constant 0 : i32
    %125 = vector.broadcast %c0_i32_37 : i32 to vector<16x1xi32>
    %126 = arith.cmpi ne, %124, %125 : vector<16x1xi32>
    %127 = vector.shape_cast %126 : vector<16x1xi1> to vector<16x1xi1>
    %128 = vector.broadcast %127 : vector<16x1xi1> to vector<16x128xi1>
    %129 = arith.select %128, %122, %119 : vector<16x128xi1>, vector<16x128xf32>
    %130 = vector.extract_strided_slice %129 {offsets = [0, 124], sizes = [16, 4], strides = [1, 1]} : vector<16x128xf32> to vector<16x4xf32>
    %131 = vector.extract_strided_slice %129 {offsets = [0, 0], sizes = [16, 124], strides = [1, 1]} : vector<16x128xf32> to vector<16x124xf32>
    %132 = tpu.concatenate %130, %131 in 1 : vector<16x4xf32>, vector<16x124xf32> -> vector<16x128xf32>
    %c4_i32_38 = arith.constant 4 : i32
    %133 = vector.broadcast %c4_i32_38 : i32 to vector<16x1xi32>
    %134 = arith.andi %109, %133 : vector<16x1xi32>
    %c0_i32_39 = arith.constant 0 : i32
    %135 = vector.broadcast %c0_i32_39 : i32 to vector<16x1xi32>
    %136 = arith.cmpi ne, %134, %135 : vector<16x1xi32>
    %137 = vector.shape_cast %136 : vector<16x1xi1> to vector<16x1xi1>
    %138 = vector.broadcast %137 : vector<16x1xi1> to vector<16x128xi1>
    %139 = arith.select %138, %132, %129 : vector<16x128xi1>, vector<16x128xf32>
    %140 = vector.extract_strided_slice %139 {offsets = [0, 120], sizes = [16, 8], strides = [1, 1]} : vector<16x128xf32> to vector<16x8xf32>
    %141 = vector.extract_strided_slice %139 {offsets = [0, 0], sizes = [16, 120], strides = [1, 1]} : vector<16x128xf32> to vector<16x120xf32>
    %142 = tpu.concatenate %140, %141 in 1 : vector<16x8xf32>, vector<16x120xf32> -> vector<16x128xf32>
    %c8_i32_40 = arith.constant 8 : i32
    %143 = vector.broadcast %c8_i32_40 : i32 to vector<16x1xi32>
    %144 = arith.andi %109, %143 : vector<16x1xi32>
    %c0_i32_41 = arith.constant 0 : i32
    %145 = vector.broadcast %c0_i32_41 : i32 to vector<16x1xi32>
    %146 = arith.cmpi ne, %144, %145 : vector<16x1xi32>
    %147 = vector.shape_cast %146 : vector<16x1xi1> to vector<16x1xi1>
    %148 = vector.broadcast %147 : vector<16x1xi1> to vector<16x128xi1>
    %149 = arith.select %148, %142, %139 : vector<16x128xi1>, vector<16x128xf32>
    %150 = vector.extract_strided_slice %149 {offsets = [0, 0], sizes = [16, 16], strides = [1, 1]} : vector<16x128xf32> to vector<16x16xf32>
    %151 = arith.addf %104, %150 : vector<16x16xf32>
    %cst_42 = arith.constant 0.176776692 : f32
    %152 = vector.broadcast %cst_42 : f32 to vector<16x16xf32>
    %153 = arith.mulf %151, %152 : vector<16x16xf32>
    %cst_43 = arith.constant dense<0xFF800000> : vector<16xf32>
    %154 = vector.multi_reduction <maximumf>, %153, %cst_43 [1] : vector<16x16xf32> to vector<16xf32>
    %155 = vector.shape_cast %154 : vector<16xf32> to vector<16x1xf32>
    %156 = vector.broadcast %155 : vector<16x1xf32> to vector<16x16xf32>
    %157 = arith.subf %153, %156 : vector<16x16xf32>
    %158 = math.exp %157 : vector<16x16xf32>
    %cst_44 = arith.constant dense<0.000000e+00> : vector<16xf32>
    %159 = vector.multi_reduction <add>, %158, %cst_44 [1] : vector<16x16xf32> to vector<16xf32>
    %160 = vector.shape_cast %159 : vector<16xf32> to vector<16x1xf32>
    %161 = tpu.reciprocal %160 {approx = true} : vector<16x1xf32> -> vector<16x1xf32>
    %162 = vector.broadcast %161 : vector<16x1xf32> to vector<16x16xf32>
    %163 = arith.mulf %158, %162 : vector<16x16xf32>
    %cst_45 = arith.constant dense<0.000000e+00> : vector<16x32xf32>
    %164 = tpu.matmul %163, %103, %cst_45 {dimension_numbers = #tpu.dot_dimension_numbers<[1], [0], [0], [1], [0, 0, 1, 1], [], []>} : vector<16x16xf32>, vector<16x32xf32>, vector<16x32xf32> -> vector<16x32xf32>
    %165 = vector.extract_strided_slice %34 {offsets = [0, 64], sizes = [16, 32], strides = [1, 1]} : vector<16x384xf32> to vector<16x32xf32>
    %166 = vector.extract_strided_slice %34 {offsets = [0, 192], sizes = [16, 32], strides = [1, 1]} : vector<16x384xf32> to vector<16x32xf32>
    %167 = vector.extract_strided_slice %34 {offsets = [0, 320], sizes = [16, 32], strides = [1, 1]} : vector<16x384xf32> to vector<16x32xf32>
    %cst_46 = arith.constant dense<0.000000e+00> : vector<16x16xf32>
    %168 = tpu.matmul %165, %166, %cst_46 {dimension_numbers = #tpu.dot_dimension_numbers<[1], [1], [0], [0], [0, 0, 1, 0], [], []>} : vector<16x32xf32>, vector<16x32xf32>, vector<16x16xf32> -> vector<16x16xf32>
    %cst_47 = arith.constant dense<0.000000e+00> : vector<16x128xf32>
    %169 = tpu.matmul %165, %36, %cst_47 {dimension_numbers = #tpu.dot_dimension_numbers<[1], [1], [0], [0], [0, 0, 1, 0], [], []>} : vector<16x32xf32>, vector<128x32xf32>, vector<16x128xf32> -> vector<16x128xf32>
    %170 = vector.extract_strided_slice %169 {offsets = [0, 15], sizes = [16, 113], strides = [1, 1]} : vector<16x128xf32> to vector<16x113xf32>
    %171 = vector.extract_strided_slice %169 {offsets = [0, 0], sizes = [16, 15], strides = [1, 1]} : vector<16x128xf32> to vector<16x15xf32>
    %172 = tpu.concatenate %170, %171 in 1 : vector<16x113xf32>, vector<16x15xf32> -> vector<16x128xf32>
    %173 = tpu.iota {dimensions = array<i32: 0>} : vector<16x1xi32>
    %174 = vector.extract_strided_slice %172 {offsets = [0, 127], sizes = [16, 1], strides = [1, 1]} : vector<16x128xf32> to vector<16x1xf32>
    %175 = vector.extract_strided_slice %172 {offsets = [0, 0], sizes = [16, 127], strides = [1, 1]} : vector<16x128xf32> to vector<16x127xf32>
    %176 = tpu.concatenate %174, %175 in 1 : vector<16x1xf32>, vector<16x127xf32> -> vector<16x128xf32>
    %c1_i32_48 = arith.constant 1 : i32
    %177 = vector.broadcast %c1_i32_48 : i32 to vector<16x1xi32>
    %178 = arith.andi %173, %177 : vector<16x1xi32>
    %c0_i32_49 = arith.constant 0 : i32
    %179 = vector.broadcast %c0_i32_49 : i32 to vector<16x1xi32>
    %180 = arith.cmpi ne, %178, %179 : vector<16x1xi32>
    %181 = vector.shape_cast %180 : vector<16x1xi1> to vector<16x1xi1>
    %182 = vector.broadcast %181 : vector<16x1xi1> to vector<16x128xi1>
    %183 = arith.select %182, %176, %172 : vector<16x128xi1>, vector<16x128xf32>
    %184 = vector.extract_strided_slice %183 {offsets = [0, 126], sizes = [16, 2], strides = [1, 1]} : vector<16x128xf32> to vector<16x2xf32>
    %185 = vector.extract_strided_slice %183 {offsets = [0, 0], sizes = [16, 126], strides = [1, 1]} : vector<16x128xf32> to vector<16x126xf32>
    %186 = tpu.concatenate %184, %185 in 1 : vector<16x2xf32>, vector<16x126xf32> -> vector<16x128xf32>
    %c2_i32_50 = arith.constant 2 : i32
    %187 = vector.broadcast %c2_i32_50 : i32 to vector<16x1xi32>
    %188 = arith.andi %173, %187 : vector<16x1xi32>
    %c0_i32_51 = arith.constant 0 : i32
    %189 = vector.broadcast %c0_i32_51 : i32 to vector<16x1xi32>
    %190 = arith.cmpi ne, %188, %189 : vector<16x1xi32>
    %191 = vector.shape_cast %190 : vector<16x1xi1> to vector<16x1xi1>
    %192 = vector.broadcast %191 : vector<16x1xi1> to vector<16x128xi1>
    %193 = arith.select %192, %186, %183 : vector<16x128xi1>, vector<16x128xf32>
    %194 = vector.extract_strided_slice %193 {offsets = [0, 124], sizes = [16, 4], strides = [1, 1]} : vector<16x128xf32> to vector<16x4xf32>
    %195 = vector.extract_strided_slice %193 {offsets = [0, 0], sizes = [16, 124], strides = [1, 1]} : vector<16x128xf32> to vector<16x124xf32>
    %196 = tpu.concatenate %194, %195 in 1 : vector<16x4xf32>, vector<16x124xf32> -> vector<16x128xf32>
    %c4_i32_52 = arith.constant 4 : i32
    %197 = vector.broadcast %c4_i32_52 : i32 to vector<16x1xi32>
    %198 = arith.andi %173, %197 : vector<16x1xi32>
    %c0_i32_53 = arith.constant 0 : i32
    %199 = vector.broadcast %c0_i32_53 : i32 to vector<16x1xi32>
    %200 = arith.cmpi ne, %198, %199 : vector<16x1xi32>
    %201 = vector.shape_cast %200 : vector<16x1xi1> to vector<16x1xi1>
    %202 = vector.broadcast %201 : vector<16x1xi1> to vector<16x128xi1>
    %203 = arith.select %202, %196, %193 : vector<16x128xi1>, vector<16x128xf32>
    %204 = vector.extract_strided_slice %203 {offsets = [0, 120], sizes = [16, 8], strides = [1, 1]} : vector<16x128xf32> to vector<16x8xf32>
    %205 = vector.extract_strided_slice %203 {offsets = [0, 0], sizes = [16, 120], strides = [1, 1]} : vector<16x128xf32> to vector<16x120xf32>
    %206 = tpu.concatenate %204, %205 in 1 : vector<16x8xf32>, vector<16x120xf32> -> vector<16x128xf32>
    %c8_i32_54 = arith.constant 8 : i32
    %207 = vector.broadcast %c8_i32_54 : i32 to vector<16x1xi32>
    %208 = arith.andi %173, %207 : vector<16x1xi32>
    %c0_i32_55 = arith.constant 0 : i32
    %209 = vector.broadcast %c0_i32_55 : i32 to vector<16x1xi32>
    %210 = arith.cmpi ne, %208, %209 : vector<16x1xi32>
    %211 = vector.shape_cast %210 : vector<16x1xi1> to vector<16x1xi1>
    %212 = vector.broadcast %211 : vector<16x1xi1> to vector<16x128xi1>
    %213 = arith.select %212, %206, %203 : vector<16x128xi1>, vector<16x128xf32>
    %214 = vector.extract_strided_slice %213 {offsets = [0, 0], sizes = [16, 16], strides = [1, 1]} : vector<16x128xf32> to vector<16x16xf32>
    %215 = arith.addf %168, %214 : vector<16x16xf32>
    %cst_56 = arith.constant 0.176776692 : f32
    %216 = vector.broadcast %cst_56 : f32 to vector<16x16xf32>
    %217 = arith.mulf %215, %216 : vector<16x16xf32>
    %cst_57 = arith.constant dense<0xFF800000> : vector<16xf32>
    %218 = vector.multi_reduction <maximumf>, %217, %cst_57 [1] : vector<16x16xf32> to vector<16xf32>
    %219 = vector.shape_cast %218 : vector<16xf32> to vector<16x1xf32>
    %220 = vector.broadcast %219 : vector<16x1xf32> to vector<16x16xf32>
    %221 = arith.subf %217, %220 : vector<16x16xf32>
    %222 = math.exp %221 : vector<16x16xf32>
    %cst_58 = arith.constant dense<0.000000e+00> : vector<16xf32>
    %223 = vector.multi_reduction <add>, %222, %cst_58 [1] : vector<16x16xf32> to vector<16xf32>
    %224 = vector.shape_cast %223 : vector<16xf32> to vector<16x1xf32>
    %225 = tpu.reciprocal %224 {approx = true} : vector<16x1xf32> -> vector<16x1xf32>
    %226 = vector.broadcast %225 : vector<16x1xf32> to vector<16x16xf32>
    %227 = arith.mulf %222, %226 : vector<16x16xf32>
    %cst_59 = arith.constant dense<0.000000e+00> : vector<16x32xf32>
    %228 = tpu.matmul %227, %167, %cst_59 {dimension_numbers = #tpu.dot_dimension_numbers<[1], [0], [0], [1], [0, 0, 1, 1], [], []>} : vector<16x16xf32>, vector<16x32xf32>, vector<16x32xf32> -> vector<16x32xf32>
    %229 = vector.extract_strided_slice %34 {offsets = [0, 96], sizes = [16, 32], strides = [1, 1]} : vector<16x384xf32> to vector<16x32xf32>
    %230 = vector.extract_strided_slice %34 {offsets = [0, 224], sizes = [16, 32], strides = [1, 1]} : vector<16x384xf32> to vector<16x32xf32>
    %231 = vector.extract_strided_slice %34 {offsets = [0, 352], sizes = [16, 32], strides = [1, 1]} : vector<16x384xf32> to vector<16x32xf32>
    %cst_60 = arith.constant dense<0.000000e+00> : vector<16x16xf32>
    %232 = tpu.matmul %229, %230, %cst_60 {dimension_numbers = #tpu.dot_dimension_numbers<[1], [1], [0], [0], [0, 0, 1, 0], [], []>} : vector<16x32xf32>, vector<16x32xf32>, vector<16x16xf32> -> vector<16x16xf32>
    %cst_61 = arith.constant dense<0.000000e+00> : vector<16x128xf32>
    %233 = tpu.matmul %229, %36, %cst_61 {dimension_numbers = #tpu.dot_dimension_numbers<[1], [1], [0], [0], [0, 0, 1, 0], [], []>} : vector<16x32xf32>, vector<128x32xf32>, vector<16x128xf32> -> vector<16x128xf32>
    %234 = vector.extract_strided_slice %233 {offsets = [0, 15], sizes = [16, 113], strides = [1, 1]} : vector<16x128xf32> to vector<16x113xf32>
    %235 = vector.extract_strided_slice %233 {offsets = [0, 0], sizes = [16, 15], strides = [1, 1]} : vector<16x128xf32> to vector<16x15xf32>
    %236 = tpu.concatenate %234, %235 in 1 : vector<16x113xf32>, vector<16x15xf32> -> vector<16x128xf32>
    %237 = tpu.iota {dimensions = array<i32: 0>} : vector<16x1xi32>
    %238 = vector.extract_strided_slice %236 {offsets = [0, 127], sizes = [16, 1], strides = [1, 1]} : vector<16x128xf32> to vector<16x1xf32>
    %239 = vector.extract_strided_slice %236 {offsets = [0, 0], sizes = [16, 127], strides = [1, 1]} : vector<16x128xf32> to vector<16x127xf32>
    %240 = tpu.concatenate %238, %239 in 1 : vector<16x1xf32>, vector<16x127xf32> -> vector<16x128xf32>
    %c1_i32_62 = arith.constant 1 : i32
    %241 = vector.broadcast %c1_i32_62 : i32 to vector<16x1xi32>
    %242 = arith.andi %237, %241 : vector<16x1xi32>
    %c0_i32_63 = arith.constant 0 : i32
    %243 = vector.broadcast %c0_i32_63 : i32 to vector<16x1xi32>
    %244 = arith.cmpi ne, %242, %243 : vector<16x1xi32>
    %245 = vector.shape_cast %244 : vector<16x1xi1> to vector<16x1xi1>
    %246 = vector.broadcast %245 : vector<16x1xi1> to vector<16x128xi1>
    %247 = arith.select %246, %240, %236 : vector<16x128xi1>, vector<16x128xf32>
    %248 = vector.extract_strided_slice %247 {offsets = [0, 126], sizes = [16, 2], strides = [1, 1]} : vector<16x128xf32> to vector<16x2xf32>
    %249 = vector.extract_strided_slice %247 {offsets = [0, 0], sizes = [16, 126], strides = [1, 1]} : vector<16x128xf32> to vector<16x126xf32>
    %250 = tpu.concatenate %248, %249 in 1 : vector<16x2xf32>, vector<16x126xf32> -> vector<16x128xf32>
    %c2_i32_64 = arith.constant 2 : i32
    %251 = vector.broadcast %c2_i32_64 : i32 to vector<16x1xi32>
    %252 = arith.andi %237, %251 : vector<16x1xi32>
    %c0_i32_65 = arith.constant 0 : i32
    %253 = vector.broadcast %c0_i32_65 : i32 to vector<16x1xi32>
    %254 = arith.cmpi ne, %252, %253 : vector<16x1xi32>
    %255 = vector.shape_cast %254 : vector<16x1xi1> to vector<16x1xi1>
    %256 = vector.broadcast %255 : vector<16x1xi1> to vector<16x128xi1>
    %257 = arith.select %256, %250, %247 : vector<16x128xi1>, vector<16x128xf32>
    %258 = vector.extract_strided_slice %257 {offsets = [0, 124], sizes = [16, 4], strides = [1, 1]} : vector<16x128xf32> to vector<16x4xf32>
    %259 = vector.extract_strided_slice %257 {offsets = [0, 0], sizes = [16, 124], strides = [1, 1]} : vector<16x128xf32> to vector<16x124xf32>
    %260 = tpu.concatenate %258, %259 in 1 : vector<16x4xf32>, vector<16x124xf32> -> vector<16x128xf32>
    %c4_i32_66 = arith.constant 4 : i32
    %261 = vector.broadcast %c4_i32_66 : i32 to vector<16x1xi32>
    %262 = arith.andi %237, %261 : vector<16x1xi32>
    %c0_i32_67 = arith.constant 0 : i32
    %263 = vector.broadcast %c0_i32_67 : i32 to vector<16x1xi32>
    %264 = arith.cmpi ne, %262, %263 : vector<16x1xi32>
    %265 = vector.shape_cast %264 : vector<16x1xi1> to vector<16x1xi1>
    %266 = vector.broadcast %265 : vector<16x1xi1> to vector<16x128xi1>
    %267 = arith.select %266, %260, %257 : vector<16x128xi1>, vector<16x128xf32>
    %268 = vector.extract_strided_slice %267 {offsets = [0, 120], sizes = [16, 8], strides = [1, 1]} : vector<16x128xf32> to vector<16x8xf32>
    %269 = vector.extract_strided_slice %267 {offsets = [0, 0], sizes = [16, 120], strides = [1, 1]} : vector<16x128xf32> to vector<16x120xf32>
    %270 = tpu.concatenate %268, %269 in 1 : vector<16x8xf32>, vector<16x120xf32> -> vector<16x128xf32>
    %c8_i32_68 = arith.constant 8 : i32
    %271 = vector.broadcast %c8_i32_68 : i32 to vector<16x1xi32>
    %272 = arith.andi %237, %271 : vector<16x1xi32>
    %c0_i32_69 = arith.constant 0 : i32
    %273 = vector.broadcast %c0_i32_69 : i32 to vector<16x1xi32>
    %274 = arith.cmpi ne, %272, %273 : vector<16x1xi32>
    %275 = vector.shape_cast %274 : vector<16x1xi1> to vector<16x1xi1>
    %276 = vector.broadcast %275 : vector<16x1xi1> to vector<16x128xi1>
    %277 = arith.select %276, %270, %267 : vector<16x128xi1>, vector<16x128xf32>
    %278 = vector.extract_strided_slice %277 {offsets = [0, 0], sizes = [16, 16], strides = [1, 1]} : vector<16x128xf32> to vector<16x16xf32>
    %279 = arith.addf %232, %278 : vector<16x16xf32>
    %cst_70 = arith.constant 0.176776692 : f32
    %280 = vector.broadcast %cst_70 : f32 to vector<16x16xf32>
    %281 = arith.mulf %279, %280 : vector<16x16xf32>
    %cst_71 = arith.constant dense<0xFF800000> : vector<16xf32>
    %282 = vector.multi_reduction <maximumf>, %281, %cst_71 [1] : vector<16x16xf32> to vector<16xf32>
    %283 = vector.shape_cast %282 : vector<16xf32> to vector<16x1xf32>
    %284 = vector.broadcast %283 : vector<16x1xf32> to vector<16x16xf32>
    %285 = arith.subf %281, %284 : vector<16x16xf32>
    %286 = math.exp %285 : vector<16x16xf32>
    %cst_72 = arith.constant dense<0.000000e+00> : vector<16xf32>
    %287 = vector.multi_reduction <add>, %286, %cst_72 [1] : vector<16x16xf32> to vector<16xf32>
    %288 = vector.shape_cast %287 : vector<16xf32> to vector<16x1xf32>
    %289 = tpu.reciprocal %288 {approx = true} : vector<16x1xf32> -> vector<16x1xf32>
    %290 = vector.broadcast %289 : vector<16x1xf32> to vector<16x16xf32>
    %291 = arith.mulf %286, %290 : vector<16x16xf32>
    %cst_73 = arith.constant dense<0.000000e+00> : vector<16x32xf32>
    %292 = tpu.matmul %291, %231, %cst_73 {dimension_numbers = #tpu.dot_dimension_numbers<[1], [0], [0], [1], [0, 0, 1, 1], [], []>} : vector<16x16xf32>, vector<16x32xf32>, vector<16x32xf32> -> vector<16x32xf32>
    %293 = tpu.concatenate %100, %164, %228, %292 in 1 : vector<16x32xf32>, vector<16x32xf32>, vector<16x32xf32>, vector<16x32xf32> -> vector<16x128xf32>
    %c0_74 = arith.constant 0 : index
    %c0_75 = arith.constant 0 : index
    %c0_76 = arith.constant 0 : index
    %294 = vector.load %arg14[%c0_74, %c0_75, %c0_76] : memref<1x128x128xf32, #tpu.memory_space<vmem>>, vector<1x128x128xf32>
    %295 = vector.shape_cast %294 : vector<1x128x128xf32> to vector<128x128xf32>
    %cst_77 = arith.constant dense<0.000000e+00> : vector<16x128xf32>
    %296 = tpu.matmul %293, %295, %cst_77 {dimension_numbers = #tpu.dot_dimension_numbers<[1], [0], [0], [1], [0, 0, 1, 1], [], []>} : vector<16x128xf32>, vector<128x128xf32>, vector<16x128xf32> -> vector<16x128xf32>
    %c0_78 = arith.constant 0 : index
    %c0_79 = arith.constant 0 : index
    %c0_80 = arith.constant 0 : index
    %297 = vector.load %arg15[%c0_78, %c0_79, %c0_80] : memref<1x1x128xf32, #tpu.memory_space<vmem>>, vector<1x1x128xf32>
    %298 = vector.shape_cast %297 : vector<1x1x128xf32> to vector<1x128xf32>
    %299 = vector.broadcast %298 : vector<1x128xf32> to vector<16x128xf32>
    %300 = arith.addf %296, %299 : vector<16x128xf32>
    %301 = arith.addf %3, %300 : vector<16x128xf32>
    %c0_81 = arith.constant 0 : index
    %c0_82 = arith.constant 0 : index
    %c0_83 = arith.constant 0 : index
    %302 = vector.load %arg16[%c0_81, %c0_82, %c0_83] : memref<1x1x128xf32, #tpu.memory_space<vmem>>, vector<1x1x128xf32>
    %303 = vector.shape_cast %302 : vector<1x1x128xf32> to vector<1x128xf32>
    %c0_84 = arith.constant 0 : index
    %c0_85 = arith.constant 0 : index
    %c0_86 = arith.constant 0 : index
    %304 = vector.load %arg17[%c0_84, %c0_85, %c0_86] : memref<1x1x128xf32, #tpu.memory_space<vmem>>, vector<1x1x128xf32>
    %305 = vector.shape_cast %304 : vector<1x1x128xf32> to vector<1x128xf32>
    %cst_87 = arith.constant dense<0.000000e+00> : vector<16xf32>
    %306 = vector.multi_reduction <add>, %301, %cst_87 [1] : vector<16x128xf32> to vector<16xf32>
    %307 = vector.shape_cast %306 : vector<16xf32> to vector<16x1xf32>
    %cst_88 = arith.constant 1.280000e+02 : f32
    %308 = vector.broadcast %cst_88 : f32 to vector<16x1xf32>
    %309 = arith.divf %307, %308 : vector<16x1xf32>
    %310 = vector.broadcast %309 : vector<16x1xf32> to vector<16x128xf32>
    %311 = arith.subf %301, %310 : vector<16x128xf32>
    %312 = arith.mulf %311, %311 : vector<16x128xf32>
    %cst_89 = arith.constant dense<0.000000e+00> : vector<16xf32>
    %313 = vector.multi_reduction <add>, %312, %cst_89 [1] : vector<16x128xf32> to vector<16xf32>
    %314 = vector.shape_cast %313 : vector<16xf32> to vector<16x1xf32>
    %cst_90 = arith.constant 1.280000e+02 : f32
    %315 = vector.broadcast %cst_90 : f32 to vector<16x1xf32>
    %316 = arith.divf %314, %315 : vector<16x1xf32>
    %cst_91 = arith.constant 9.99999996E-13 : f32
    %317 = vector.broadcast %cst_91 : f32 to vector<16x1xf32>
    %318 = arith.addf %316, %317 : vector<16x1xf32>
    %319 = math.rsqrt %318 : vector<16x1xf32>
    %320 = vector.broadcast %319 : vector<16x1xf32> to vector<16x128xf32>
    %321 = arith.mulf %311, %320 : vector<16x128xf32>
    %322 = vector.broadcast %303 : vector<1x128xf32> to vector<16x128xf32>
    %323 = arith.mulf %321, %322 : vector<16x128xf32>
    %324 = vector.broadcast %305 : vector<1x128xf32> to vector<16x128xf32>
    %325 = arith.addf %323, %324 : vector<16x128xf32>
    %c0_92 = arith.constant 0 : index
    %c0_93 = arith.constant 0 : index
    %c0_94 = arith.constant 0 : index
    %326 = vector.load %arg18[%c0_92, %c0_93, %c0_94] : memref<1x128x256xf32, #tpu.memory_space<vmem>>, vector<1x128x256xf32>
    %327 = vector.shape_cast %326 : vector<1x128x256xf32> to vector<128x256xf32>
    %cst_95 = arith.constant dense<0.000000e+00> : vector<16x256xf32>
    %328 = tpu.matmul %325, %327, %cst_95 {dimension_numbers = #tpu.dot_dimension_numbers<[1], [0], [0], [1], [0, 0, 1, 1], [], []>} : vector<16x128xf32>, vector<128x256xf32>, vector<16x256xf32> -> vector<16x256xf32>
    %c0_96 = arith.constant 0 : index
    %c0_97 = arith.constant 0 : index
    %c0_98 = arith.constant 0 : index
    %329 = vector.load %arg19[%c0_96, %c0_97, %c0_98] : memref<1x1x256xf32, #tpu.memory_space<vmem>>, vector<1x1x256xf32>
    %330 = vector.shape_cast %329 : vector<1x1x256xf32> to vector<1x256xf32>
    %331 = vector.broadcast %330 : vector<1x256xf32> to vector<16x256xf32>
    %332 = arith.addf %328, %331 : vector<16x256xf32>
    %cst_99 = arith.constant 0.000000e+00 : f32
    %333 = vector.broadcast %cst_99 : f32 to vector<16x256xf32>
    %334 = arith.maximumf %332, %333 : vector<16x256xf32>
    %c0_100 = arith.constant 0 : index
    %c0_101 = arith.constant 0 : index
    %c0_102 = arith.constant 0 : index
    %335 = vector.load %arg20[%c0_100, %c0_101, %c0_102] : memref<1x256x128xf32, #tpu.memory_space<vmem>>, vector<1x256x128xf32>
    %336 = vector.shape_cast %335 : vector<1x256x128xf32> to vector<256x128xf32>
    %cst_103 = arith.constant dense<0.000000e+00> : vector<16x128xf32>
    %337 = tpu.matmul %334, %336, %cst_103 {dimension_numbers = #tpu.dot_dimension_numbers<[1], [0], [0], [1], [0, 0, 1, 1], [], []>} : vector<16x256xf32>, vector<256x128xf32>, vector<16x128xf32> -> vector<16x128xf32>
    %338 = arith.addf %301, %337 : vector<16x128xf32>
    %c0_104 = arith.constant 0 : index
    %c0_105 = arith.constant 0 : index
    %c0_106 = arith.constant 0 : index
    %339 = vector.load %arg21[%c0_104, %c0_105, %c0_106] : memref<1x1x128xf32, #tpu.memory_space<vmem>>, vector<1x1x128xf32>
    %340 = vector.shape_cast %339 : vector<1x1x128xf32> to vector<1x128xf32>
    %341 = vector.broadcast %340 : vector<1x128xf32> to vector<16x128xf32>
    %342 = arith.addf %338, %341 : vector<16x128xf32>
    %c0_107 = arith.constant 0 : index
    %c0_108 = arith.constant 0 : index
    %343 = vector.load %arg27[%c0_107, %c0_108] : memref<16x128xf32, #tpu.memory_space<vmem>>, vector<16x128xf32>
    tpu.vector_store %arg27[%c0_107, %c0_108], %342 {strides = array<i32>} : memref<16x128xf32, #tpu.memory_space<vmem>>, vector<16x128xf32>,
    %c1_i32_109 = arith.constant 1 : i32
    %344 = arith.cmpi eq, %arg1, %c1_i32_109 : i32
    %345 = arith.extui %344 : i1 to i32
    %c0_i32_110 = arith.constant 0 : i32
    %346 = arith.cmpi ne, %345, %c0_i32_110 : i32
    scf.if %346 {
      %c0_111 = arith.constant 0 : index
      %c0_112 = arith.constant 0 : index
      %347 = vector.load %arg22[%c0_111, %c0_112] : memref<1x128xf32, #tpu.memory_space<vmem>>, vector<1x128xf32>
      %c0_113 = arith.constant 0 : index
      %c0_114 = arith.constant 0 : index
      %348 = vector.load %arg23[%c0_113, %c0_114] : memref<1x128xf32, #tpu.memory_space<vmem>>, vector<1x128xf32>
      %cst_115 = arith.constant dense<0.000000e+00> : vector<16xf32>
      %349 = vector.multi_reduction <add>, %342, %cst_115 [1] : vector<16x128xf32> to vector<16xf32>
      %350 = vector.shape_cast %349 : vector<16xf32> to vector<16x1xf32>
      %cst_116 = arith.constant 1.280000e+02 : f32
      %351 = vector.broadcast %cst_116 : f32 to vector<16x1xf32>
      %352 = arith.divf %350, %351 : vector<16x1xf32>
      %353 = vector.broadcast %352 : vector<16x1xf32> to vector<16x128xf32>
      %354 = arith.subf %342, %353 : vector<16x128xf32>
      %355 = arith.mulf %354, %354 : vector<16x128xf32>
      %cst_117 = arith.constant dense<0.000000e+00> : vector<16xf32>
      %356 = vector.multi_reduction <add>, %355, %cst_117 [1] : vector<16x128xf32> to vector<16xf32>
      %357 = vector.shape_cast %356 : vector<16xf32> to vector<16x1xf32>
      %cst_118 = arith.constant 1.280000e+02 : f32
      %358 = vector.broadcast %cst_118 : f32 to vector<16x1xf32>
      %359 = arith.divf %357, %358 : vector<16x1xf32>
      %cst_119 = arith.constant 9.99999996E-13 : f32
      %360 = vector.broadcast %cst_119 : f32 to vector<16x1xf32>
      %361 = arith.addf %359, %360 : vector<16x1xf32>
      %362 = math.rsqrt %361 : vector<16x1xf32>
      %363 = vector.broadcast %362 : vector<16x1xf32> to vector<16x128xf32>
      %364 = arith.mulf %354, %363 : vector<16x128xf32>
      %365 = vector.broadcast %347 : vector<1x128xf32> to vector<16x128xf32>
      %366 = arith.mulf %364, %365 : vector<16x128xf32>
      %367 = vector.broadcast %348 : vector<1x128xf32> to vector<16x128xf32>
      %368 = arith.addf %366, %367 : vector<16x128xf32>
      %c0_120 = arith.constant 0 : index
      %c0_121 = arith.constant 0 : index
      %369 = vector.load %arg24[%c0_120, %c0_121] : memref<128x128xf32, #tpu.memory_space<vmem>>, vector<128x128xf32>
      %cst_122 = arith.constant dense<0.000000e+00> : vector<16x128xf32>
      %370 = tpu.matmul %368, %369, %cst_122 {dimension_numbers = #tpu.dot_dimension_numbers<[1], [0], [0], [1], [0, 0, 1, 1], [], []>} : vector<16x128xf32>, vector<128x128xf32>, vector<16x128xf32> -> vector<16x128xf32>
      %c0_123 = arith.constant 0 : index
      %c0_124 = arith.constant 0 : index
      %371 = vector.load %arg25[%c0_123, %c0_124] : memref<1x128xf32, #tpu.memory_space<vmem>>, vector<1x128xf32>
      %372 = vector.broadcast %371 : vector<1x128xf32> to vector<16x128xf32>
      %373 = arith.addf %370, %372 : vector<16x128xf32>
      %374 = arith.negf %373 : vector<16x128xf32>
      %375 = math.exp %374 : vector<16x128xf32>
      %cst_125 = arith.constant 1.000000e+00 : f32
      %376 = vector.broadcast %cst_125 : f32 to vector<16x128xf32>
      %377 = arith.addf %376, %375 : vector<16x128xf32>
      %378 = arith.divf %376, %377 : vector<16x128xf32>
      %379 = vector.shape_cast %378 : vector<16x128xf32> to vector<1x16x128xf32>
      %c0_126 = arith.constant 0 : index
      %c0_127 = arith.constant 0 : index
      %c0_128 = arith.constant 0 : index
      %380 = vector.load %arg26[%c0_126, %c0_127, %c0_128] : memref<1x16x128xf32, #tpu.memory_space<vmem>>, vector<1x16x128xf32>
      tpu.vector_store %arg26[%c0_126, %c0_127, %c0_128], %379 {strides = array<i32>} : memref<1x16x128xf32, #tpu.memory_space<vmem>>, vector<1x16x128xf32>,
    } else {
    }
    return
  }
  func.func @transform_0(%arg0: i32, %arg1: i32) -> (i32, i32, i32) {
    %c0_i32 = arith.constant 0 : i32
    %c0_i32_0 = arith.constant 0 : i32
    %c0_i32_1 = arith.constant 0 : i32
    return %arg0, %c0_i32, %c0_i32_0 : i32, i32, i32
  }
  func.func @transform_1(%arg0: i32, %arg1: i32) -> (i32, i32) {
    %c0_i32 = arith.constant 0 : i32
    %c0_i32_0 = arith.constant 0 : i32
    %c0_i32_1 = arith.constant 0 : i32
    return %c0_i32, %c0_i32_0 : i32, i32
  }
  func.func @transform_2(%arg0: i32, %arg1: i32) -> (i32, i32) {
    %c0_i32 = arith.constant 0 : i32
    %c0_i32_0 = arith.constant 0 : i32
    %c0_i32_1 = arith.constant 0 : i32
    return %c0_i32, %c0_i32_0 : i32, i32
  }
  func.func @transform_3(%arg0: i32, %arg1: i32) -> (i32, i32) {
    %c0_i32 = arith.constant 0 : i32
    %c0_i32_0 = arith.constant 0 : i32
    %c0_i32_1 = arith.constant 0 : i32
    return %c0_i32, %c0_i32_0 : i32, i32
  }
  func.func @transform_4(%arg0: i32, %arg1: i32) -> (i32, i32) {
    %c0_i32 = arith.constant 0 : i32
    %c0_i32_0 = arith.constant 0 : i32
    %c0_i32_1 = arith.constant 0 : i32
    return %c0_i32, %c0_i32_0 : i32, i32
  }
  func.func @transform_5(%arg0: i32, %arg1: i32) -> (i32, i32) {
    %c0_i32 = arith.constant 0 : i32
    %c0_i32_0 = arith.constant 0 : i32
    %c0_i32_1 = arith.constant 0 : i32
    return %c0_i32, %c0_i32_0 : i32, i32
  }
  func.func @transform_6(%arg0: i32, %arg1: i32) -> (i32, i32) {
    %c0_i32 = arith.constant 0 : i32
    %c0_i32_0 = arith.constant 0 : i32
    %c0_i32_1 = arith.constant 0 : i32
    return %c0_i32, %c0_i32_0 : i32, i32
  }
  func.func @transform_7(%arg0: i32, %arg1: i32) -> (i32, i32, i32) {
    %c0_i32 = arith.constant 0 : i32
    %c0_i32_0 = arith.constant 0 : i32
    %c0_i32_1 = arith.constant 0 : i32
    return %arg1, %c0_i32, %c0_i32_0 : i32, i32, i32
  }
  func.func @transform_8(%arg0: i32, %arg1: i32) -> (i32, i32, i32) {
    %c0_i32 = arith.constant 0 : i32
    %c0_i32_0 = arith.constant 0 : i32
    %c0_i32_1 = arith.constant 0 : i32
    return %arg1, %c0_i32, %c0_i32_0 : i32, i32, i32
  }
  func.func @transform_9(%arg0: i32, %arg1: i32) -> (i32, i32, i32) {
    %c0_i32 = arith.constant 0 : i32
    %c0_i32_0 = arith.constant 0 : i32
    %c0_i32_1 = arith.constant 0 : i32
    return %arg1, %c0_i32, %c0_i32_0 : i32, i32, i32
  }
  func.func @transform_10(%arg0: i32, %arg1: i32) -> (i32, i32, i32) {
    %c0_i32 = arith.constant 0 : i32
    %c0_i32_0 = arith.constant 0 : i32
    %c0_i32_1 = arith.constant 0 : i32
    return %arg1, %c0_i32, %c0_i32_0 : i32, i32, i32
  }
  func.func @transform_11(%arg0: i32, %arg1: i32) -> (i32, i32, i32) {
    %c0_i32 = arith.constant 0 : i32
    %c0_i32_0 = arith.constant 0 : i32
    %c0_i32_1 = arith.constant 0 : i32
    return %arg1, %c0_i32, %c0_i32_0 : i32, i32, i32
  }
  func.func @transform_12(%arg0: i32, %arg1: i32) -> (i32, i32, i32) {
    %c0_i32 = arith.constant 0 : i32
    %c0_i32_0 = arith.constant 0 : i32
    %c0_i32_1 = arith.constant 0 : i32
    return %arg1, %c0_i32, %c0_i32_0 : i32, i32, i32
  }
  func.func @transform_13(%arg0: i32, %arg1: i32) -> (i32, i32, i32) {
    %c0_i32 = arith.constant 0 : i32
    %c0_i32_0 = arith.constant 0 : i32
    %c0_i32_1 = arith.constant 0 : i32
    return %arg1, %c0_i32, %c0_i32_0 : i32, i32, i32
  }
  func.func @transform_14(%arg0: i32, %arg1: i32) -> (i32, i32, i32) {
    %c0_i32 = arith.constant 0 : i32
    %c0_i32_0 = arith.constant 0 : i32
    %c0_i32_1 = arith.constant 0 : i32
    return %arg1, %c0_i32, %c0_i32_0 : i32, i32, i32
  }
  func.func @transform_15(%arg0: i32, %arg1: i32) -> (i32, i32, i32) {
    %c0_i32 = arith.constant 0 : i32
    %c0_i32_0 = arith.constant 0 : i32
    %c0_i32_1 = arith.constant 0 : i32
    return %arg1, %c0_i32, %c0_i32_0 : i32, i32, i32
  }
  func.func @transform_16(%arg0: i32, %arg1: i32) -> (i32, i32, i32) {
    %c0_i32 = arith.constant 0 : i32
    %c0_i32_0 = arith.constant 0 : i32
    %c0_i32_1 = arith.constant 0 : i32
    return %arg1, %c0_i32, %c0_i32_0 : i32, i32, i32
  }
  func.func @transform_17(%arg0: i32, %arg1: i32) -> (i32, i32, i32) {
    %c0_i32 = arith.constant 0 : i32
    %c0_i32_0 = arith.constant 0 : i32
    %c0_i32_1 = arith.constant 0 : i32
    return %arg1, %c0_i32, %c0_i32_0 : i32, i32, i32
  }
  func.func @transform_18(%arg0: i32, %arg1: i32) -> (i32, i32, i32) {
    %c0_i32 = arith.constant 0 : i32
    %c0_i32_0 = arith.constant 0 : i32
    %c0_i32_1 = arith.constant 0 : i32
    return %arg1, %c0_i32, %c0_i32_0 : i32, i32, i32
  }
  func.func @transform_19(%arg0: i32, %arg1: i32) -> (i32, i32, i32) {
    %c0_i32 = arith.constant 0 : i32
    %c0_i32_0 = arith.constant 0 : i32
    %c0_i32_1 = arith.constant 0 : i32
    return %arg1, %c0_i32, %c0_i32_0 : i32, i32, i32
  }
  func.func @transform_20(%arg0: i32, %arg1: i32) -> (i32, i32) {
    %c0_i32 = arith.constant 0 : i32
    %c0_i32_0 = arith.constant 0 : i32
    %c0_i32_1 = arith.constant 0 : i32
    return %c0_i32, %c0_i32_0 : i32, i32
  }
  func.func @transform_21(%arg0: i32, %arg1: i32) -> (i32, i32) {
    %c0_i32 = arith.constant 0 : i32
    %c0_i32_0 = arith.constant 0 : i32
    %c0_i32_1 = arith.constant 0 : i32
    return %c0_i32, %c0_i32_0 : i32, i32
  }
  func.func @transform_22(%arg0: i32, %arg1: i32) -> (i32, i32) {
    %c0_i32 = arith.constant 0 : i32
    %c0_i32_0 = arith.constant 0 : i32
    %c0_i32_1 = arith.constant 0 : i32
    return %c0_i32, %c0_i32_0 : i32, i32
  }
  func.func @transform_23(%arg0: i32, %arg1: i32) -> (i32, i32) {
    %c0_i32 = arith.constant 0 : i32
    %c0_i32_0 = arith.constant 0 : i32
    %c0_i32_1 = arith.constant 0 : i32
    return %c0_i32, %c0_i32_0 : i32, i32
  }
  func.func @transform_24(%arg0: i32, %arg1: i32) -> (i32, i32, i32) {
    %c0_i32 = arith.constant 0 : i32
    %c0_i32_0 = arith.constant 0 : i32
    %c0_i32_1 = arith.constant 0 : i32
    return %arg0, %c0_i32, %c0_i32_0 : i32, i32, i32
  }
}

</mosaic_0001>

<bundles_post_ra>
// kernel: tpu_custom_call.1
= control target key start
LH: loop header
LB: loop body
LE: loop exit
PB: predicated region body
PF: predicated region fallthrough
CT: control target
= control target key end

     0   :  { %s7852_s0 = inlined_call_operand.hbm [shape: f32[2,16,128], index: 0, kind: input, shape index: {}]   ;;  %s7853_s1 = inlined_call_operand.hbm [shape: f32[1,128], index: 1, kind: input, shape index: {}]   ;;  %s7854_s2 = inlined_call_operand.hbm [shape: f32[1,128], index: 2, kind: input, shape index: {}]   ;;  %s7855_s3 = inlined_call_operand.hbm [shape: f32[128,128], index: 3, kind: input, shape index: {}]   ;;  %s7856_s4 = inlined_call_operand.hbm [shape: f32[1,128], index: 4, kind: input, shape index: {}]   ;;  %s7857_s5 = inlined_call_operand.hbm [shape: f32[1,128], index: 5, kind: input, shape index: {}]   ;;  %s7858_s6 = inlined_call_operand.hbm [shape: f32[1,128], index: 6, kind: input, shape index: {}]   ;;  %s7859_s7 = inlined_call_operand.vmem [shape: f32[2,128,32], index: 7, kind: input, shape index: {}]   ;;  %s7860_s8 = inlined_call_operand.hbm [shape: f32[2,1,128], index: 8, kind: input, shape index: {}]   ;;  %s7861_s9 = inlined_call_operand.hbm [shape: f32[2,1,128], index: 9, kind: input, shape index: {}]   ;;  %s7862_s10 = inlined_call_operand.hbm [shape: f32[2,128,384], index: 10, kind: input, shape index: {}]   ;;  %s7863_s11 = inlined_call_operand.hbm [shape: f32[2,1,384], index: 11, kind: input, shape index: {}]   ;;  %s7864_s12 = inlined_call_operand.vmem [shape: f32[2,128,128], index: 12, kind: input, shape index: {}]   ;;  %s7865_s13 = inlined_call_operand.hbm [shape: f32[2,1,128], index: 13, kind: input, shape index: {}]   ;;  %s7866_s14 = inlined_call_operand.hbm [shape: f32[2,1,128], index: 14, kind: input, shape index: {}]   ;;  %s7867_s15 = inlined_call_operand.hbm [shape: f32[2,1,128], index: 15, kind: input, shape index: {}]   ;;  %s7868_s16 = inlined_call_operand.hbm [shape: f32[2,128,256], index: 16, kind: input, shape index: {}]   ;;  %s7869_s17 = inlined_call_operand.vmem [shape: f32[2,1,256], index: 17, kind: input, shape index: {}]   ;;  %s7870_s18 = inlined_call_operand.hbm [shape: f32[2,256,128], index: 18, kind: input, shape index: {}]   ;;  %s7871_s19 = inlined_call_operand.hbm [shape: f32[2,1,128], index: 19, kind: input, shape index: {}]   ;;  %s7872_s20 = inlined_call_operand.vmem [shape: f32[1,128], index: 20, kind: input, shape index: {}]   ;;  %s7873_s21 = inlined_call_operand.vmem [shape: f32[1,128], index: 21, kind: input, shape index: {}]   ;;  %s7874_s22 = inlined_call_operand.vmem [shape: f32[128,128], index: 22, kind: input, shape index: {}]   ;;  %s7875_s23 = inlined_call_operand.vmem [shape: f32[1,128], index: 23, kind: input, shape index: {}]   ;;  %s7876_s24 = inlined_call_operand.hbm [shape: f32[2,16,128], index: 24, kind: output, shape index: {}]  }
   0x1   :  { %7945 = sst [smem:[#allocation56_spill]] %s7852_s0 }
   0x2   :  { %7946 = sst [smem:[#allocation57_spill]] %s7853_s1 }
   0x3   :  { %7947 = sst [smem:[#allocation58_spill]] %s7854_s2 }
   0x4   :  { %7948 = sst [smem:[#allocation59_spill]] %s7855_s3 }
   0x5   :  { %7949 = sst [smem:[#allocation60_spill]] %s7856_s4 }
   0x6   :  { %7950 = sst [smem:[#allocation61_spill]] %s7857_s5 }
   0x7   :  { %7951 = sst [smem:[#allocation62_spill]] %s7858_s6 }
   0x8   :  { %7952 = sst [smem:[#allocation63_spill]] %s7859_s7 }
   0x9   :  { %7953 = sst [smem:[#allocation64_spill]] %s7860_s8 }
   0xa   :  { %7954 = sst [smem:[#allocation65_spill]] %s7861_s9 }
   0xb   :  { %7955 = sst [smem:[#allocation66_spill]] %s7862_s10 }
   0xc   :  { %7956 = sst [smem:[#allocation67_spill]] %s7863_s11 }
   0xd   :  { %7957 = sst [smem:[#allocation68_spill]] %s7864_s12 }
   0xe   :  { %7958 = sst [smem:[#allocation69_spill]] %s7865_s13 }
   0xf   :  { %7959 = sst [smem:[#allocation70_spill]] %s7866_s14 }
  0x10   :  { %7960 = sst [smem:[#allocation71_spill]] %s7867_s15 }
  0x11   :  { %7961 = sst [smem:[#allocation72_spill]] %s7868_s16 }
  0x12   :  { %7962 = sst [smem:[#allocation73_spill]] %s7869_s17 }
  0x13   :  { %7963 = sst [smem:[#allocation74_spill]] %s7870_s18 }
  0x14   :  { %7964 = sst [smem:[#allocation75_spill]] %s7871_s19 }
  0x15   :  { %7965 = sst [smem:[#allocation76_spill]] %s7872_s20 }
  0x16   :  { %7966 = sst [smem:[#allocation77_spill]] %s7873_s21 }
  0x17   :  { %7967 = sst [smem:[#allocation78_spill]] %s7874_s22 }
  0x18   :  { %7968 = sst [smem:[#allocation79_spill]] %s7875_s23 }
  0x19   :  { %7969 = sst [smem:[#allocation80_spill]] %s7876_s24 }
  0x1a   :  { %29 = vsyncpa [#allocation4], 0 }
  0x1b   :  { %31 = vsyncpa [#allocation4 + $0x1], 0 }
  0x1c   :  { %32 = vsyncpa [#allocation7], 0 }
  0x1d   :  { %33 = vsyncpa [#allocation10], 0 }
  0x1e   :  { %34 = vsyncpa [#allocation13], 0 }
  0x1f   :  { %35 = vsyncpa [#allocation16], 0 }
  0x20   :  { %37 = vsyncpa [#allocation16 + $0x1], 0 }
  0x21   :  { %38 = vsyncpa [#allocation19], 0 }
  0x22   :  { %40 = vsyncpa [#allocation19 + $0x1], 0 }
  0x23   :  { %41 = vsyncpa [#allocation22], 0 }
  0x24   :  { %43 = vsyncpa [#allocation22 + $0x1], 0 }
  0x25   :  { %44 = vsyncpa [#allocation25], 0 }
  0x26   :  { %46 = vsyncpa [#allocation25 + $0x1], 0 }
  0x27   :  { %47 = vsyncpa [#allocation28], 0 }
  0x28   :  { %49 = vsyncpa [#allocation28 + $0x1], 0 }
  0x29   :  { %50 = vsyncpa [#allocation5], 0 }
  0x2a   :  { %52 = vsyncpa [#allocation5 + $0x1], 0  ;;  %s6355_s5 = smov 0   ;;  %s6357_s26 = smov 0  }
  0x2b   :  { %s6359_s27 = smov 0   ;;  %s6361_s28 = smov 0  }
  0x2c   :  { %s6363_s6 = smov 0   ;;  %s6365_s2 = smov 0  }
  0x2d   :  { %s6367_s29 = smov 0   ;;  %s6369_s0 = smov 0  }
  0x2e   :  { %s6371_s7 = smov 0   ;;  %s6373_s30 = smov 0  }
  0x2f   :  { %s6375_s3 = smov 0  }
  0x30 LB: > { %7970 = sst [smem:[#allocation41_spill]] %s6158_s26  ;;  %s6409_s25 = sadd.s32 4294967295, %s6194_s3   ;;  %s6194_s3 = sphi %s6375_s3, %s58_s3   ;;  %s6190_s30 = sphi %s6373_s30, %s8091_s30   ;;  %s6186_s7 = sphi %s6371_s7, %s8090_s7   ;;  %s6182_s0 = sphi %s6369_s0, %s8089_s0   ;;  %s6178_s29 = sphi %s6367_s29, %s8088_s29   ;;  %s6174_s2 = sphi %s6365_s2, %s8087_s2   ;;  %s6170_s6 = sphi %s6363_s6, %s8093_s6   ;;  %s6166_s28 = sphi %s6361_s28, %s8092_s28   ;;  %s6162_s27 = sphi %s6359_s27, %s8085_s27   ;;  %s6158_s26 = sphi %s6357_s26, %s8084_s26   ;;  %s6154_s5 = sphi %s6355_s5, %s8083_s5  }
  0x31   : > { %7971 = sst [smem:[#allocation42_spill]] %s6162_s27  ;;  %p268_p0 = scmp.ne.s32.totalorder %s6158_s26, %s6154_s5 }
  0x32   : > { %7972 = sst [smem:[#allocation43_spill]] %s6174_s2  ;;  %p7891_p1 = scmp.eq.s32.totalorder %s6409_s25, 0 }
  0x33   : > { %7973 = sst [smem:[#allocation44_spill]] %s6178_s29  ;;  %p4032_p2 = scmp.ge.s32.totalorder %s6194_s3, 1 }
  0x34   : > { %7974 = sst [smem:[#allocation45_spill]] %s6182_s0  ;;  %p675_p3 = scmp.lt.s32.totalorder %s6194_s3, 5 }
  0x35   : > { %7975 = sst [smem:[#allocation46_spill]] %s6186_s7  ;;  %p6417_p4 = por %p268_p0, %p7891_p1 }
  0x36   : > { %7976 = sst [smem:[#allocation47_spill]] %s6190_s30  ;;  %p6421_p5 = pnand %p4032_p2, %p675_p3 }
  0x37   : > { %s7977_s8 = scalar_select %p6417_p4, 1, 0 }
  0x38   : > { %s7979_s4 = scalar_select %p6421_p5, 1, 0 }
  0x39   : > { %7978 = sst [smem:[#allocation48_spill]] %s7977_s8  ;;  %s6196_s1 = smov [#allocation6]  }
  0x3a   : > { %7980 = sst [smem:[#allocation49_spill]] %s7979_s4  ;;  %s688_s24 = sshll.u32 %s6196_s1, 4  ;;  %s689_s24 = int_to_ptr.vmem [resolvable:$true] %s688_s24 }
  0x3b   : > { %p5258_p6 = pneg %p6421_p5  ;;  %s6197_s0 = smov [#allocation9]  }
  0x3c   : > { %s709_s5 = sshll.u32 %s6197_s0, 4  ;;  %s6198_s21 = smov [#allocation12]   ;;  %s6433_s5 = int_to_ptr.vmem [resolvable:$true] %s709_s5 }
  0x3d   : > { %p6429_p7 = pnand %p5258_p6, %p7891_p1  ;;  %s6435_s20 = sshll.u32 %s6198_s21, 4  ;;  %s735_s20 = int_to_ptr.vmem [resolvable:$true] %s6435_s20 }
  0x3e   : > { %s7982_s12 = sld [smem:[#allocation57_spill]] }
  0x3f   : > { %s7981_s23 = scalar_select %p6429_p7, 1, 0 }
  0x40   : > { %p6445_p9 = pneg %p6429_p7 }
  0x42   : > { %s7983_s0 = scalar_select %p6445_p9, 1, 0 }
  0x44   : > { %s5542_s1 = scalar_lea.hbm %s7982_s12, 16 }
  0x45   : > { %p5543_p8 = scmp.ne.s32.totalorder %s7982_s12, %s5542_s1  ;;  %p5549_p12 = scmp.lt.u32.totalorder %s5542_s1, %s7982_s12 }
  0x47   : > { %p5545_p10 = pnand %p6445_p9, %p5543_p8 }
  0x49   : > { %p5546_p11 = pneg %p5545_p10 }
  0x4b   : > { %p5551_p13 = pnand %p5549_p12, %p5546_p11 }
  0x4d   : > { %5554 = shalt.err (!%p5551_p13)
}
  0x4e   : > { %s5555_s17 = scalar_lea.vmem %s689_s24, 16  ;;  %s5562_s22 = scalar_lea.vmem %s689_s24, 32 }
  0x4f   : > { %p5556_p0 = scmp.ne.s32.totalorder %s689_s24, %s5555_s17  ;;  %p5563_p6 = scmp.lt.s32.totalorder %s689_s24, %s689_s24 }
  0x50   : > { %p5564_p1 = scmp.lt.s32.totalorder %s5562_s22, %s5555_s17 }
  0x51   : > { %p5558_p2 = pnand %p5556_p0, %p6445_p9 }
  0x52   : > { %p5565_p4 = por %p5564_p1, %p5563_p6 }
  0x53   : > { %p5559_p3 = pneg %p5558_p2 }
  0x55   : > { %p5566_p5 = pnand %p5565_p4, %p5559_p3 }
  0x57   : > { %5569 = shalt.err (!%p5566_p5)
}
  0x58   : > { %5261 = dma.hbm_to_vmem [thread:$0]  (!%p6429_p7), %s7982_s12, 16, %s689_s24, [#allocation7]  }
  0x59   : > { %s7984_s21 = sld [smem:[#allocation59_spill]] }
  0x5f   : > { %s5570_s19 = scalar_lea.hbm %s7984_s21, 2048 }
  0x60   : > { %p5571_p8 = scmp.ne.s32.totalorder %s7984_s21, %s5570_s19  ;;  %p5577_p4 = scmp.lt.u32.totalorder %s5570_s19, %s7984_s21 }
  0x62   : > { %p5573_p10 = pnand %p5571_p8, %p6445_p9 }
  0x64   : > { %p5574_p1 = pneg %p5573_p10 }
  0x66   : > { %p5579_p5 = pnand %p5577_p4, %p5574_p1 }
  0x68   : > { %5582 = shalt.err (!%p5579_p5)
}
  0x69   : > { %s5583_s24 = scalar_lea.vmem %s6433_s5, 2048  ;;  %p5591_p0 = scmp.lt.s32.totalorder %s6433_s5, %s6433_s5 }
  0x6a   : > { %p5584_p11 = scmp.ne.s32.totalorder %s6433_s5, %s5583_s24  ;;  %p5592_p2 = scmp.lt.s32.totalorder %s5583_s24, %s5583_s24 }
  0x6c   : > { %p5586_p12 = pnand %p5584_p11, %p6445_p9  ;;  %p5593_p3 = por %p5592_p2, %p5591_p0 }
  0x6e   : > { %p5587_p13 = pneg %p5586_p12 }
  0x70   : > { %p5594_p6 = pnand %p5593_p3, %p5587_p13 }
  0x72   : > { %5597 = shalt.err (!%p5594_p6)
}
  0x73   : > { %s7899_s11 = smov 128   ;;  %s7901_s14 = smov 8  }
  0x74   : > { %5267 = dma.hbm_to_vmem [thread:$0]  (!%p6429_p7), %s7984_s21, 2048, %s6433_s5, [#allocation10], %s7899_s11, %s7899_s11, %s7901_s14  }
  0x75   : > { %s7985_s1 = sld [smem:[#allocation61_spill]] }
  0x7b   : > { %s5598_s17 = scalar_lea.hbm %s7985_s1, 16 }
  0x7c   : > { %p5599_p8 = scmp.ne.s32.totalorder %s7985_s1, %s5598_s17  ;;  %p5605_p4 = scmp.lt.u32.totalorder %s5598_s17, %s7985_s1 }
  0x7e   : > { %p5601_p10 = pnand %p5599_p8, %p6445_p9 }
  0x80   : > { %p5602_p1 = pneg %p5601_p10 }
  0x82   : > { %p5607_p5 = pnand %p5605_p4, %p5602_p1 }
  0x84   : > { %5610 = shalt.err (!%p5607_p5)
}
  0x85   : > { %s5611_s19 = scalar_lea.vmem %s735_s20, 16  ;;  %s5618_s5 = scalar_lea.vmem %s735_s20, 32 }
  0x86   : > { %p5612_p11 = scmp.ne.s32.totalorder %s735_s20, %s5611_s19  ;;  %p5619_p0 = scmp.lt.s32.totalorder %s735_s20, %s735_s20 }
  0x87   : > { %p5620_p2 = scmp.lt.s32.totalorder %s5618_s5, %s5611_s19 }
  0x88   : > { %p5614_p12 = pnand %p5612_p11, %p6445_p9 }
  0x89   : > { %p5621_p3 = por %p5620_p2, %p5619_p0 }
  0x8a   : > { %p5615_p13 = pneg %p5614_p12 }
  0x8c   : > { %p5622_p6 = pnand %p5621_p3, %p5615_p13 }
  0x8e   : > { %5625 = shalt.err (!%p5622_p6)
}
  0x8f   : > { %5273 = dma.hbm_to_vmem [thread:$0]  (!%p6429_p7), %s7985_s1, 16, %s735_s20, [#allocation13]  }
  0x90   : > { %p7909_p8 = scmp.eq.s32.totalorder %s6194_s3, 0  ;;  %p262_p10 = scmp.ne.s32.totalorder %s6162_s27, %s6158_s26 }
  0x91   : > { %p7908_p1 = scmp.lt.s32.totalorder %s6194_s3, 4  ;;  %s6511_s9 = sand.u32 1, %s6194_s3  }
  0x92   : > { %s6514_s12 = sand.u32 1, %s6162_s27   ;;  %p264_p4 = por %p262_p10, %p7909_p8 }
  0x93   : > { %s6519_s4 = sshll.u32 %s6186_s7, 4  ;;  %s7986_s24 = sld [smem:[#allocation64_spill]] }
  0x94   : > { %s800_s20 = scalar_lea.vmem [#allocation15], %s6514_s12  ;;  %p6532_p5 = pnand %p7908_p1, %p264_p4 }
  0x95   : > { %s807_s5 = sshll.u32 %s800_s20, 4  ;;  %s5205_s11 = smul.u32 6144, %s6186_s7  ;;  %s6528_s5 = int_to_ptr.vmem [resolvable:$true] %s807_s5 }
  0x96   : > { %s7987_s29 = scalar_select %p6532_p5, 1, 0 }
  0x97   : > { %s7915_s14 = scalar_lea.sflag [#allocation16], %s6511_s9  ;;  %p6543_p12 = pneg %p6532_p5 }
  0x99   : > { %s6525_s19 = scalar_lea.hbm %s7986_s24, %s6519_s4  ;;  %s5631_s21 = scalar_lea.hbm %s7986_s24, 32 }
  0x9a   : > { %s5626_s17 = scalar_lea.hbm %s6525_s19, 16  ;;  %p5632_p2 = scmp.lt.u32.totalorder %s6525_s19, %s7986_s24 }
  0x9b   : > { %p5627_p11 = scmp.ne.s32.totalorder %s6525_s19, %s5626_s17  ;;  %p5633_p3 = scmp.lt.u32.totalorder %s5631_s21, %s5626_s17 }
  0x9c   : > { %s7988_s22 = scalar_select %p6543_p12, 1, 0 }
  0x9d   : > { %p5629_p13 = pnand %p6543_p12, %p5627_p11  ;;  %p5634_p6 = por %p5633_p3, %p5632_p2 }
  0x9e   : > { %p5635_p10 = scmp.lt.u32.totalorder %s5626_s17, %s6525_s19 }
  0x9f   : > { %p5630_p0 = pneg %p5629_p13 }
  0xa0   : > { %p5636_p4 = por %p5635_p10, %p5634_p6 }
  0xa2   : > { %p5637_p1 = pnand %p5636_p4, %p5630_p0 }
  0xa4   : > { %5640 = shalt.err (!%p5637_p1)
}
  0xa5   : > { %s5641_s8 = scalar_lea.vmem %s6528_s5, 16  ;;  %s6201_s1 = smov [#allocation15]  }
  0xa6   : > { %p5642_p11 = scmp.ne.s32.totalorder %s6528_s5, %s5641_s8  ;;  %s5646_s20 = sshll.u32 %s6201_s1, 4  ;;  %s5647_s20 = int_to_ptr.vmem [resolvable:$false] %s5646_s20 }
  0xa7   : > { %s5648_s26 = scalar_lea.vmem %s5647_s20, 32  ;;  %p5649_p7 = scmp.lt.s32.totalorder %s6528_s5, %s5647_s20 }
  0xa8   : > { %p5644_p13 = pnand %p5642_p11, %p6543_p12  ;;  %p5650_p9 = scmp.lt.s32.totalorder %s5648_s26, %s5641_s8 }
  0xaa   : > { %p5645_p8 = pneg %p5644_p13  ;;  %p5651_p2 = por %p5650_p9, %p5649_p7 }
  0xac   : > { %p5652_p3 = pnand %p5651_p2, %p5645_p8 }
  0xae   : > { %5655 = shalt.err (!%p5652_p3)
}
  0xaf   : > { %5283 = dma.hbm_to_vmem [thread:$0]  (!%p6532_p5), %s6525_s19, 16, %s6528_s5, %s7915_s14  }
  0xb0   : > { %s7989_s10 = sld [smem:[#allocation66_spill]]  ;;  %s7990_s8 = smul.u32 384, %s6514_s12 }
  0xb1   : > { %s7919_s26 = scalar_lea.sflag [#allocation19], %s6511_s9 }
  0xb2   : > { %s835_s1 = scalar_lea.vmem [#allocation18], %s7990_s8 }
  0xb3   : > { %s842_s20 = sshll.u32 %s835_s1, 4  ;;  %s6577_s20 = int_to_ptr.vmem [resolvable:$true] %s842_s20 }
  0xb6   : > { %s6573_s17 = scalar_lea.hbm %s7989_s10, %s5205_s11  ;;  %s5661_s11 = scalar_lea.hbm %s7989_s10, 12288 }
  0xb7   : > { %s5656_s24 = scalar_lea.hbm %s6573_s17, 6144  ;;  %p5662_p1 = scmp.lt.u32.totalorder %s6573_s17, %s7989_s10 }
  0xb8   : > { %p5657_p7 = scmp.ne.s32.totalorder %s6573_s17, %s5656_s24  ;;  %p5663_p0 = scmp.lt.u32.totalorder %s5661_s11, %s5656_s24 }
  0xb9   : > { %p5665_p10 = scmp.lt.u32.totalorder %s5656_s24, %s6573_s17 }
  0xba   : > { %p5659_p9 = pnand %p5657_p7, %p6543_p12  ;;  %p5664_p6 = por %p5663_p0, %p5662_p1 }
  0xbc   : > { %p5660_p8 = pneg %p5659_p9  ;;  %p5666_p4 = por %p5665_p10, %p5664_p6 }
  0xbe   : > { %p5667_p11 = pnand %p5666_p4, %p5660_p8 }
  0xc0   : > { %5670 = shalt.err (!%p5667_p11)
}
  0xc1   : > { %s5671_s8 = scalar_lea.vmem %s6577_s20, 6144  ;;  %s6202_s1 = smov [#allocation18]  }
  0xc2   : > { %p5672_p13 = scmp.ne.s32.totalorder %s6577_s20, %s5671_s8  ;;  %s5676_s19 = sshll.u32 %s6202_s1, 4  ;;  %s5677_s19 = int_to_ptr.vmem [resolvable:$false] %s5676_s19 }
  0xc3   : > { %s5678_s5 = scalar_lea.vmem %s5677_s19, 12288  ;;  %p5679_p7 = scmp.lt.s32.totalorder %s6577_s20, %s5677_s19 }
  0xc4   : > { %p5674_p2 = pnand %p5672_p13, %p6543_p12  ;;  %p5680_p9 = scmp.lt.s32.totalorder %s5678_s5, %s5671_s8 }
  0xc6   : > { %p5675_p3 = pneg %p5674_p2  ;;  %p5681_p1 = por %p5680_p9, %p5679_p7 }
  0xc8   : > { %p5682_p0 = pnand %p5681_p1, %p5675_p3 }
  0xca   : > { %5685 = shalt.err (!%p5682_p0)
}
  0xcb   : > { %s6203_s24 = smov 384   ;;  %s6204_s11 = smov 24  }
  0xcc   : > { %5289 = dma.hbm_to_vmem [thread:$0]  (!%p6532_p5), %s6573_s17, 6144, %s6577_s20, %s7919_s26, %s6203_s24, %s6203_s24, %s6204_s11  }
  0xcd   : > { %s7991_s13 = sld [smem:[#allocation69_spill]]  ;;  %s882_s1 = scalar_lea.vmem [#allocation21], %s6514_s12 }
  0xce   : > { %s889_s19 = sshll.u32 %s882_s1, 4  ;;  %s7918_s5 = scalar_lea.sflag [#allocation22], %s6511_s9  ;;  %s890_s19 = int_to_ptr.vmem [resolvable:$true] %s889_s19 }
  0xd3   : > { %s6607_s8 = scalar_lea.hbm %s7991_s13, %s6519_s4  ;;  %s5691_s20 = scalar_lea.hbm %s7991_s13, 32 }
  0xd4   : > { %s5686_s14 = scalar_lea.hbm %s6607_s8, 16  ;;  %p5692_p4 = scmp.lt.u32.totalorder %s6607_s8, %s7991_s13 }
  0xd5   : > { %p5687_p8 = scmp.ne.s32.totalorder %s6607_s8, %s5686_s14  ;;  %p5693_p11 = scmp.lt.u32.totalorder %s5691_s20, %s5686_s14 }
  0xd6   : > { %p5695_p2 = scmp.lt.u32.totalorder %s5686_s14, %s6607_s8 }
  0xd7   : > { %p5689_p6 = pnand %p5687_p8, %p6543_p12  ;;  %p5694_p13 = por %p5693_p11, %p5692_p4 }
  0xd9   : > { %p5690_p10 = pneg %p5689_p6  ;;  %p5696_p3 = por %p5695_p2, %p5694_p13 }
  0xdb   : > { %p5697_p7 = pnand %p5696_p3, %p5690_p10 }
  0xdd   : > { %5700 = shalt.err (!%p5697_p7)
}
  0xde   : > { %s5701_s27 = scalar_lea.vmem %s890_s19, 16  ;;  %s6205_s21 = smov [#allocation21]  }
  0xdf   : > { %p5702_p9 = scmp.ne.s32.totalorder %s890_s19, %s5701_s27  ;;  %s5706_s1 = sshll.u32 %s6205_s21, 4  ;;  %s5707_s1 = int_to_ptr.vmem [resolvable:$false] %s5706_s1 }
  0xe0   : > { %s5708_s10 = scalar_lea.vmem %s5707_s1, 32  ;;  %p5709_p8 = scmp.lt.s32.totalorder %s890_s19, %s5707_s1 }
  0xe1   : > { %p5704_p1 = pnand %p5702_p9, %p6543_p12  ;;  %p5710_p6 = scmp.lt.s32.totalorder %s5708_s10, %s5701_s27 }
  0xe3   : > { %p5705_p0 = pneg %p5704_p1  ;;  %p5711_p5 = por %p5710_p6, %p5709_p8 }
  0xe5   : > { %p5712_p4 = pnand %p5711_p5, %p5705_p0 }
  0xe7   : > { %5715 = shalt.err (!%p5712_p4)
}
  0xe8   : > { %p7992_p11 = scmp.ne.s32.totalorder %s7987_s29, 0  ;;  %s7993_s15 = sld [smem:[#allocation71_spill]] }
  0xe9   : > { %s916_s24 = scalar_lea.vmem [#allocation24], %s6514_s12  ;;  %s4050_s27 = sshll.u32 %s6514_s12, 8 }
  0xea   : > { %5295 = dma.hbm_to_vmem [thread:$0]  (!%p7992_p11), %s6607_s8, 16, %s890_s19, %s7918_s5  }
  0xeb   : > { %s923_s11 = sshll.u32 %s916_s24, 4  ;;  %s7920_s21 = scalar_lea.sflag [#allocation25], %s6511_s9  ;;  %s924_s11 = int_to_ptr.vmem [resolvable:$true] %s923_s11 }
  0xee   : > { %s6634_s20 = scalar_lea.hbm %s7993_s15, %s6519_s4  ;;  %s5721_s10 = scalar_lea.hbm %s7993_s15, 32 }
  0xef   : > { %s5716_s1 = scalar_lea.hbm %s6634_s20, 16  ;;  %p5722_p2 = scmp.lt.u32.totalorder %s6634_s20, %s7993_s15 }
  0xf0   : > { %p5717_p5 = scmp.ne.s32.totalorder %s6634_s20, %s5716_s1  ;;  %p5723_p3 = scmp.lt.u32.totalorder %s5721_s10, %s5716_s1 }
  0xf1   : > { %p5725_p9 = scmp.lt.u32.totalorder %s5716_s1, %s6634_s20 }
  0xf2   : > { %p5719_p10 = pnand %p5717_p5, %p6543_p12  ;;  %p5724_p7 = por %p5723_p3, %p5722_p2 }
  0xf4   : > { %p5720_p13 = pneg %p5719_p10  ;;  %p5726_p1 = por %p5725_p9, %p5724_p7 }
  0xf6   : > { %p5727_p0 = pnand %p5726_p1, %p5720_p13 }
  0xf8   : > { %5730 = shalt.err (!%p5727_p0)
}
  0xf9   : > { %s5731_s24 = scalar_lea.vmem %s924_s11, 16  ;;  %s6206_s5 = smov [#allocation24]  }
  0xfa   : > { %p5732_p8 = scmp.ne.s32.totalorder %s924_s11, %s5731_s24  ;;  %s5736_s26 = sshll.u32 %s6206_s5, 4  ;;  %s5737_s26 = int_to_ptr.vmem [resolvable:$false] %s5736_s26 }
  0xfb   : > { %s5738_s8 = scalar_lea.vmem %s5737_s26, 32  ;;  %p5739_p5 = scmp.lt.s32.totalorder %s924_s11, %s5737_s26 }
  0xfc   : > { %p5734_p6 = pnand %p5732_p8, %p6543_p12  ;;  %p5740_p10 = scmp.lt.s32.totalorder %s5738_s8, %s5731_s24 }
  0xfe   : > { %p5735_p4 = pneg %p5734_p6  ;;  %p5741_p11 = por %p5740_p10, %p5739_p5 }
 0x100   : > { %p5742_p2 = pnand %p5741_p11, %p5735_p4 }
 0x102   : > { %5745 = shalt.err (!%p5742_p2)
}
 0x103   : > { %p7994_p3 = scmp.ne.s32.totalorder %s7987_s29, 0  ;;  %s4193_s1 = sshll.u32 %s6186_s7, 12 }
 0x104   : > { %s934_s5 = scalar_lea.vmem [#allocation26], %s4050_s27  ;;  %s7995_s16 = sld [smem:[#allocation72_spill]] }
 0x105   : > { %5301 = dma.hbm_to_vmem [thread:$0]  (!%p7994_p3), %s6634_s20, 16, %s924_s11, %s7920_s21  }
 0x106   : > { %s941_s19 = sshll.u32 %s934_s5, 4  ;;  %s7998_s18 = sld [smem:[#allocation74_spill]]  ;;  %s6666_s19 = int_to_ptr.vmem [resolvable:$true] %s941_s19 }
 0x107   : > { %7997 = sst [smem:[#allocation51_spill]] %s6666_s19  ;;  %s962_s20 = scalar_lea.vmem [#allocation27], %s4050_s27 }
 0x108   : > { %s969_s11 = sshll.u32 %s962_s20, 4  ;;  %s7927_s5 = scalar_lea.sflag [#allocation28], %s6511_s9  ;;  %s6675_s11 = int_to_ptr.vmem [resolvable:$true] %s969_s11 }
 0x10a   : > { %s6664_s14 = scalar_lea.hbm %s7995_s16, %s4193_s1 }
 0x10b   : > { %7996 = sst [smem:[#allocation50_spill]] %s6664_s14 }
 0x10c   : > { %s6671_s8 = scalar_lea.hbm %s7998_s18, %s4193_s1  ;;  %s5751_s1 = scalar_lea.hbm %s7998_s18, 8192 }
 0x10d   : > { %s5746_s26 = scalar_lea.hbm %s6671_s8, 4096  ;;  %p5752_p9 = scmp.lt.u32.totalorder %s6671_s8, %s7998_s18 }
 0x10e   : > { %p5747_p11 = scmp.ne.s32.totalorder %s6671_s8, %s5746_s26  ;;  %p5753_p1 = scmp.lt.u32.totalorder %s5751_s1, %s5746_s26 }
 0x10f   : > { %p5755_p8 = scmp.lt.u32.totalorder %s5746_s26, %s6671_s8 }
 0x110   : > { %p5749_p13 = pnand %p5747_p11, %p6543_p12  ;;  %p5754_p0 = por %p5753_p1, %p5752_p9 }
 0x112   : > { %p5750_p7 = pneg %p5749_p13  ;;  %p5756_p6 = por %p5755_p8, %p5754_p0 }
 0x114   : > { %p5757_p4 = pnand %p5756_p6, %p5750_p7 }
 0x116   : > { %5760 = shalt.err (!%p5757_p4)
}
 0x117   : > { %s5761_s27 = scalar_lea.vmem %s6675_s11, 4096  ;;  %s6207_s21 = smov [#allocation27]  }
 0x118   : > { %p5762_p5 = scmp.ne.s32.totalorder %s6675_s11, %s5761_s27  ;;  %s5766_s20 = sshll.u32 %s6207_s21, 4  ;;  %s5767_s20 = int_to_ptr.vmem [resolvable:$false] %s5766_s20 }
 0x119   : > { %s5768_s10 = scalar_lea.vmem %s5767_s20, 8192  ;;  %p5769_p11 = scmp.lt.s32.totalorder %s6675_s11, %s5767_s20 }
 0x11a   : > { %p5764_p10 = pnand %p5762_p5, %p6543_p12  ;;  %p5770_p13 = scmp.lt.s32.totalorder %s5768_s10, %s5761_s27 }
 0x11c   : > { %p5765_p2 = pneg %p5764_p10  ;;  %p5771_p9 = por %p5770_p13, %p5769_p11 }
 0x11e   : > { %p5772_p1 = pnand %p5771_p9, %p5765_p2 }
 0x120   : > { %5775 = shalt.err (!%p5772_p1)
}
 0x121   : > { %s7999_s26 = smov 8   ;;  %s8000_s1 = smov 128  }
 0x122   : > { %5307 = dma.hbm_to_vmem [thread:$0]  (!%p7994_p3), %s6671_s8, 4096, %s6675_s11, %s7927_s5, %s8000_s1, %s8000_s1, %s7999_s26  }
 0x123   : > { %s6208_s17 = smov [#allocation8]   ;;  %s6209_s21 = smov [#allocation11]  }
 0x124   : > { %s699_s24 = sshll.u32 %s6208_s17, 4  ;;  %s723_s20 = sshll.u32 %s6209_s21, 4  ;;  %s700_s24 = int_to_ptr.vmem [resolvable:$true] %s699_s24  ;;  %s724_s20 = int_to_ptr.vmem [resolvable:$true] %s723_s20 }
 0x125   : > { %s8001_s13 = sld [smem:[#allocation58_spill]]  ;;  %p8002_p0 = scmp.ne.s32.totalorder %s7983_s0, 0 }
 0x12b   : > { %s5776_s15 = scalar_lea.hbm %s8001_s13, 16 }
 0x12c   : > { %p5777_p7 = scmp.ne.s32.totalorder %s8001_s13, %s5776_s15  ;;  %p5783_p4 = scmp.lt.u32.totalorder %s5776_s15, %s8001_s13 }
 0x12e   : > { %p5779_p8 = pnand %p5777_p7, %p8002_p0 }
 0x130   : > { %p5780_p6 = pneg %p5779_p8 }
 0x132   : > { %p5785_p5 = pnand %p5783_p4, %p5780_p6 }
 0x134   : > { %5788 = shalt.err (!%p5785_p5)
}
 0x135   : > { %s5789_s8 = scalar_lea.vmem %s700_s24, 16  ;;  %s5796_s11 = scalar_lea.vmem %s700_s24, 32 }
 0x136   : > { %p5790_p10 = scmp.ne.s32.totalorder %s700_s24, %s5789_s8  ;;  %p5797_p13 = scmp.lt.s32.totalorder %s700_s24, %s700_s24 }
 0x137   : > { %p5798_p9 = scmp.lt.s32.totalorder %s5796_s11, %s5789_s8 }
 0x138   : > { %p5792_p2 = pnand %p5790_p10, %p8002_p0 }
 0x139   : > { %p5799_p1 = por %p5798_p9, %p5797_p13 }
 0x13a   : > { %p5793_p11 = pneg %p5792_p2 }
 0x13c   : > { %p5800_p3 = pnand %p5799_p1, %p5793_p11 }
 0x13e   : > { %5803 = shalt.err (!%p5800_p3)
}
 0x13f   : > { %p8003_p7 = scmp.ne.s32.totalorder %s7981_s23, 0  ;;  %s8004_s14 = sld [smem:[#allocation60_spill]] }
 0x141   : > { %5264 = dma.hbm_to_vmem [thread:$0]  (!%p8003_p7), %s8001_s13, 16, %s700_s24, [#allocation7]  }
 0x145   : > { %s5804_s17 = scalar_lea.hbm %s8004_s14, 16 }
 0x146   : > { %p5805_p8 = scmp.ne.s32.totalorder %s8004_s14, %s5804_s17  ;;  %p5811_p3 = scmp.lt.u32.totalorder %s5804_s17, %s8004_s14 }
 0x148   : > { %p5807_p6 = pnand %p5805_p8, %p8002_p0 }
 0x14a   : > { %p5808_p4 = pneg %p5807_p6 }
 0x14c   : > { %p5813_p5 = pnand %p5811_p3, %p5808_p4 }
 0x14e   : > { %5816 = shalt.err (!%p5813_p5)
}
 0x14f   : > { %s5817_s11 = scalar_lea.vmem %s724_s20, 16  ;;  %s5824_s24 = scalar_lea.vmem %s724_s20, 32 }
 0x150   : > { %p5818_p10 = scmp.ne.s32.totalorder %s724_s20, %s5817_s11  ;;  %p5825_p13 = scmp.lt.s32.totalorder %s724_s20, %s724_s20 }
 0x151   : > { %p5826_p9 = scmp.lt.s32.totalorder %s5824_s24, %s5817_s11 }
 0x152   : > { %p5820_p2 = pnand %p5818_p10, %p8002_p0 }
 0x153   : > { %p5827_p1 = por %p5826_p9, %p5825_p13 }
 0x154   : > { %p5821_p11 = pneg %p5820_p2 }
 0x156   : > { %p5828_p12 = pnand %p5827_p1, %p5821_p11 }
 0x158   : > { %5831 = shalt.err (!%p5828_p12)
}
 0x159   : > { %5270 = dma.hbm_to_vmem [thread:$0]  (!%p8003_p7), %s8004_s14, 16, %s724_s20, [#allocation10]  }
 0x15a   : > { %s6210_s15 = smov [#allocation14]   ;;  %s8005_s27 = sld [smem:[#allocation62_spill]] }
 0x15b   : > { %s745_s16 = sshll.u32 %s6210_s15, 4  ;;  %s746_s16 = int_to_ptr.vmem [resolvable:$true] %s745_s16 }
 0x160   : > { %s8006_s10 = smov %s8005_s27  ;;  %s5832_s8 = scalar_lea.hbm %s8005_s27, 16 }
 0x161   : > { %p5833_p8 = scmp.ne.s32.totalorder %s8006_s10, %s5832_s8  ;;  %p5839_p4 = scmp.lt.u32.totalorder %s5832_s8, %s8006_s10 }
 0x163   : > { %p5835_p12 = pnand %p5833_p8, %p8002_p0 }
 0x165   : > { %p5836_p6 = pneg %p5835_p12 }
 0x167   : > { %p5841_p3 = pnand %p5839_p4, %p5836_p6 }
 0x169   : > { %5844 = shalt.err (!%p5841_p3)
}
 0x16a   : > { %s5845_s20 = scalar_lea.vmem %s746_s16, 16  ;;  %s5852_s18 = scalar_lea.vmem %s746_s16, 32 }
 0x16b   : > { %p5846_p5 = scmp.ne.s32.totalorder %s746_s16, %s5845_s20  ;;  %p5853_p11 = scmp.lt.s32.totalorder %s746_s16, %s746_s16 }
 0x16c   : > { %p5854_p13 = scmp.lt.s32.totalorder %s5852_s18, %s5845_s20 }
 0x16d   : > { %p5848_p10 = pnand %p5846_p5, %p8002_p0 }
 0x16e   : > { %p5855_p9 = por %p5854_p13, %p5853_p11 }
 0x16f   : > { %p5849_p2 = pneg %p5848_p10 }
 0x171   : > { %p5856_p1 = pnand %p5855_p9, %p5849_p2 }
 0x173   : > { %5859 = shalt.err (!%p5856_p1)
}
 0x174   : > { %5276 = dma.hbm_to_vmem [thread:$0]  (!%p8003_p7), %s8006_s10, 16, %s746_s16, [#allocation13]  }
 0x175   : > { %s8007_s23 = sld [smem:[#allocation42_spill]]  ;;  %s4031_s0 = sadd.s32 4294967294, %s6194_s3  }
 0x176   : > { %s67_s19 = sadd.s32 1, %s6186_s7  ;;  %s70_s15 = sadd.s32 1, %s6190_s30 }
 0x177   : > { %p68_p0 = scmp.ge.s32.totalorder %s67_s19, 2  ;;  %s77_s17 = sadd.s32 1, %s6174_s2 }
 0x178   : > { %p84_p8 = scmp.ne.s32.totalorder %s6174_s2, %s6170_s6  ;;  %p8009_p12 = scmp.eq.s32.totalorder %s6194_s3, 0 }
 0x179   : > { %s8095_s19 = smov (%p68_p0, %s67_s19), 0  ;;  %s8097_s15 = smov (!%p68_p0, %s70_s15), %s6190_s30 }
 0x17a   : > { %8008 = sst [smem:[#allocation52_spill]] %s8095_s19  ;;  %p6772_p7 = por %p8009_p12, %p84_p8 }
 0x17b   : > { %p90_p6 = scmp.ne.s32.totalorder %s6170_s6, %s6166_s28  ;;  %p72_p4 = scmp.ge.s32.totalorder %s8097_s15, 2 }
 0x17c   : > { %s252_s21 = ssub.s32 %s6186_s7, %s8095_s19  ;;  %p8011_p3 = scmp.eq.s32.totalorder %s6409_s25, 0 }
 0x17d   : > { %p253_p10 = scmp.eq.s32.totalorder %s252_s21, 0  ;;  %s8099_s15 = smov (%p72_p4, %s8097_s15), 0 }
 0x17e   : > { %p6785_p5 = por %p8011_p3, %p90_p6  ;;  %8013 = sst [smem:[#allocation53_spill]] %s8099_s15 }
 0x17f   : > { %s255_s8 = sadd.s32 1, %s8007_s23  ;;  %p662_p2 = scmp.eq.s32.totalorder %s6409_s25, 3 }
 0x180   : > { %s8012_s27 = scalar_select %p6785_p5, 1, 0 }
 0x181   : > { %s74_s11 = ssub.s32 %s6190_s30, %s8099_s15  ;;  %p668_p11 = scmp.eq.s32.totalorder %s4031_s0, 3 }
 0x182   : > { %p75_p13 = scmp.eq.s32.totalorder %s74_s11, 0  ;;  %p6798_p9 = por %p662_p2, %p84_p8 }
 0x183   : > { %s8101_s23 = smov (!%p253_p10, %s8007_s23), %s255_s8  ;;  %p6811_p1 = por %p668_p11, %p90_p6 }
 0x184   : > { %s8014_s24 = scalar_select %p6798_p9, 1, 0 }
 0x185   : > { %8015 = sst [smem:[#allocation54_spill]] %s8101_s23  ;;  %s768_s13 = sand.u32 1, %s6174_s2  }
 0x186   : > { %s6806_s20 = scalar_select %p75_p13, %s6174_s2, %s77_s17  }
 0x187   : > { %s8017_s18 = scalar_select %p6811_p1, 1, 0 }
 0x188   : > { %8016 = sst [smem:[#allocation55_spill]] %s6806_s20  ;;  %s4040_s5 = sshll.u32 %s768_s13, 4 }
 0x189   : > { %s4192_s21 = sshll.u32 %s6190_s30, 8  ;;  %s8018_s11 = sld [smem:[#allocation56_spill]] }
 0x18a   : > { %s772_s8 = scalar_lea.vmem [#allocation3], %s4040_s5  ;;  %p8019_p0 = scmp.lt.s32.totalorder %s6194_s3, 4 }
 0x18b   : > { %s779_s15 = sshll.u32 %s772_s8, 4  ;;  %s8021_s20 = sld [smem:[#allocation65_spill]]  ;;  %s6822_s15 = int_to_ptr.vmem [resolvable:$true] %s779_s15 }
 0x18c   : > { %p6828_p8 = pnand %p8019_p0, %p6772_p7  ;;  %s6841_s5 = scalar_lea.sflag [#allocation4], %s768_s13 }
 0x18e   : > { %p5862_p6 = pneg %p6828_p8 }
 0x18f   : > { %s6820_s14 = scalar_lea.hbm %s8018_s11, %s4192_s21  ;;  %s817_s21 = scalar_lea.vmem [#allocation17], %s6514_s12 }
 0x190   : > { %s6839_s0 = sshll.u32 %s817_s21, 4  ;;  %s5860_s8 = scalar_lea.hbm %s6820_s14, 256  ;;  %s825_s0 = int_to_ptr.vmem [resolvable:$true] %s6839_s0 }
 0x191   : > { %s6836_s10 = scalar_lea.hbm %s8021_s20, %s6519_s4  ;;  %p5861_p12 = scmp.ne.s32.totalorder %s6820_s14, %s5860_s8 }
 0x192   : > { %s5865_s30 = scalar_lea.hbm %s8018_s11, 512  ;;  %p5866_p3 = scmp.lt.u32.totalorder %s6820_s14, %s8018_s11 }
 0x193   : > { %p5863_p7 = pnand %p5862_p6, %p5861_p12  ;;  %p5867_p10 = scmp.lt.u32.totalorder %s5865_s30, %s5860_s8 }
 0x194   : > { %p5869_p11 = scmp.lt.u32.totalorder %s5860_s8, %s6820_s14 }
 0x195   : > { %p5864_p4 = pneg %p5863_p7  ;;  %p5868_p2 = por %p5867_p10, %p5866_p3 }
 0x197   : > { %p5870_p13 = por %p5869_p11, %p5868_p2 }
 0x199   : > { %p5871_p0 = pnand %p5870_p13, %p5864_p4 }
 0x19b   : > { %5874 = shalt.err (!%p5871_p0)
}
 0x19c   : > { %s5875_s13 = scalar_lea.vmem %s6822_s15, 256  ;;  %s6211_s2 = smov [#allocation3]  }
 0x19d   : > { %p5876_p12 = scmp.ne.s32.totalorder %s6822_s15, %s5875_s13  ;;  %s5880_s21 = sshll.u32 %s6211_s2, 4  ;;  %s5881_s21 = int_to_ptr.vmem [resolvable:$false] %s5880_s21 }
 0x19e   : > { %s5882_s23 = scalar_lea.vmem %s5881_s21, 512  ;;  %p5883_p9 = scmp.lt.s32.totalorder %s6822_s15, %s5881_s21 }
 0x19f   : > { %p5878_p7 = pnand %p5876_p12, %p5862_p6  ;;  %p5884_p3 = scmp.lt.s32.totalorder %s5882_s23, %s5875_s13 }
 0x1a1   : > { %p5879_p1 = pneg %p5878_p7  ;;  %p5885_p10 = por %p5884_p3, %p5883_p9 }
 0x1a3   : > { %p5886_p2 = pnand %p5885_p10, %p5879_p1 }
 0x1a5   : > { %5889 = shalt.err (!%p5886_p2)
}
 0x1a6   : > { %5280 = dma.hbm_to_vmem [thread:$0]  (!%p6828_p8), %s6820_s14, 256, %s6822_s15, %s6841_s5, %s8000_s1, %s8000_s1, %s7999_s26  }
 0x1a7   : > { %s5206_s8 = smul.u32 3, %s6514_s12  ;;  %s5890_s16 = scalar_lea.hbm %s6836_s10, 16 }
 0x1a8   : > { %p5891_p9 = scmp.ne.s32.totalorder %s6836_s10, %s5890_s16  ;;  %p8022_p1 = scmp.ne.s32.totalorder %s7988_s22, 0 }
 0x1a9   : > { %s5895_s19 = scalar_lea.hbm %s8021_s20, 32  ;;  %p5896_p11 = scmp.lt.u32.totalorder %s6836_s10, %s8021_s20 }
 0x1aa   : > { %p5893_p6 = pnand %p5891_p9, %p8022_p1  ;;  %p5897_p13 = scmp.lt.u32.totalorder %s5895_s19, %s5890_s16 }
 0x1ab   : > { %p5899_p12 = scmp.lt.u32.totalorder %s5890_s16, %s6836_s10 }
 0x1ac   : > { %p5894_p4 = pneg %p5893_p6  ;;  %p5898_p0 = por %p5897_p13, %p5896_p11 }
 0x1ae   : > { %p5900_p7 = por %p5899_p12, %p5898_p0 }
 0x1b0   : > { %p5901_p8 = pnand %p5900_p7, %p5894_p4 }
 0x1b2   : > { %5904 = shalt.err (!%p5901_p8)
}
 0x1b3   : > { %s5905_s26 = scalar_lea.vmem %s825_s0, 16  ;;  %s6212_s1 = smov [#allocation17]  }
 0x1b4   : > { %p5906_p3 = scmp.ne.s32.totalorder %s825_s0, %s5905_s26  ;;  %s5910_s14 = sshll.u32 %s6212_s1, 4  ;;  %s5911_s14 = int_to_ptr.vmem [resolvable:$false] %s5910_s14 }
 0x1b5   : > { %s5912_s15 = scalar_lea.vmem %s5911_s14, 32  ;;  %p5913_p9 = scmp.lt.s32.totalorder %s825_s0, %s5911_s14 }
 0x1b6   : > { %p5908_p10 = pnand %p5906_p3, %p8022_p1  ;;  %p5914_p6 = scmp.lt.s32.totalorder %s5912_s15, %s5905_s26 }
 0x1b8   : > { %p5909_p2 = pneg %p5908_p10  ;;  %p5915_p5 = por %p5914_p6, %p5913_p9 }
 0x1ba   : > { %p5916_p11 = pnand %p5915_p5, %p5909_p2 }
 0x1bc   : > { %5919 = shalt.err (!%p5916_p11)
}
 0x1bd   : > { %p8023_p13 = scmp.ne.s32.totalorder %s7987_s29, 0  ;;  %s8024_s5 = scalar_lea.sflag [#allocation16], %s6511_s9 }
 0x1be   : > { %s5207_s21 = smul.u32 48, %s6186_s7  ;;  %s856_s23 = scalar_lea.vmem [#allocation20], %s5206_s8 }
 0x1bf   : > { %5286 = dma.hbm_to_vmem [thread:$0]  (!%p8023_p13), %s6836_s10, 16, %s825_s0, %s8024_s5  }
 0x1c0   : > { %s864_s16 = sshll.u32 %s856_s23, 4  ;;  %s8025_s19 = sld [smem:[#allocation67_spill]]  ;;  %s865_s16 = int_to_ptr.vmem [resolvable:$true] %s864_s16 }
 0x1c6   : > { %s862_s13 = scalar_lea.hbm %s8025_s19, %s5207_s21  ;;  %s5925_s14 = scalar_lea.hbm %s8025_s19, 96 }
 0x1c7   : > { %s5920_s2 = scalar_lea.hbm %s862_s13, 48  ;;  %p5926_p12 = scmp.lt.u32.totalorder %s862_s13, %s8025_s19 }
 0x1c8   : > { %p5921_p4 = scmp.ne.s32.totalorder %s862_s13, %s5920_s2  ;;  %p5927_p7 = scmp.lt.u32.totalorder %s5925_s14, %s5920_s2 }
 0x1c9   : > { %p5929_p3 = scmp.lt.u32.totalorder %s5920_s2, %s862_s13 }
 0x1ca   : > { %p5923_p5 = pnand %p5921_p4, %p8022_p1  ;;  %p5928_p8 = por %p5927_p7, %p5926_p12 }
 0x1cc   : > { %p5924_p0 = pneg %p5923_p5  ;;  %p5930_p10 = por %p5929_p3, %p5928_p8 }
 0x1ce   : > { %p5931_p2 = pnand %p5930_p10, %p5924_p0 }
 0x1d0   : > { %5934 = shalt.err (!%p5931_p2)
}
 0x1d1   : > { %s5935_s10 = scalar_lea.vmem %s865_s16, 48  ;;  %s6213_s0 = smov [#allocation20]  }
 0x1d2   : > { %p5936_p9 = scmp.ne.s32.totalorder %s865_s16, %s5935_s10  ;;  %s5940_s8 = sshll.u32 %s6213_s0, 4  ;;  %s5941_s8 = int_to_ptr.vmem [resolvable:$false] %s5940_s8 }
 0x1d3   : > { %s5942_s5 = scalar_lea.vmem %s5941_s8, 96  ;;  %p5943_p4 = scmp.lt.s32.totalorder %s865_s16, %s5941_s8 }
 0x1d4   : > { %p5938_p6 = pnand %p5936_p9, %p8022_p1  ;;  %p5944_p5 = scmp.lt.s32.totalorder %s5942_s5, %s5935_s10 }
 0x1d6   : > { %p5939_p11 = pneg %p5938_p6  ;;  %p5945_p13 = por %p5944_p5, %p5943_p4 }
 0x1d8   : > { %p5946_p7 = pnand %p5945_p13, %p5939_p11 }
 0x1da   : > { %5949 = shalt.err (!%p5946_p7)
}
 0x1db   : > { %p8026_p12 = scmp.ne.s32.totalorder %s7987_s29, 0  ;;  %s8027_s11 = scalar_lea.sflag [#allocation19], %s6511_s9 }
 0x1dc   : > { %s8028_s17 = sld [smem:[#allocation70_spill]]  ;;  %s899_s2 = scalar_lea.vmem [#allocation23], %s6514_s12 }
 0x1dd   : > { %5292 = dma.hbm_to_vmem [thread:$0]  (!%p8026_p12), %s862_s13, 48, %s865_s16, %s8027_s11  }
 0x1de   : > { %s906_s26 = sshll.u32 %s899_s2, 4  ;;  %s907_s26 = int_to_ptr.vmem [resolvable:$true] %s906_s26 }
 0x1e2   : > { %s6915_s30 = scalar_lea.hbm %s8028_s17, %s6519_s4  ;;  %s5955_s16 = scalar_lea.hbm %s8028_s17, 32 }
 0x1e3   : > { %s5950_s1 = scalar_lea.hbm %s6915_s30, 16  ;;  %p5956_p3 = scmp.lt.u32.totalorder %s6915_s30, %s8028_s17 }
 0x1e4   : > { %p5951_p13 = scmp.ne.s32.totalorder %s6915_s30, %s5950_s1  ;;  %p5957_p10 = scmp.lt.u32.totalorder %s5955_s16, %s5950_s1 }
 0x1e5   : > { %p5959_p9 = scmp.lt.u32.totalorder %s5950_s1, %s6915_s30 }
 0x1e6   : > { %p5953_p0 = pnand %p5951_p13, %p8022_p1  ;;  %p5958_p2 = por %p5957_p10, %p5956_p3 }
 0x1e8   : > { %p5954_p8 = pneg %p5953_p0  ;;  %p5960_p6 = por %p5959_p9, %p5958_p2 }
 0x1ea   : > { %p5961_p11 = pnand %p5960_p6, %p5954_p8 }
 0x1ec   : > { %5964 = shalt.err (!%p5961_p11)
}
 0x1ed   : > { %s5965_s0 = scalar_lea.vmem %s907_s26, 16  ;;  %s6214_s8 = smov [#allocation23]  }
 0x1ee   : > { %p5966_p4 = scmp.ne.s32.totalorder %s907_s26, %s5965_s0  ;;  %s5970_s5 = sshll.u32 %s6214_s8, 4  ;;  %s5971_s5 = int_to_ptr.vmem [resolvable:$false] %s5970_s5 }
 0x1ef   : > { %s5972_s11 = scalar_lea.vmem %s5971_s5, 32  ;;  %p5973_p13 = scmp.lt.s32.totalorder %s907_s26, %s5971_s5 }
 0x1f0   : > { %p5968_p5 = pnand %p5966_p4, %p8022_p1  ;;  %p5974_p0 = scmp.lt.s32.totalorder %s5972_s11, %s5965_s0 }
 0x1f2   : > { %p5969_p7 = pneg %p5968_p5  ;;  %p5975_p12 = por %p5974_p0, %p5973_p13 }
 0x1f4   : > { %p5976_p3 = pnand %p5975_p12, %p5969_p7 }
 0x1f6   : > { %5979 = shalt.err (!%p5976_p3)
}
 0x1f7   : > { %p8029_p10 = scmp.ne.s32.totalorder %s7987_s29, 0  ;;  %s8030_s21 = scalar_lea.sflag [#allocation22], %s6511_s9 }
 0x1f8   : > { %s8031_s23 = sld [smem:[#allocation50_spill]]  ;;  %s8032_s15 = sld [smem:[#allocation72_spill]] }
 0x1f9   : > { %5298 = dma.hbm_to_vmem [thread:$0]  (!%p8029_p10), %s6915_s30, 16, %s907_s26, %s8030_s21  }
 0x1fe   : > { %s5980_s2 = scalar_lea.hbm %s8031_s23, 4096  ;;  %s5985_s16 = scalar_lea.hbm %s8032_s15, 8192 }
 0x1ff   : > { %p5981_p8 = scmp.ne.s32.totalorder %s8031_s23, %s5980_s2  ;;  %p5986_p12 = scmp.lt.u32.totalorder %s8031_s23, %s8032_s15 }
 0x200   : > { %p5987_p6 = scmp.lt.u32.totalorder %s5985_s16, %s5980_s2  ;;  %p5989_p4 = scmp.lt.u32.totalorder %s5980_s2, %s8031_s23 }
 0x201   : > { %p5983_p2 = pnand %p5981_p8, %p8022_p1 }
 0x202   : > { %p5988_p11 = por %p5987_p6, %p5986_p12 }
 0x203   : > { %p5984_p9 = pneg %p5983_p2 }
 0x204   : > { %p5990_p5 = por %p5989_p4, %p5988_p11 }
 0x206   : > { %p5991_p7 = pnand %p5990_p5, %p5984_p9 }
 0x208   : > { %5994 = shalt.err (!%p5991_p7)
}
 0x209   : > { %s8033_s30 = sld [smem:[#allocation51_spill]]  ;;  %s6215_s0 = smov [#allocation26]  }
 0x20a   : > { %s6000_s8 = sshll.u32 %s6215_s0, 4  ;;  %s6001_s8 = int_to_ptr.vmem [resolvable:$false] %s6000_s8 }
 0x20b   : > { %s6002_s5 = scalar_lea.vmem %s6001_s8, 8192 }
 0x20f   : > { %s5995_s26 = scalar_lea.vmem %s8033_s30, 4096  ;;  %p6003_p8 = scmp.lt.s32.totalorder %s8033_s30, %s6001_s8 }
 0x210   : > { %p5996_p13 = scmp.ne.s32.totalorder %s8033_s30, %s5995_s26  ;;  %p6004_p2 = scmp.lt.s32.totalorder %s6002_s5, %s5995_s26 }
 0x212   : > { %p5998_p0 = pnand %p5996_p13, %p8022_p1  ;;  %p6005_p12 = por %p6004_p2, %p6003_p8 }
 0x214   : > { %p5999_p3 = pneg %p5998_p0 }
 0x216   : > { %p6006_p6 = pnand %p6005_p12, %p5999_p3 }
 0x218   : > { %6009 = shalt.err (!%p6006_p6)
}
 0x219   : > { %s6216_s11 = smov 256   ;;  %s6217_s21 = smov 16  }
 0x21a   : > { %s8034_s2 = scalar_lea.sflag [#allocation25], %s6511_s9  ;;  %s8035_s15 = sld [smem:[#allocation75_spill]] }
 0x21b   : > { %5304 = dma.hbm_to_vmem [thread:$0]  (!%p8029_p10), %s8031_s23, 4096, %s8033_s30, %s8034_s2, %s6216_s11, %s6216_s11, %s6217_s21  }
 0x21c   : > { %s982_s13 = scalar_lea.vmem [#allocation29], %s6514_s12 }
 0x21d   : > { %s989_s10 = sshll.u32 %s982_s13, 4  ;;  %s990_s10 = int_to_ptr.vmem [resolvable:$true] %s989_s10 }
 0x220   : > { %s6964_s16 = scalar_lea.hbm %s8035_s15, %s6519_s4  ;;  %s6015_s23 = scalar_lea.hbm %s8035_s15, 32 }
 0x221   : > { %s6010_s26 = scalar_lea.hbm %s6964_s16, 16  ;;  %p6016_p5 = scmp.lt.u32.totalorder %s6964_s16, %s8035_s15 }
 0x222   : > { %p6011_p9 = scmp.ne.s32.totalorder %s6964_s16, %s6010_s26  ;;  %p6017_p7 = scmp.lt.u32.totalorder %s6015_s23, %s6010_s26 }
 0x223   : > { %p6019_p0 = scmp.lt.u32.totalorder %s6010_s26, %s6964_s16 }
 0x224   : > { %p6013_p11 = pnand %p6011_p9, %p8022_p1  ;;  %p6018_p13 = por %p6017_p7, %p6016_p5 }
 0x226   : > { %p6014_p4 = pneg %p6013_p11  ;;  %p6020_p3 = por %p6019_p0, %p6018_p13 }
 0x228   : > { %p6021_p8 = pnand %p6020_p3, %p6014_p4 }
 0x22a   : > { %6024 = shalt.err (!%p6021_p8)
}
 0x22b   : > { %s6025_s12 = scalar_lea.vmem %s990_s10, 16  ;;  %s6218_s4 = smov [#allocation29]  }
 0x22c   : > { %p6026_p2 = scmp.ne.s32.totalorder %s990_s10, %s6025_s12  ;;  %s6030_s11 = sshll.u32 %s6218_s4, 4  ;;  %s6031_s11 = int_to_ptr.vmem [resolvable:$false] %s6030_s11 }
 0x22d   : > { %s6032_s21 = scalar_lea.vmem %s6031_s11, 32  ;;  %p6033_p9 = scmp.lt.s32.totalorder %s990_s10, %s6031_s11 }
 0x22e   : > { %p6028_p12 = pnand %p6026_p2, %p8022_p1  ;;  %p6034_p11 = scmp.lt.s32.totalorder %s6032_s21, %s6025_s12 }
 0x230   : > { %p6029_p6 = pneg %p6028_p12  ;;  %p6035_p10 = por %p6034_p11, %p6033_p9 }
 0x232   : > { %p6036_p5 = pnand %p6035_p10, %p6029_p6 }
 0x234   : > { %6039 = shalt.err (!%p6036_p5)
}
 0x235   : > { %p8036_p7 = scmp.ne.s32.totalorder %s7987_s29, 0  ;;  %s8037_s2 = scalar_lea.sflag [#allocation28], %s6511_s9 }
 0x236   : > { %s8038_s1 = sld [smem:[#allocation49_spill]] }
 0x237   : > { %5310 = dma.hbm_to_vmem [thread:$0]  (!%p8036_p7), %s6964_s16, 16, %s990_s10, %s8037_s2  }
 0x23c   : > { %p8039_p4 = scmp.ne.s32.totalorder %s8038_s1, 0 }
 0x23d   : > { %s6989_s22 = sand.u32 (!%p8039_p4), 1, %s6170_s6   ;;  %p8040_p1 = scmp.ne.s32.totalorder (!%p8039_p4), %s8012_s27, 0 }
 0x23e   : > { %998 = sbr.rel (%p8039_p4) target bundleno = 8233 (0x2029), region = 116  ;;  %s7939_s14 = sshll.u32 (!%p8039_p4), %s6989_s22, 4 }
 0x23f   : > { %s1001_s13 = scalar_lea.sflag (!%p8039_p4), [#allocation4], %s6989_s22  ;;  %s6995_s26 = scalar_lea.vmem (!%p8039_p4), [#allocation3], %s7939_s14 }
 0x245   : > { %6113 = dma.done.wait (%p8040_p1), %s1001_s13, 256  }
 0x246   : > { %6115 = vsyncadd (%p8040_p1), %s1001_s13, 4294967040  ;;  %p8041_p10 = scmp.eq.s32.totalorder %s6409_s25, 0 }
 0x248   : > { %6117 = dma.done.wait (%p8041_p10), [#allocation7], 32   ;;  %p8042_p13 = pmov %p8041_p10 }
 0x249   : > { %p8043_p0 = pmov %p8041_p10 }
 0x24a   : > { %6119 = vsyncadd (%p8042_p13), [#allocation7], 4294967264 }
 0x24b   : > { %6121 = dma.done.wait (%p8043_p0), [#allocation10], 2064   ;;  %p8044_p3 = pmov %p8043_p0 }
 0x24c   : > { %p8045_p8 = pmov %p8043_p0 }
 0x24d   : > { %6123 = vsyncadd (%p8044_p3), [#allocation10], 4294965232 }
 0x24e   : > { %6125 = dma.done.wait (%p8045_p8), [#allocation13], 32   ;;  %p8046_p2 = pmov %p8043_p0 }
 0x24f   : > { %s8047_s9 = sld [smem:[#allocation41_spill]]  ;;  %s8048_s29 = sld [smem:[#allocation48_spill]] }
 0x250   : > { %6127 = vsyncadd (%p8046_p2), [#allocation13], 4294967264  ;;  %s1033_s27 = sand.u32 1, %s6409_s25  }
 0x251   : > { %s1034_s10 = scalar_lea.sflag [#allocation16], %s1033_s27 }
 0x255   : > { %s7015_s16 = sand.u32 1, %s8047_s9   ;;  %p8049_p12 = scmp.ne.s32.totalorder %s8048_s29, 0 }
 0x257   : > { %6129 = dma.done.wait (%p8049_p12), %s1034_s10, 32  }
 0x258   : > { %6131 = vsyncadd (%p8049_p12), %s1034_s10, 4294967264  ;;  %s5208_s8 = smul.u32 384, %s7015_s16  ;;  %s1050_s30 = scalar_lea.sflag [#allocation19], %s1033_s27 }
 0x25a   : > { %s7024_s5 = scalar_lea.vmem [#allocation18], %s5208_s8 }
 0x25b   : > { %6133 = dma.done.wait (%p8049_p12), %s1050_s30, 6192  }
 0x25c   : > { %6135 = vsyncadd (%p8049_p12), %s1050_s30, 4294961104  ;;  %s5209_s25 = smul.u32 3, %s7015_s16  ;;  %s1068_s4 = scalar_lea.sflag [#allocation22], %s1033_s27 }
 0x25e   : > { %s7031_s12 = scalar_lea.vmem [#allocation20], %s5209_s25 }
 0x25f   : > { %6137 = dma.done.wait (%p8049_p12), %s1068_s4, 32  }
 0x260   : > { %6139 = vsyncadd (%p8049_p12), %s1068_s4, 4294967264  ;;  %s1084_s2 = scalar_lea.sflag [#allocation25], %s1033_s27 }
 0x261   : > { %6141 = dma.done.wait (%p8049_p12), %s1084_s2, 4112  }
 0x262   : > { %6143 = vsyncadd (%p8049_p12), %s1084_s2, 4294963184  ;;  %s4065_s13 = sshll.u32 %s7015_s16, 8  ;;  %s1101_s10 = scalar_lea.sflag [#allocation28], %s1033_s27 }
 0x263   : > { %s7045_s9 = scalar_lea.vmem [#allocation26], %s4065_s13  ;;  %s7047_s8 = scalar_lea.vmem [#allocation27], %s4065_s13 }
 0x264   : > { %6145 = dma.done.wait (%p8049_p12), %s1101_s10, 4112  }
 0x265   : > { %6147 = vsyncadd (%p8049_p12), %s1101_s10, 4294963184  ;;  %s8050_s30 = sld [smem:[#allocation44_spill]]  ;;  %s8051_s11 = sld [smem:[#allocation63_spill]] }
 0x266   : > { %s8052_s0 = sld [smem:[#allocation68_spill]]  ;;  %s8053_s15 = sld [smem:[#allocation73_spill]] }
 0x267   : > { %s1112_s19 = scalar_lea.vmem [#allocation29], %s7015_s16  ;;  %s8054_s20 = sshll.u32 %s6989_s22, 4 }
 0x268   : > { %s7073_s7 = scalar_lea.vmem [#allocation30], %s8054_s20 }
 0x26b   : > { %p1235_p6 = scmp.lt.s32.totalorder %s8050_s30, 1  ;;  %p4073_p9 = scmp.ne.s32.totalorder %s8050_s30, 0 }
 0x26c   : > { %v1273_v0 = vld [vmem:[#allocation9] sm:$0xff] (!%p4073_p9)  ;;  %v1274_v1 = vld [vmem:[#allocation9 + $0x8] sm:$0xff] (!%p4073_p9)  ;;  %v1275_v2 = vld [vmem:[#allocation9 + $0x10] sm:$0xff] (!%p4073_p9) }
 0x26d   : > { %s1236_s25 = scalar_select %p1235_p6, %s8050_s30, 1 }
 0x26e   : > { %1252 = sbr.rel (%p4073_p9) target bundleno = 1189 (0x4a5), region = 188  ;;  %v4748_v3 = vpack.c.bf16 (!%p4073_p9), %v1274_v1, %v1273_v0  ;;  %v1276_v4 = vld [vmem:[#allocation9 + $0x18] sm:$0xff] (!%p4073_p9)  ;;  %v1277_v6 = vld [vmem:[#allocation9 + $0x20] sm:$0xff] (!%p4073_p9)  ;;  %v1278_v7 = vld [vmem:[#allocation9 + $0x28] sm:$0xff] (!%p4073_p9) }
 0x26f   : > { %s4195_s4 = sshll.u32 %s1236_s25, 7  ;;  %s4072_s2 = sshll.u32 %s1236_s25, 1  ;;  %v4752_v5 = vpack.c.bf16 (!%p4073_p9), %v1276_v4, %v1275_v2  ;;  %v4756_v8 = vpack.c.bf16 (!%p4073_p9), %v1278_v7, %v1277_v6  ;;  %v1279_v9 = vld [vmem:[#allocation9 + $0x30] sm:$0xff] (!%p4073_p9)  ;;  %v1280_v11 = vld [vmem:[#allocation9 + $0x38] sm:$0xff] (!%p4073_p9)  ;;  %v1281_v17 = vld [vmem:[#allocation9 + $0x40] sm:$0xff] (!%p4073_p9) }
 0x270   : > { %s7058_s23 = scalar_lea.vmem %s8051_s11, %s4195_s4  ;;  %s7063_s14 = scalar_lea.vmem %s8052_s0, %s4195_s4  ;;  %4749 = vmatprep.subr.bf16.mxu0 (!%p4073_p9), %v4748_v3  ;;  %v1253_v10 = vld [vmem:[%s6995_s26] sm:$0xff] (!%p4073_p9)  ;;  %v4760_v15 = vpack.c.bf16 (!%p4073_p9), %v1280_v11, %v1279_v9  ;;  %v1254_v28 = vld [vmem:[%s6995_s26 + $0x8] sm:$0xff] (!%p4073_p9) }
 0x271   : > { %s7068_s17 = scalar_lea.vmem %s8053_s15, %s4072_s2  ;;  %4751 = vmatpush3.bf16.msra.mxu0 (!%p4073_p9), %v4748_v3  ;;  %v4074_v12 = vld [vmem:[#allocation6] ss:$0 sm:$0xff] (!%p4073_p9)  ;;  %v4075_v13 = vld [vmem:[#allocation8] ss:$0 sm:$0xff] (!%p4073_p9)  ;;  %v1282_v18 = vld [vmem:[#allocation9 + $0x48] sm:$0xff] (!%p4073_p9) }
 0x272   : > { %4753 = vmatprep.subr.bf16.mxu0 (!%p4073_p9), %v4752_v5  ;;  %v1262_v14 = vadd.f32 (!%p4073_p9), %v4074_v12, %v1253_v10  ;;  %v4764_v19 = vpack.c.bf16 (!%p4073_p9), %v1282_v18, %v1281_v17  ;;  %v1283_v20 = vld [vmem:[#allocation9 + $0x50] sm:$0xff] (!%p4073_p9)  ;;  %v1284_v21 = vld [vmem:[#allocation9 + $0x58] sm:$0xff] (!%p4073_p9)  ;;  %v1285_v23 = vld [vmem:[#allocation9 + $0x60] sm:$0xff] (!%p4073_p9)  ;;  %v1263_v30 = vadd.f32 (!%p4073_p9), %v4074_v12, %v1254_v28 }
 0x273   : > { %v4768_v22 = vpack.c.bf16 (!%p4073_p9), %v1284_v21, %v1283_v20  ;;  %v1286_v24 = vld [vmem:[#allocation9 + $0x68] sm:$0xff] (!%p4073_p9)  ;;  %v1287_v26 = vld [vmem:[#allocation9 + $0x70] sm:$0xff] (!%p4073_p9)  ;;  %v1288_v27 = vld [vmem:[#allocation9 + $0x78] sm:$0xff] (!%p4073_p9) }
 0x274   : > { %v1271_v16 = vmul.f32 (!%p4073_p9), %v4075_v13, %v1262_v14  ;;  %v4772_v25 = vpack.c.bf16 (!%p4073_p9), %v1286_v24, %v1285_v23  ;;  %v4776_v29 = vpack.c.bf16 (!%p4073_p9), %v1288_v27, %v1287_v26  ;;  %v1272_v31 = vmul.f32 (!%p4073_p9), %v4075_v13, %v1263_v30  ;;  %v4076_v32 = vld [vmem:[#allocation11] ss:$0 sm:$0xff] (!%p4073_p9)  ;;  %v4077_v52 = vld [vmem:[#allocation12] ss:$0 sm:$0xff] (!%p4073_p9)  ;;  %v4078_v54 = vld [vmem:[#allocation14] ss:$0 sm:$0xff] (!%p4073_p9) }
 0x275   : > { %4755 = vmatpush3.bf16.msra.mxu0 %v4752_v5 }
 0x276   : > { %4757 = vmatprep.subr.bf16.mxu0 %v4756_v8  ;;  %4444 = vmatprep.mubr.f32.mxu0 %v1271_v16 }
 0x279   : > { %4759 = vmatpush3.bf16.msra.mxu0 %v4756_v8 }
 0x27a   : > { %4761 = vmatprep.subr.bf16.mxu0 %v4760_v15 }
 0x27d   : > { %4763 = vmatpush3.bf16.msra.mxu0 %v4760_v15 }
 0x27e   : > { %4765 = vmatprep.subr.bf16.mxu0 %v4764_v19 }
 0x281   : > { %4767 = vmatpush3.bf16.msra.mxu0 %v4764_v19 }
 0x282   : > { %4769 = vmatprep.subr.bf16.mxu0 %v4768_v22 }
 0x285   : > { %4771 = vmatpush3.bf16.msra.mxu0 %v4768_v22 }
 0x286   : > { %4773 = vmatprep.subr.bf16.mxu0 %v4772_v25 }
 0x289   : > { %4775 = vmatpush3.bf16.msra.mxu0 %v4772_v25 }
 0x28a   : > { %4777 = vmatprep.subr.bf16.mxu0 %v4776_v29 }
 0x28d   : > { %4779 = vmatpush3.bf16.msra.mxu0 %v4776_v29 }
 0x290   : > { %4445 = vmatmul.mubr.f32.vlgmr.msra.gmra.mrb[0].mxu0 %v1272_v31 }
 0x363   : > { %v4446_v33 = vpop.f32.mrb[0].mxu0 }
 0x364   : > { %v1362_v34 = vpop.f32.mrb[1].mxu0  ;;  %v1368_v36 = vadd.f32 %v4446_v33, %v4076_v32 }
 0x365   : > { %v1363_v35 = vadd.f32 %v4076_v32, %v1362_v34 }
 0x367   : > { %1373 = vadd.xlane.f32.xlu0 %v1363_v35 }
 0x36b   : > { %1375 = vadd.xlane.f32.xlu0 %v1368_v36 }
 0x3f4   : > { %v1374_v37 = vpop.xlane.xlu0 %1373 }
 0x3f5   : > { %v1378_v38 = vmul.f32 0.0078125, %v1374_v37 }
 0x3f7   : > { %v1380_v39 = vsub.f32 %v1363_v35, %v1378_v38 }
 0x3f8   : > { %v1376_v40 = vpop.xlane.xlu0 %1375 }
 0x3f9   : > { %v1379_v41 = vmul.f32 0.0078125, %v1376_v40  ;;  %v1382_v42 = vmul.f32 %v1380_v39, %v1380_v39 }
 0x3fb   : > { %v1381_v43 = vsub.f32 %v1368_v36, %v1379_v41  ;;  %1384 = vadd.xlane.f32.xlu1 %v1382_v42 }
 0x3fd   : > { %v1383_v44 = vmul.f32 %v1381_v43, %v1381_v43 }
 0x3ff   : > { %1386 = vadd.xlane.f32.xlu1 %v1383_v44 }
 0x488   : > { %v1385_v45 = vpop.xlane.xlu1 %1384 }
 0x489   : > { %v1388_v46 = vmul.f32 0.0078125, %v1385_v45 }
 0x48b   : > { %v1390_v47 = vadd.f32 1e-05, %v1388_v46 }
 0x48c   : > { %v1387_v48 = vpop.xlane.xlu1 %1386 }
 0x48d   : > { %5439 = vrsqrt.f32 %v1390_v47  ;;  %v1389_v49 = vmul.f32 0.0078125, %v1387_v48 }
 0x48f   : > { %v1391_v50 = vadd.f32 1e-05, %v1389_v49 }
 0x491   : > { %5441 = vrsqrt.f32 %v1391_v50 }
 0x497   : > { %v5440_v51 = vpop.eup %5439 }
 0x498   : > { %v1394_v53 = vmul.f32 %v5440_v51, %v1380_v39 }
 0x49a   : > { %v1402_v55 = vmul.f32 %v4077_v52, %v1394_v53 }
 0x49b   : > { %v5442_v56 = vpop.eup %5441 }
 0x49c   : > { %v1410_v57 = vadd.f32 %v4078_v54, %v1402_v55  ;;  %v1395_v58 = vmul.f32 %v5442_v56, %v1381_v43 }
 0x49e   : > { %v1412_v59 = vmax.f32 %v1410_v57, 0.0  ;;  %v1403_v60 = vmul.f32 %v4077_v52, %v1395_v58 }
 0x4a0   : > { %1414 = vst [vmem:[#allocation2] sm:$0xff] %v1412_v59  ;;  %v1411_v61 = vadd.f32 %v4078_v54, %v1403_v60 }
 0x4a2   : > { %v1413_v62 = vmax.f32 %v1411_v61, 0.0 }
 0x4a4   : > { %1415 = vst [vmem:[#allocation2 + $0x8] sm:$0xff] %v1413_v62 }
 0x4a5 PF: > { %v1460_v1 = vld [vmem:[%s7024_s5 + $0x8] sm:$0xff]  ;;  %v1463_v2 = vld [vmem:[%s7024_s5 + $0x20] sm:$0xff]  ;;  %v1462_v5 = vld [vmem:[%s7024_s5 + $0x18] sm:$0xff]  ;;  %vm1692_vm0 = vcmask 261120   ;;  %s8057_s20 = scalar_lea.vmem [#allocation15], %s7015_s16  ;;  %s8058_s15 = scalar_lea.vmem [#allocation17], %s7015_s16 }
 0x4a6   : > { %v1459_v3 = vld [vmem:[%s7024_s5] sm:$0xff]  ;;  %v4780_v4 = vpack.c.bf16 %v1463_v2, %v1460_v1  ;;  %v1466_v6 = vld [vmem:[%s7024_s5 + $0x38] sm:$0xff]  ;;  %v1469_v7 = vld [vmem:[%s7024_s5 + $0x50] sm:$0xff]  ;;  %s6220_s26 = smov 113   ;;  %s6221_s0 = smov 1   ;;  %vm1988_vm8 = vcmask 130048  }
 0x4a7   : > { %v1416_v63 = vld [vmem:[#allocation2] sm:$0xff]  ;;  %v4782_v8 = vpack.c.bf16 %v1462_v5, %v1459_v3  ;;  %v4784_v9 = vpack.c.bf16 %v1469_v7, %v1466_v6  ;;  %v1461_v10 = vld [vmem:[%s7024_s5 + $0x10] sm:$0xff]  ;;  %v1470_v19 = vld [vmem:[%s7024_s5 + $0x58] sm:$0xff]  ;;  %v6219_v3 = vmov 0.0   ;;  %s6225_s11 = smov 96   ;;  %s6226_s21 = smov 64  }
 0x4a8   : > { %1420 = vadd.xlane.f32.xlu0 %v1416_v63  ;;  %v1464_v11 = vld [vmem:[%s7024_s5 + $0x28] sm:$0xff]  ;;  %v1465_v12 = vld [vmem:[%s7024_s5 + $0x30] sm:$0xff]  ;;  %4781 = vmatprep.subr.bf16.mxu0 %v4780_v4  ;;  %v1475_v16 = vld [vmem:[%s7024_s5 + $0x80] sm:$0xff]  ;;  %s6227_s1 = smov 32   ;;  %vm3095_vm9 = vcmask 523264   ;;  %vm3098_vm10 = vcmask 785408  }
 0x4a9   : > { %v4812_v13 = vpack.c.bf16 %v1464_v11, %v1461_v10  ;;  %v1468_v14 = vld [vmem:[%s7024_s5 + $0x48] sm:$0xff]  ;;  %4783 = vmatpush1.bf16.msra.mxu0 %v4782_v8  ;;  %v1467_v18 = vld [vmem:[%s7024_s5 + $0x40] sm:$0xff]  ;;  %v1474_v23 = vld [vmem:[%s7024_s5 + $0x78] sm:$0xff]  ;;  %1588 = vmatprep.mubr.f32.mxu0 %v6219_v3  ;;  %s8073_s30 = scalar_lea.vmem [#allocation24], %s7015_s16 }
 0x4aa   : > { %v1472_v15 = vld [vmem:[%s7024_s5 + $0x68] sm:$0xff]  ;;  %v4786_v17 = vpack.c.bf16 %v1468_v14, %v1465_v12  ;;  %4785 = vmatprep.subr.bf16.mxu0 %v4784_v9  ;;  %v4816_v21 = vpack.c.bf16 %v1470_v19, %v1467_v18  ;;  %v1471_v22 = vld [vmem:[%s7024_s5 + $0x60] sm:$0xff]  ;;  %v1478_v33 = vld [vmem:[%s7024_s5 + $0x98] sm:$0xff] }
 0x4ab   : > { %v1417_v0 = vld [vmem:[#allocation2 + $0x8] sm:$0xff]  ;;  %4813 = vmatprep.subr.bf16.mxu1 %v4812_v13  ;;  %v4788_v20 = vpack.c.bf16 %v1475_v16, %v1472_v15  ;;  %v4790_v24 = vpack.c.bf16 %v1474_v23, %v1471_v22  ;;  %v1487_v43 = vld [vmem:[%s7024_s5 + $0xe0] sm:$0xff]  ;;  %v1482_v46 = vld [vmem:[%s7024_s5 + $0xb8] sm:$0xff] }
 0x4ac   : > { %1422 = vadd.xlane.f32.xlu0 %v1417_v0  ;;  %4815 = vmatpush3.bf16.msra.mxu1 %v4812_v13  ;;  %v1481_v34 = vld [vmem:[%s7024_s5 + $0xb0] sm:$0xff]  ;;  %v1476_v37 = vld [vmem:[%s7024_s5 + $0x88] sm:$0xff]  ;;  %v1479_v44 = vld [vmem:[%s7024_s5 + $0xa0] sm:$0xff] }
 0x4ad   : > { %4817 = vmatprep.subr.bf16.mxu1 %v4816_v21  ;;  %4787 = vmatpush1.bf16.msra.mxu0 %v4786_v17  ;;  %v1473_v35 = vld [vmem:[%s7024_s5 + $0x70] sm:$0xff]  ;;  %v4792_v36 = vpack.c.bf16 %v1481_v34, %v1478_v33  ;;  %v1480_v39 = vld [vmem:[%s7024_s5 + $0xa8] sm:$0xff]  ;;  %v1483_v47 = vld [vmem:[%s7024_s5 + $0xc0] sm:$0xff]  ;;  %v4824_v49 = vpack.c.bf16 %v1482_v46, %v1479_v44 }
 0x4ae   : > { %4789 = vmatprep.subr.bf16.mxu0 %v4788_v20  ;;  %v1477_v38 = vld [vmem:[%s7024_s5 + $0x90] sm:$0xff]  ;;  %v4820_v40 = vpack.c.bf16 %v1476_v37, %v1473_v35  ;;  %v1484_v42 = vld [vmem:[%s7024_s5 + $0xc8] sm:$0xff]  ;;  %v1486_v48 = vld [vmem:[%s7024_s5 + $0xd8] sm:$0xff] }
 0x4af   : > { %v4794_v41 = vpack.c.bf16 %v1480_v39, %v1477_v38  ;;  %v4796_v45 = vpack.c.bf16 %v1487_v43, %v1484_v42  ;;  %v4798_v50 = vpack.c.bf16 %v1486_v48, %v1483_v47  ;;  %v1490_v51 = vld [vmem:[%s7024_s5 + $0xf8] sm:$0xff]  ;;  %v1493_v52 = vld [vmem:[%s7024_s5 + $0x110] sm:$0xff]  ;;  %v1488_v55 = vld [vmem:[%s7024_s5 + $0xe8] sm:$0xff] }
 0x4b0   : > { %4819 = vmatpush3.bf16.msra.mxu1 %v4816_v21  ;;  %v1485_v53 = vld [vmem:[%s7024_s5 + $0xd0] sm:$0xff]  ;;  %v4800_v54 = vpack.c.bf16 %v1493_v52, %v1490_v51  ;;  %v1492_v57 = vld [vmem:[%s7024_s5 + $0x108] sm:$0xff]  ;;  %v1499_v61 = vld [vmem:[%s7024_s5 + $0x140] sm:$0xff] }
 0x4b1   : > { %4791 = vmatpush1.bf16.msra.mxu0 %v4790_v24  ;;  %4821 = vmatprep.subr.bf16.mxu1 %v4820_v40  ;;  %v1489_v56 = vld [vmem:[%s7024_s5 + $0xf0] sm:$0xff]  ;;  %v4828_v58 = vpack.c.bf16 %v1488_v55, %v1485_v53  ;;  %v1496_v60 = vld [vmem:[%s7024_s5 + $0x128] sm:$0xff]  ;;  %v1491_v62 = vld [vmem:[%s7024_s5 + $0x100] sm:$0xff] }
 0x4b2   : > { %4793 = vmatprep.subr.bf16.mxu0 %v4792_v36  ;;  %v4802_v59 = vpack.c.bf16 %v1492_v57, %v1489_v56  ;;  %v1495_v1 = vld [vmem:[%s7024_s5 + $0x120] sm:$0xff]  ;;  %v1498_v2 = vld [vmem:[%s7024_s5 + $0x138] sm:$0xff]  ;;  %v1505_v7 = vld [vmem:[%s7024_s5 + $0x170] sm:$0xff] }
 0x4b3   : > { %v4806_v5 = vpack.c.bf16 %v1498_v2, %v1495_v1  ;;  %v1502_v6 = vld [vmem:[%s7024_s5 + $0x158] sm:$0xff]  ;;  %v1497_v8 = vld [vmem:[%s7024_s5 + $0x130] sm:$0xff]  ;;  %v1500_v10 = vld [vmem:[%s7024_s5 + $0x148] sm:$0xff] }
 0x4b4   : > { %4823 = vmatpush3.bf16.msra.mxu1 %v4820_v40  ;;  %v4808_v9 = vpack.c.bf16 %v1505_v7, %v1502_v6  ;;  %v1501_v11 = vld [vmem:[%s7024_s5 + $0x150] sm:$0xff]  ;;  %v1504_v12 = vld [vmem:[%s7024_s5 + $0x168] sm:$0xff]  ;;  %v4836_v13 = vpack.c.bf16 %v1500_v10, %v1497_v8  ;;  %v1503_v15 = vld [vmem:[%s7024_s5 + $0x160] sm:$0xff] }
 0x4b5   : > { %4795 = vmatpush1.bf16.msra.mxu0 %v4794_v41  ;;  %4825 = vmatprep.subr.bf16.mxu1 %v4824_v49  ;;  %v4810_v14 = vpack.c.bf16 %v1504_v12, %v1501_v11  ;;  %v1506_v16 = vld [vmem:[%s7024_s5 + $0x178] sm:$0xff]  ;;  %v1676_v18 = vld [vmem:[%s7058_s23] sm:$0xff]  ;;  %v1677_v19 = vld [vmem:[%s7058_s23 + $0x8] sm:$0xff] }
 0x4b6   : > { %4797 = vmatprep.subr.bf16.mxu0 %v4796_v45  ;;  %v4840_v17 = vpack.c.bf16 %v1506_v16, %v1503_v15  ;;  %v7137_v20 = vpack.c.bf16 %v1677_v19, %v1676_v18  ;;  %vm7141_vm1 = vmpackc.low %vm1692_vm0, %vm1692_vm0  ;;  %v4080_v33 = vld [vmem:[%s8058_s15] ss:$0 sm:$0xff]  ;;  %v1678_v34 = vld [vmem:[%s7058_s23 + $0x10] sm:$0xff] }
 0x4b7   : > { %v1679_v35 = vld [vmem:[%s7058_s23 + $0x18] sm:$0xff]  ;;  %v1681_v42 = vld [vmem:[%s7058_s23 + $0x28] sm:$0xff]  ;;  %v1682_v44 = vld [vmem:[%s7058_s23 + $0x30] sm:$0xff] }
 0x4b8   : > { %4827 = vmatpush3.bf16.msra.mxu1 %v4824_v49  ;;  %v7156_v40 = vpack.c.bf16 %v1679_v35, %v1678_v34  ;;  %v1683_v45 = vld [vmem:[%s7058_s23 + $0x38] sm:$0xff]  ;;  %v1684_v47 = vld [vmem:[%s7058_s23 + $0x40] sm:$0xff]  ;;  %v1685_v48 = vld [vmem:[%s7058_s23 + $0x48] sm:$0xff] }
 0x4b9   : > { %4799 = vmatpush1.bf16.msra.mxu0 %v4798_v50  ;;  %4829 = vmatprep.subr.bf16.mxu1 %v4828_v58  ;;  %v7177_v46 = vpack.c.bf16 %v1683_v45, %v1682_v44  ;;  %v7187_v49 = vpack.c.bf16 %v1685_v48, %v1684_v47  ;;  %v1686_v50 = vld [vmem:[%s7058_s23 + $0x50] sm:$0xff]  ;;  %v1687_v51 = vld [vmem:[%s7058_s23 + $0x58] sm:$0xff]  ;;  %v1688_v53 = vld [vmem:[%s7058_s23 + $0x60] sm:$0xff] }
 0x4ba   : > { %4801 = vmatprep.subr.bf16.mxu0 %v4800_v54  ;;  %v7197_v52 = vpack.c.bf16 %v1687_v51, %v1686_v50  ;;  %v1689_v54 = vld [vmem:[%s7058_s23 + $0x68] sm:$0xff]  ;;  %v1690_v56 = vld [vmem:[%s7058_s23 + $0x70] sm:$0xff]  ;;  %v1691_v57 = vld [vmem:[%s7058_s23 + $0x78] sm:$0xff] }
 0x4bb   : > { %v7207_v55 = vpack.c.bf16 %v1689_v54, %v1688_v53 }
 0x4bc   : > { %4831 = vmatpush3.bf16.msra.mxu1 %v4828_v58  ;;  %v7217_v58 = vpack.c.bf16 %v1691_v57, %v1690_v56 }
 0x4bd   : > { %4803 = vmatpush1.bf16.msra.mxu0 %v4802_v59  ;;  %v1509_v59 = vlaneseq }
 0x535   : > { %v1421_v25 = vpop.xlane.xlu0 %1420 }
 0x536   : > { %v1425_v26 = vmul.f32 0.0078125, %v1421_v25 }
 0x538   : > { %v7094_v27 = vsub.f32 %v1416_v63, %v1425_v26  ;;  %v4804_v63 = vpack.c.bf16 %v1499_v61, %v1496_v60  ;;  %v7228_v60 = vshrl.u32 %v1509_v59, 7 }
 0x539   : > { %v1423_v28 = vpop.xlane.xlu0 %1422 }
 0x53a   : > { %v1426_v29 = vmul.f32 0.0078125, %v1423_v28  ;;  %v1429_v30 = vmul.f32 %v7094_v27, %v7094_v27  ;;  %4805 = vmatprep.subr.bf16.mxu0 %v4804_v63  ;;  %v1511_v61 = vsub.s32 0, %v7228_v60  ;;  %v1515_v1 = vsub.s32 1, %v7228_v60 }
 0x53b   : > { %4807 = vmatpush1.bf16.msra.mxu0 %v4806_v5  ;;  %v1841_v34 = vand.u32 1, %v7228_v60  ;;  %v1877_v53 = vand.u32 4, %v7228_v60 }
 0x53c   : > { %v7098_v31 = vsub.f32 %v1417_v0, %v1426_v29  ;;  %1431 = vadd.xlane.f32.xlu1 %v1429_v30  ;;  %v1494_v0 = vld [vmem:[%s7024_s5 + $0x118] sm:$0xff]  ;;  %4809 = vmatprep.subr.bf16.mxu0 %v4808_v9  ;;  %v4079_v30 = vld [vmem:[%s8057_s20] ss:$0 sm:$0xff]  ;;  %s6223_s5 = smov 4  }
 0x53d   : > { %v4832_v4 = vpack.c.bf16 %v1494_v0, %v1491_v62  ;;  %v1507_v62 = vld [vmem:[%s7031_s12] sm:$0x7]  ;;  %v1519_v0 = vsub.s32 2, %v7228_v60  ;;  %vm7274_vm3 = vcmp.ne.s32.totalorder %v1841_v34, 0  ;;  %s6224_s12 = smov 8   ;;  %vm7304_vm7 = vcmp.ne.s32.totalorder %v1877_v53, 0 }
 0x53e   : > { %v1430_v32 = vmul.f32 %v7098_v31, %v7098_v31  ;;  %v1512_v63 = vrot.slane %v1507_v62, %v1511_v61  ;;  %v1516_v7 = vrot.slane %v1507_v62, %v1515_v1 }
 0x53f   : > { %4833 = vmatprep.subr.bf16.mxu1 %v4832_v4  ;;  %4811 = vmatpush1.bf16.msra.mxu0 %v4810_v14  ;;  %v1520_v6 = vrot.slane %v1507_v62, %v1519_v0 }
 0x540   : > { %1433 = vadd.xlane.f32.xlu1 %v1430_v32  ;;  %4835 = vmatpush3.bf16.msra.mxu1 %v4832_v4 }
 0x541   : > { %4837 = vmatprep.subr.bf16.mxu1 %v4836_v13  ;;  %4846 = vmatprep.subr.msk.bf16.mxu0 %vm7141_vm1, %v7137_v20 }
 0x544   : > { %4839 = vmatpush3.bf16.msra.mxu1 %v4836_v13 }
 0x545   : > { %4841 = vmatprep.subr.bf16.mxu1 %v4840_v17 }
 0x548   : > { %4843 = vmatpush3.bf16.msra.mxu1 %v4840_v17 }
 0x5c9   : > { %v1432_v22 = vpop.xlane.xlu1 %1431 }
 0x5ca   : > { %v1435_v23 = vmul.f32 0.0078125, %v1432_v22 }
 0x5cc   : > { %v1437_v24 = vadd.f32 1e-12, %v1435_v23 }
 0x5cd   : > { %v1434_v25 = vpop.xlane.xlu1 %1433 }
 0x5ce   : > { %5488 = vrsqrt.f32 %v1437_v24  ;;  %v1436_v26 = vmul.f32 0.0078125, %v1434_v25 }
 0x5d0   : > { %v1438_v28 = vadd.f32 1e-12, %v1436_v26 }
 0x5d2   : > { %5490 = vrsqrt.f32 %v1438_v28 }
 0x5d8   : > { %v5489_v29 = vpop.eup %5488 }
 0x5d9   : > { %v1441_v32 = vmul.f32 %v5489_v29, %v7094_v27 }
 0x5db   : > { %v1449_v36 = vmul.f32 %v4079_v30, %v1441_v32 }
 0x5dc   : > { %v5491_v37 = vpop.eup %5490 }
 0x5dd   : > { %v1457_v38 = vadd.f32 %v4080_v33, %v1449_v36  ;;  %v1442_v39 = vmul.f32 %v5491_v37, %v7098_v31  ;;  %v1680_v31 = vld [vmem:[%s7058_s23 + $0x20] sm:$0xff]  ;;  %s6222_s23 = smov 2  }
 0x5de   : > { %v7167_v43 = vpack.c.bf16 %v1681_v42, %v1680_v31  ;;  %v1859_v31 = vand.u32 2, %v7228_v60 }
 0x5df   : > { %1589 = vmatmul.mubr.f32.vlgmr.msra.gmra.mrb[0].mxu0 %v1457_v38  ;;  %4479 = vmatprep.mubr.f32.mxu1 %v1457_v38  ;;  %v1450_v41 = vmul.f32 %v4079_v30, %v1442_v39  ;;  %v1832_v30 = vadd.s32 8, %v7228_v60 }
 0x5e0   : > { %1594 = vmatprep.mubr.f32.mxu0 %v6219_v3  ;;  %4849 = vmatpush3.bf16.xpose.msk.msra.mxu0 %vm7141_vm1, %v7137_v20  ;;  %vm7289_vm5 = vcmp.ne.s32.totalorder %v1859_v31, 0 }
 0x5e1   : > { %v1458_v27 = vadd.f32 %v4080_v33, %v1450_v41  ;;  %4852 = vmatprep.subr.msk.bf16.mxu0 %vm7141_vm1, %v7156_v40  ;;  %v1842_v32 = vand.u32 1, %v1832_v30  ;;  %v1860_v41 = vand.u32 2, %v1832_v30  ;;  %v1878_v50 = vand.u32 4, %v1832_v30 }
 0x5e3   : > { %1595 = vmatmul.mubr.f32.gmra.mrb[2].mxu0 %v1458_v27  ;;  %4480 = vmatmul.mubr.f32.vlgmr.msra.gmra.mrb[0].mxu1 %v1458_v27  ;;  %vm7266_vm2 = vcmp.ne.s32.totalorder %v1842_v32, 0  ;;  %vm7281_vm4 = vcmp.ne.s32.totalorder %v1860_v41, 0  ;;  %vm7296_vm6 = vcmp.ne.s32.totalorder %v1878_v50, 0 }
 0x5e8   : > { %4855 = vmatpush3.bf16.xpose.msk.msra.mxu0 %vm7141_vm1, %v7156_v40 }
 0x5e9   : > { %4858 = vmatprep.subr.msk.bf16.mxu0 %vm7141_vm1, %v7167_v43 }
 0x5f0   : > { %4861 = vmatpush3.bf16.xpose.msk.msra.mxu0 %vm7141_vm1, %v7167_v43 }
 0x5f1   : > { %4864 = vmatprep.subr.msk.bf16.mxu0 %vm7141_vm1, %v7177_v46 }
 0x5f8   : > { %4867 = vmatpush3.bf16.xpose.msk.msra.mxu0 %vm7141_vm1, %v7177_v46 }
 0x5f9   : > { %4870 = vmatprep.subr.msk.bf16.mxu0 %vm7141_vm1, %v7187_v49 }
 0x600   : > { %4873 = vmatpush3.bf16.xpose.msk.msra.mxu0 %vm7141_vm1, %v7187_v49 }
 0x601   : > { %4876 = vmatprep.subr.msk.bf16.mxu0 %vm7141_vm1, %v7197_v52 }
 0x608   : > { %4879 = vmatpush3.bf16.xpose.msk.msra.mxu0 %vm7141_vm1, %v7197_v52 }
 0x609   : > { %4882 = vmatprep.subr.msk.bf16.mxu0 %vm7141_vm1, %v7207_v55 }
 0x610   : > { %4885 = vmatpush3.bf16.xpose.msk.msra.mxu0 %vm7141_vm1, %v7207_v55 }
 0x611   : > { %4888 = vmatprep.subr.msk.bf16.mxu0 %vm7141_vm1, %v7217_v58 }
 0x618   : > { %4891 = vmatpush3.bf16.xpose.msk.msra.mxu0 %vm7141_vm1, %v7217_v58 }
 0x6b2   : > { %v1590_v2 = vpop.f32.mrb[0].mxu0 }
 0x6b3   : > { %v7236_v4 = vadd.f32 %v1590_v2, %v1512_v63  ;;  %v1592_v5 = vpop.f32.mrb[1].mxu0 }
 0x6b4   : > { %v1593_v14 = vadd.f32 %v1592_v5, %v1516_v7 }
 0x6b5   : > { %4514 = vmatprep.mubr.msk.f32.mxu0 %vm1692_vm0, %v7236_v4  ;;  %4521 = vmatprep.mubr.msk.f32.mxu1 %vm1692_vm0, %v7236_v4 }
 0x6b6   : > { %v1596_v8 = vpop.f32.mrb[2].mxu0  ;;  %v4481_v9 = vpop.f32.mrb[0].mxu1 }
 0x6b7   : > { %v7244_v10 = vadd.f32 %v1596_v8, %v1512_v63  ;;  %v1673_v11 = vadd.f32 %v4481_v9, %v1520_v6  ;;  %v1598_v12 = vpop.f32.mrb[3].mxu0  ;;  %v1667_v13 = vpop.f32.mrb[1].mxu1 }
 0x6b8   : > { %v1599_v15 = vadd.f32 %v1598_v12, %v1516_v7  ;;  %v1668_v16 = vadd.f32 %v1667_v13, %v1520_v6 }
 0x6b9   : > { %4515 = vmatmul.mubr.msk.f32.vlgmr.msra.gmra.mrb[4].mxu0 %vm1692_vm0, %v7244_v10 }
 0x6ba   : > { %v4892_v17 = vpack.c.bf16 %v1599_v15, %v1593_v14  ;;  %v4898_v18 = vpack.c.bf16 %v1673_v11, %v1668_v16  ;;  %v7248_v19 = vpack.i.bf16 %v1599_v15, %v1593_v14  ;;  %v7250_v22 = vpack.i.bf16 %v1673_v11, %v1668_v16 }
 0x6bc   : > { %4894 = vmatprep.subr.msk.bf16.mxu1 %vm7141_vm1, %v4892_v17 }
 0x6bd   : > { %4897 = vmatpush3.bf16.xpose.msk.msra.mxu1 %vm7141_vm1, %v4892_v17 }
 0x6be   : > { %4899 = vmatprep.subr.bf16.mxu1 %v4898_v18 }
 0x6c4   : > { %4522 = vmatmul.mubr.msk.f32.vlgmr.msra.gmra.mrb[2].mxu1 %vm1692_vm0, %v7244_v10 }
 0x6c5   : > { %4901 = vmatpush3.bf16.msra.mxu1 %v4898_v18 }
 0x6c6   : > { %4904 = vmatprep.subr.msk.bf16.mxu1 %vm7141_vm1, %v7137_v20 }
 0x78c   : > { %v4516_v23 = vpop.f32.mrb[4].mxu0 }
 0x78d   : > { %1826 = vrot.lane.b32.xlu0 %v4516_v23, %s6220_s26  ;;  %v1813_v24 = vpop.f32.mrb[5].mxu0 }
 0x78e   : > { %1824 = vrot.lane.b32.xlu1 %v1813_v24, %s6220_s26 }
 0x797   : > { %v4523_v25 = vpop.f32.mrb[2].mxu1 }
 0x798   : > { %v1977_v26 = vpop.f32.mrb[3].mxu1 }
 0x7ff   : > { %v1827_v28 = vpop.permute.xlu0 %1826 }
 0x800   : > { %1837 = vrot.lane.b32.xlu1 %v1827_v28, %s6221_s0  ;;  %v1825_v29 = vpop.permute.xlu1 %1824 }
 0x804   : > { %1835 = vrot.lane.b32.xlu1 %v1825_v29, %s6221_s0 }
 0x872   : > { %v1838_v35 = vpop.permute.xlu1 %1837 }
 0x873   : > { %v1850_v36 = vsel %vm7266_vm2, %v1838_v35, %v1827_v28 }
 0x874   : > { %1855 = vrot.lane.b32.xlu0 %v1850_v36, %s6222_s23 }
 0x876   : > { %v1836_v38 = vpop.permute.xlu1 %1835 }
 0x877   : > { %v1849_v39 = vsel %vm7274_vm3, %v1836_v38, %v1825_v29 }
 0x878   : > { %1853 = vrot.lane.b32.xlu1 %v1849_v39, %s6222_s23 }
 0x8e6   : > { %v1856_v42 = vpop.permute.xlu0 %1855 }
 0x8e7   : > { %v1868_v44 = vsel %vm7281_vm4, %v1856_v42, %v1850_v36 }
 0x8e8   : > { %1873 = vrot.lane.b32.xlu0 %v1868_v44, %s6223_s5 }
 0x8ea   : > { %v1854_v47 = vpop.permute.xlu1 %1853 }
 0x8eb   : > { %v1867_v48 = vsel %vm7289_vm5, %v1854_v47, %v1849_v39 }
 0x8ec   : > { %1871 = vrot.lane.b32.xlu1 %v1867_v48, %s6223_s5 }
 0x95a   : > { %v1874_v54 = vpop.permute.xlu0 %1873 }
 0x95b   : > { %v1886_v56 = vsel %vm7296_vm6, %v1874_v54, %v1868_v44 }
 0x95c   : > { %1891 = vrot.lane.b32.xlu0 %v1886_v56, %s6224_s12 }
 0x95e   : > { %v1872_v59 = vpop.permute.xlu1 %1871 }
 0x95f   : > { %v1885_v62 = vsel %vm7304_vm7, %v1872_v59, %v1867_v48 }
 0x960   : > { %v1978_v63 = vadd.f32 %v1977_v26, %v1885_v62 }
 0x962   : > { %v1986_v0 = vmul.f32 0.17677669, %v1978_v63 }
 0x964   : > { %v1989_v2 = vsel %vm1988_vm8, %v1986_v0, -inf }
 0x965   : > { %1990 = vmax.xlane.f32.xlu1 %v1989_v2 }
 0x976   : > { %2092 = vrot.lane.b32.xlu1 %v7236_v4, %s6225_s11 }
 0x9ce   : > { %v1892_v5 = vpop.permute.xlu0 %1891 }
 0x9cf   : > { %v1983_v6 = vadd.f32 %v4523_v25, %v1892_v5 }
 0x9d1   : > { %v1987_v7 = vmul.f32 0.17677669, %v1983_v6 }
 0x9d3   : > { %v1992_v8 = vsel %vm1988_vm8, %v1987_v7, -inf }
 0x9d4   : > { %1993 = vmax.xlane.f32.xlu0 %v1992_v8 }
 0x9f2   : > { %v1991_v9 = vpop.xlane.xlu1 %1990 }
 0x9f3   : > { %v1995_v11 = vsub.f32 %v1986_v0, %v1991_v9 }
 0x9f5   : > { %v1997_v12 = vmul.f32 1.442695, %v1995_v11 }
 0x9f6   : > { %v2093_v32 = vpop.permute.xlu1 %2092 }
 0x9f7   : > { %5492 = vpow2.f32 %v1997_v12 }
 0xa01   : > { %v5493_v13 = vpop.eup %5492 }
 0xa02   : > { %v2001_v14 = vsel %vm1988_vm8, %v5493_v13, 0.0 }
 0xa03   : > { %2002 = vadd.xlane.f32.xlu0 %v2001_v14 }
 0xa61   : > { %v1994_v15 = vpop.xlane.xlu0 %1993 }
 0xa62   : > { %v1996_v16 = vsub.f32 %v1987_v7, %v1994_v15 }
 0xa64   : > { %v1999_v17 = vmul.f32 1.442695, %v1996_v16 }
 0xa66   : > { %5494 = vpow2.f32 %v1999_v17 }
 0xa70   : > { %v5495_v18 = vpop.eup %5494 }
 0xa71   : > { %v2004_v23 = vsel %vm1988_vm8, %v5495_v18, 0.0 }
 0xa72   : > { %2005 = vadd.xlane.f32.xlu0 %v2004_v23 }
 0xa88   : > { %2094 = vrot.lane.b32.xlu0 %v7244_v10, %s6225_s11 }
 0xa90   : > { %v2003_v24 = vpop.xlane.xlu0 %2002 }
 0xa91   : > { %5496 = vrcp.f32 %v2003_v24 }
 0xa9b   : > { %v5497_v25 = vpop.eup %5496 }
 0xa9c   : > { %v2009_v26 = vmul.f32 %v5497_v25, %v5493_v13 }
 0xa9e   : > { %4528 = vmatprep.mubr.msk.f32.mxu1 %vm1988_vm8, %v2009_v26 }
 0xaff   : > { %v2006_v28 = vpop.xlane.xlu0 %2005 }
 0xb00   : > { %5498 = vrcp.f32 %v2006_v28 }
 0xb03   : > { %v2095_v34 = vpop.permute.xlu0 %2094 }
 0xb0a   : > { %v5499_v29 = vpop.eup %5498 }
 0xb0b   : > { %v2010_v30 = vmul.f32 %v5499_v29, %v5495_v18 }
 0xb0d   : > { %4529 = vmatmul.mubr.msk.f32.vlgmr.msra.gmra.mrb[4].mxu1 %vm1988_vm8, %v2010_v30 }
 0xb0e   : > { %4907 = vmatpush3.bf16.xpose.msk.msra.mxu1 %vm7141_vm1, %v7137_v20  ;;  %4563 = vmatprep.mubr.msk.f32.mxu1 %vm1692_vm0, %v2093_v32 }
 0xb0f   : > { %4910 = vmatprep.subr.msk.bf16.mxu1 %vm7141_vm1, %v7156_v40 }
 0xb16   : > { %4913 = vmatpush3.bf16.xpose.msk.msra.mxu1 %vm7141_vm1, %v7156_v40 }
 0xb17   : > { %4916 = vmatprep.subr.msk.bf16.mxu1 %vm7141_vm1, %v7167_v43 }
 0xb1e   : > { %4919 = vmatpush3.bf16.xpose.msk.msra.mxu1 %vm7141_vm1, %v7167_v43 }
 0xb1f   : > { %4922 = vmatprep.subr.msk.bf16.mxu1 %vm7141_vm1, %v7177_v46 }
 0xb26   : > { %4925 = vmatpush3.bf16.xpose.msk.msra.mxu1 %vm7141_vm1, %v7177_v46 }
 0xb27   : > { %4928 = vmatprep.subr.msk.bf16.mxu1 %vm7141_vm1, %v7187_v49 }
 0xb2e   : > { %4931 = vmatpush3.bf16.xpose.msk.msra.mxu1 %vm7141_vm1, %v7187_v49 }
 0xb2f   : > { %4934 = vmatprep.subr.msk.bf16.mxu1 %vm7141_vm1, %v7197_v52 }
 0xb36   : > { %4937 = vmatpush3.bf16.xpose.msk.msra.mxu1 %vm7141_vm1, %v7197_v52 }
 0xb37   : > { %4940 = vmatprep.subr.msk.bf16.mxu1 %vm7141_vm1, %v7207_v55 }
 0xb3e   : > { %4943 = vmatpush3.bf16.xpose.msk.msra.mxu1 %vm7141_vm1, %v7207_v55 }
 0xb3f   : > { %4946 = vmatprep.subr.msk.bf16.mxu1 %vm7141_vm1, %v7217_v58 }
 0xb46   : > { %4949 = vmatpush3.bf16.xpose.msk.msra.mxu1 %vm7141_vm1, %v7217_v58 }
 0xb4d   : > { %4564 = vmatmul.mubr.msk.f32.vlgmr.msra.gmra.mrb[6].mxu1 %vm1692_vm0, %v2095_v34 }
 0xb4e   : > { %4570 = vmatprep.mubr.msk.f32.mxu1 %vm1692_vm0, %v2093_v32 }
 0xbe0   : > { %v7368_v35 = vpop.f32.mrb[4].mxu1 }
 0xbe1   : > { %v7370_v36 = vpop.f32.mrb[5].mxu1 }
 0xc20   : > { %v4565_v38 = vpop.f32.mrb[6].mxu1 }
 0xc21   : > { %2179 = vrot.lane.b32.xlu1 %v4565_v38, %s6220_s26  ;;  %v2166_v39 = vpop.f32.mrb[7].mxu1 }
 0xc25   : > { %5444 = vrot.lane.b32.xlu1 %v7248_v19, %s6225_s11 }
 0xc29   : > { %2177 = vrot.lane.b32.xlu1 %v2166_v39, %s6220_s26 }
 0xc93   : > { %v2180_v41 = vpop.permute.xlu1 %2179 }
 0xc94   : > { %2187 = vrot.lane.b32.xlu0 %v2180_v41, %s6221_s0 }
 0xc97   : > { %v5445_v31 = vpop.permute.xlu1 %5444 }
 0xc98   : > { %v5447_v42 = vunpack.i.h.bf16 %v5445_v31  ;;  %v5446_v44 = vunpack.i.l.bf16 %v5445_v31 }
 0xc9a   : > { %v4950_v47 = vpack.c.bf16 %v5447_v42, %v5446_v44 }
 0xc9b   : > { %v2178_v48 = vpop.permute.xlu1 %2177 }
 0xc9c   : > { %4952 = vmatprep.subr.msk.bf16.mxu1 %vm7141_vm1, %v4950_v47  ;;  %2185 = vrot.lane.b32.xlu1 %v2178_v48, %s6221_s0 }
 0xc9d   : > { %4955 = vmatpush3.bf16.xpose.msk.msra.mxu1 %vm7141_vm1, %v4950_v47 }
 0xca4   : > { %4571 = vmatmul.mubr.msk.f32.vlgmr.msra.gmra.mrb[8].mxu1 %vm1692_vm0, %v2095_v34 }
 0xd06   : > { %v2188_v50 = vpop.permute.xlu0 %2187 }
 0xd07   : > { %v2192_v53 = vsel %vm7266_vm2, %v2188_v50, %v2180_v41 }
 0xd08   : > { %2197 = vrot.lane.b32.xlu0 %v2192_v53, %s6222_s23 }
 0xd0e   : > { %v2186_v54 = vpop.permute.xlu1 %2185 }
 0xd0f   : > { %v2191_v56 = vsel %vm7274_vm3, %v2186_v54, %v2178_v48 }
 0xd10   : > { %2195 = vrot.lane.b32.xlu1 %v2191_v56, %s6222_s23 }
 0xd77   : > { %v4572_v59 = vpop.f32.mrb[8].mxu1 }
 0xd78   : > { %v2297_v62 = vpop.f32.mrb[9].mxu1 }
 0xd7a   : > { %v2198_v63 = vpop.permute.xlu0 %2197 }
 0xd7b   : > { %v2202_v0 = vsel %vm7281_vm4, %v2198_v63, %v2192_v53 }
 0xd7c   : > { %2207 = vrot.lane.b32.xlu0 %v2202_v0, %s6223_s5 }
 0xd82   : > { %v2196_v2 = vpop.permute.xlu1 %2195 }
 0xd83   : > { %v2201_v5 = vsel %vm7289_vm5, %v2196_v2, %v2191_v56 }
 0xd84   : > { %2205 = vrot.lane.b32.xlu1 %v2201_v5, %s6223_s5 }
 0xdee   : > { %v2208_v6 = vpop.permute.xlu0 %2207 }
 0xdef   : > { %v2212_v7 = vsel %vm7296_vm6, %v2208_v6, %v2202_v0 }
 0xdf0   : > { %2217 = vrot.lane.b32.xlu0 %v2212_v7, %s6224_s12 }
 0xdf6   : > { %v2206_v8 = vpop.permute.xlu1 %2205 }
 0xdf7   : > { %v2211_v9 = vsel %vm7304_vm7, %v2206_v8, %v2201_v5 }
 0xdf8   : > { %v2298_v11 = vadd.f32 %v2297_v62, %v2211_v9 }
 0xdfa   : > { %v2306_v12 = vmul.f32 0.17677669, %v2298_v11 }
 0xdfc   : > { %v2308_v13 = vsel %vm1988_vm8, %v2306_v12, -inf }
 0xdfd   : > { %2309 = vmax.xlane.f32.xlu1 %v2308_v13 }
 0xe0e   : > { %5449 = vrot.lane.b32.xlu1 %v7250_v22, %s6225_s11 }
 0xe12   : > { %2421 = vrot.lane.b32.xlu1 %v7244_v10, %s6226_s21 }
 0xe62   : > { %v2218_v14 = vpop.permute.xlu0 %2217 }
 0xe63   : > { %v2303_v15 = vadd.f32 %v4572_v59, %v2218_v14 }
 0xe65   : > { %v2307_v16 = vmul.f32 0.17677669, %v2303_v15 }
 0xe67   : > { %v2311_v17 = vsel %vm1988_vm8, %v2307_v16, -inf }
 0xe68   : > { %2312 = vmax.xlane.f32.xlu0 %v2311_v17 }
 0xe8a   : > { %v2310_v18 = vpop.xlane.xlu1 %2309 }
 0xe8b   : > { %v2314_v23 = vsub.f32 %v2306_v12, %v2310_v18 }
 0xe8d   : > { %v2316_v24 = vmul.f32 1.442695, %v2314_v23 }
 0xe8e   : > { %v5450_v25 = vpop.permute.xlu1 %5449 }
 0xe8f   : > { %5500 = vpow2.f32 %v2316_v24  ;;  %v5452_v26 = vunpack.i.h.bf16 %v5450_v25  ;;  %v5451_v28 = vunpack.i.l.bf16 %v5450_v25 }
 0xe91   : > { %v4956_v29 = vpack.c.bf16 %v5452_v26, %v5451_v28 }
 0xe92   : > { %v2422_v56 = vpop.permute.xlu1 %2421 }
 0xe93   : > { %4957 = vmatprep.subr.bf16.mxu0 %v4956_v29 }
 0xe94   : > { %4959 = vmatpush3.bf16.msra.mxu0 %v4956_v29 }
 0xe95   : > { %4962 = vmatprep.subr.msk.bf16.mxu0 %vm7141_vm1, %v7137_v20 }
 0xe99   : > { %v5501_v30 = vpop.eup %5500 }
 0xe9a   : > { %v2320_v32 = vsel %vm1988_vm8, %v5501_v30, 0.0 }
 0xe9b   : > { %2321 = vadd.xlane.f32.xlu0 %v2320_v32 }
 0xef5   : > { %v2313_v34 = vpop.xlane.xlu0 %2312 }
 0xef6   : > { %v2315_v38 = vsub.f32 %v2307_v16, %v2313_v34 }
 0xef8   : > { %v2318_v39 = vmul.f32 1.442695, %v2315_v38 }
 0xefa   : > { %5502 = vpow2.f32 %v2318_v39 }
 0xf04   : > { %v5503_v41 = vpop.eup %5502 }
 0xf05   : > { %v2323_v31 = vsel %vm1988_vm8, %v5503_v41, 0.0 }
 0xf06   : > { %2324 = vadd.xlane.f32.xlu0 %v2323_v31 }
 0xf1c   : > { %2419 = vrot.lane.b32.xlu0 %v7236_v4, %s6226_s21 }
 0xf28   : > { %v2322_v42 = vpop.xlane.xlu0 %2321 }
 0xf29   : > { %5504 = vrcp.f32 %v2322_v42 }
 0xf33   : > { %v5505_v44 = vpop.eup %5504 }
 0xf34   : > { %v2328_v47 = vmul.f32 %v5505_v44, %v5501_v30 }
 0xf36   : > { %4577 = vmatprep.mubr.msk.f32.mxu0 %vm1988_vm8, %v2328_v47 }
 0xf93   : > { %v2325_v48 = vpop.xlane.xlu0 %2324 }
 0xf94   : > { %5506 = vrcp.f32 %v2325_v48 }
 0xf97   : > { %v2420_v50 = vpop.permute.xlu0 %2419 }
 0xf98   : > { %4619 = vmatprep.mubr.msk.f32.mxu1 %vm1692_vm0, %v2420_v50 }
 0xf9e   : > { %v5507_v53 = vpop.eup %5506 }
 0xf9f   : > { %v2329_v54 = vmul.f32 %v5507_v53, %v5503_v41 }
 0xfa1   : > { %4578 = vmatmul.mubr.msk.f32.vlgmr.msra.gmra.mrb[6].mxu0 %vm1988_vm8, %v2329_v54 }
 0xfa2   : > { %4965 = vmatpush3.bf16.xpose.msk.msra.mxu0 %vm7141_vm1, %v7137_v20  ;;  %4612 = vmatprep.mubr.msk.f32.mxu0 %vm1692_vm0, %v2420_v50 }
 0xfa3   : > { %4968 = vmatprep.subr.msk.bf16.mxu0 %vm7141_vm1, %v7156_v40 }
 0xfaa   : > { %4971 = vmatpush3.bf16.xpose.msk.msra.mxu0 %vm7141_vm1, %v7156_v40 }
 0xfab   : > { %4974 = vmatprep.subr.msk.bf16.mxu0 %vm7141_vm1, %v7167_v43 }
 0xfb2   : > { %4977 = vmatpush3.bf16.xpose.msk.msra.mxu0 %vm7141_vm1, %v7167_v43 }
 0xfb3   : > { %4980 = vmatprep.subr.msk.bf16.mxu0 %vm7141_vm1, %v7177_v46 }
 0xfba   : > { %4983 = vmatpush3.bf16.xpose.msk.msra.mxu0 %vm7141_vm1, %v7177_v46 }
 0xfbb   : > { %4986 = vmatprep.subr.msk.bf16.mxu0 %vm7141_vm1, %v7187_v49 }
 0xfc2   : > { %4989 = vmatpush3.bf16.xpose.msk.msra.mxu0 %vm7141_vm1, %v7187_v49 }
 0xfc3   : > { %4992 = vmatprep.subr.msk.bf16.mxu0 %vm7141_vm1, %v7197_v52 }
 0xfca   : > { %4995 = vmatpush3.bf16.xpose.msk.msra.mxu0 %vm7141_vm1, %v7197_v52 }
 0xfcb   : > { %4998 = vmatprep.subr.msk.bf16.mxu0 %vm7141_vm1, %v7207_v55 }
 0xfd2   : > { %5001 = vmatpush3.bf16.xpose.msk.msra.mxu0 %vm7141_vm1, %v7207_v55 }
 0xfd3   : > { %5004 = vmatprep.subr.msk.bf16.mxu0 %vm7141_vm1, %v7217_v58 }
 0xfda   : > { %5007 = vmatpush3.bf16.xpose.msk.msra.mxu0 %vm7141_vm1, %v7217_v58 }
 0xfe1   : > { %4613 = vmatmul.mubr.msk.f32.vlgmr.msra.gmra.mrb[8].mxu0 %vm1692_vm0, %v2422_v56 }
0x1074   : > { %v7463_v59 = vpop.f32.mrb[6].mxu0 }
0x1075   : > { %v7465_v62 = vpop.f32.mrb[7].mxu0 }
0x1076   : > { %v5473_v63 = vpack.i.bf16 %v7463_v59, %v7465_v62  ;;  %v3102_v59 = vld [vmem:[%s7063_s14 + $0x8] sm:$0xff]  ;;  %v3103_v62 = vld [vmem:[%s7063_s14 + $0x10] sm:$0xff] }
0x10b4   : > { %v4614_v0 = vpop.f32.mrb[8].mxu0 }
0x10b5   : > { %2506 = vrot.lane.b32.xlu1 %v4614_v0, %s6220_s26  ;;  %v2493_v2 = vpop.f32.mrb[9].mxu0 }
0x10b6   : > { %2504 = vrot.lane.b32.xlu0 %v2493_v2, %s6220_s26 }
0x10b9   : > { %5454 = vrot.lane.b32.xlu1 %v7248_v19, %s6226_s21 }
0x1127   : > { %v2507_v5 = vpop.permute.xlu1 %2506 }
0x1128   : > { %2514 = vrot.lane.b32.xlu1 %v2507_v5, %s6221_s0  ;;  %v2505_v6 = vpop.permute.xlu0 %2504 }
0x1129   : > { %2512 = vrot.lane.b32.xlu0 %v2505_v6, %s6221_s0 }
0x112b   : > { %v5455_v7 = vpop.permute.xlu1 %5454 }
0x112c   : > { %v5457_v8 = vunpack.i.h.bf16 %v5455_v7  ;;  %v5456_v9 = vunpack.i.l.bf16 %v5455_v7 }
0x112e   : > { %v5008_v11 = vpack.c.bf16 %v5457_v8, %v5456_v9 }
0x1130   : > { %5010 = vmatprep.subr.msk.bf16.mxu1 %vm7141_vm1, %v5008_v11 }
0x1131   : > { %5013 = vmatpush3.bf16.xpose.msk.msra.mxu1 %vm7141_vm1, %v5008_v11 }
0x1138   : > { %4620 = vmatmul.mubr.msk.f32.vlgmr.msra.gmra.mrb[10].mxu1 %vm1692_vm0, %v2422_v56 }
0x119a   : > { %v2515_v12 = vpop.permute.xlu1 %2514 }
0x119b   : > { %v2513_v13 = vpop.permute.xlu0 %2512  ;;  %v2519_v14 = vsel %vm7266_vm2, %v2515_v12, %v2507_v5 }
0x119c   : > { %2524 = vrot.lane.b32.xlu1 %v2519_v14, %s6222_s23  ;;  %v2518_v15 = vsel %vm7274_vm3, %v2513_v13, %v2505_v6 }
0x119d   : > { %2522 = vrot.lane.b32.xlu0 %v2518_v15, %s6222_s23 }
0x120b   : > { %v4621_v16 = vpop.f32.mrb[10].mxu1 }
0x120c   : > { %v2624_v17 = vpop.f32.mrb[11].mxu1 }
0x120e   : > { %v2525_v18 = vpop.permute.xlu1 %2524 }
0x120f   : > { %v2523_v23 = vpop.permute.xlu0 %2522  ;;  %v2529_v24 = vsel %vm7281_vm4, %v2525_v18, %v2519_v14 }
0x1210   : > { %2534 = vrot.lane.b32.xlu1 %v2529_v24, %s6223_s5  ;;  %v2528_v25 = vsel %vm7289_vm5, %v2523_v23, %v2518_v15 }
0x1211   : > { %2532 = vrot.lane.b32.xlu0 %v2528_v25, %s6223_s5 }
0x1282   : > { %v2535_v26 = vpop.permute.xlu1 %2534 }
0x1283   : > { %v2533_v28 = vpop.permute.xlu0 %2532  ;;  %v2539_v29 = vsel %vm7296_vm6, %v2535_v26, %v2529_v24 }
0x1284   : > { %v2538_v30 = vsel %vm7304_vm7, %v2533_v28, %v2528_v25  ;;  %2544 = vrot.lane.b32.xlu1 %v2539_v29, %s6224_s12 }
0x1285   : > { %v2625_v32 = vadd.f32 %v2624_v17, %v2538_v30 }
0x1287   : > { %v2633_v34 = vmul.f32 0.17677669, %v2625_v32 }
0x1289   : > { %v2635_v38 = vsel %vm1988_vm8, %v2633_v34, -inf }
0x128a   : > { %2636 = vmax.xlane.f32.xlu0 %v2635_v38 }
0x12f6   : > { %v2545_v39 = vpop.permute.xlu1 %2544 }
0x12f7   : > { %v2630_v41 = vadd.f32 %v4621_v16, %v2545_v39 }
0x12f9   : > { %v2634_v31 = vmul.f32 0.17677669, %v2630_v41 }
0x12fb   : > { %v2638_v42 = vsel %vm1988_vm8, %v2634_v31, -inf }
0x12fc   : > { %2639 = vmax.xlane.f32.xlu1 %v2638_v42 }
0x130d   : > { %2744 = vrot.lane.b32.xlu1 %v7236_v4, %s6227_s1 }
0x1311   : > { %2746 = vrot.lane.b32.xlu1 %v7244_v10, %s6227_s1 }
0x1317   : > { %v2637_v44 = vpop.xlane.xlu0 %2636 }
0x1318   : > { %v2641_v47 = vsub.f32 %v2633_v34, %v2637_v44 }
0x131a   : > { %v2643_v48 = vmul.f32 1.442695, %v2641_v47 }
0x131c   : > { %5508 = vpow2.f32 %v2643_v48 }
0x1326   : > { %v5509_v50 = vpop.eup %5508 }
0x1327   : > { %v2647_v53 = vsel %vm1988_vm8, %v5509_v50, 0.0 }
0x1328   : > { %2648 = vadd.xlane.f32.xlu0 %v2647_v53 }
0x1389   : > { %v2640_v54 = vpop.xlane.xlu1 %2639 }
0x138a   : > { %v2642_v56 = vsub.f32 %v2634_v31, %v2640_v54 }
0x138c   : > { %v2645_v0 = vmul.f32 1.442695, %v2642_v56 }
0x138d   : > { %v2745_v14 = vpop.permute.xlu1 %2744 }
0x138e   : > { %5510 = vpow2.f32 %v2645_v0 }
0x1398   : > { %v5511_v2 = vpop.eup %5510 }
0x1399   : > { %v2650_v5 = vsel %vm1988_vm8, %v5511_v2, 0.0 }
0x139a   : > { %2651 = vadd.xlane.f32.xlu0 %v2650_v5 }
0x13b0   : > { %5459 = vrot.lane.b32.xlu0 %v7250_v22, %s6226_s21 }
0x13b4   : > { %5464 = vrot.lane.b32.xlu0 %v7248_v19, %s6227_s1 }
0x13b5   : > { %v2649_v4 = vpop.xlane.xlu0 %2648 }
0x13b6   : > { %5512 = vrcp.f32 %v2649_v4 }
0x13c0   : > { %v5513_v10 = vpop.eup %5512 }
0x13c1   : > { %v2655_v6 = vmul.f32 %v5513_v10, %v5509_v50 }
0x13c3   : > { %4626 = vmatprep.mubr.msk.f32.mxu1 %vm1988_vm8, %v2655_v6 }
0x1427   : > { %v2652_v7 = vpop.xlane.xlu0 %2651 }
0x1428   : > { %5514 = vrcp.f32 %v2652_v7 }
0x142b   : > { %v5460_v8 = vpop.permute.xlu0 %5459 }
0x142c   : > { %v5462_v9 = vunpack.i.h.bf16 %v5460_v8  ;;  %v5461_v11 = vunpack.i.l.bf16 %v5460_v8 }
0x142e   : > { %v5014_v12 = vpack.c.bf16 %v5462_v9, %v5461_v11 }
0x1430   : > { %5015 = vmatprep.subr.bf16.mxu1 %v5014_v12 }
0x1431   : > { %5017 = vmatpush3.bf16.msra.mxu1 %v5014_v12 }
0x1432   : > { %v5515_v13 = vpop.eup %5514  ;;  %5020 = vmatprep.subr.msk.bf16.mxu1 %vm7141_vm1, %v7137_v20 }
0x1433   : > { %v2656_v19 = vmul.f32 %v5515_v13, %v5511_v2 }
0x1435   : > { %4627 = vmatmul.mubr.msk.f32.vlgmr.msra.gmra.mrb[12].mxu1 %vm1988_vm8, %v2656_v19  ;;  %v3101_v19 = vld [vmem:[%s7063_s14] sm:$0xff] }
0x1436   : > { %4661 = vmatprep.mubr.msk.f32.mxu1 %vm1692_vm0, %v2745_v14 }
0x143a   : > { %5023 = vmatpush3.bf16.xpose.msk.msra.mxu1 %vm7141_vm1, %v7137_v20  ;;  %v5465_v20 = vpop.permute.xlu0 %5464 }
0x143b   : > { %5026 = vmatprep.subr.msk.bf16.mxu1 %vm7141_vm1, %v7156_v40 }
0x1442   : > { %5029 = vmatpush3.bf16.xpose.msk.msra.mxu1 %vm7141_vm1, %v7156_v40  ;;  %v5467_v40 = vunpack.i.h.bf16 %v5465_v20 }
0x1443   : > { %5032 = vmatprep.subr.msk.bf16.mxu1 %vm7141_vm1, %v7167_v43 }
0x144a   : > { %5035 = vmatpush3.bf16.xpose.msk.msra.mxu1 %vm7141_vm1, %v7167_v43  ;;  %v5466_v43 = vunpack.i.l.bf16 %v5465_v20 }
0x144b   : > { %5038 = vmatprep.subr.msk.bf16.mxu1 %vm7141_vm1, %v7177_v46 }
0x1452   : > { %5041 = vmatpush3.bf16.xpose.msk.msra.mxu1 %vm7141_vm1, %v7177_v46  ;;  %v5066_v46 = vpack.c.bf16 %v5467_v40, %v5466_v43  ;;  %v3105_v40 = vld [vmem:[%s7063_s14 + $0x20] sm:$0xff]  ;;  %v3106_v43 = vld [vmem:[%s7063_s14 + $0x28] sm:$0xff] }
0x1453   : > { %5044 = vmatprep.subr.msk.bf16.mxu1 %vm7141_vm1, %v7187_v49 }
0x145a   : > { %5047 = vmatpush3.bf16.xpose.msk.msra.mxu1 %vm7141_vm1, %v7187_v49  ;;  %v2747_v49 = vpop.permute.xlu1 %2746 }
0x145b   : > { %5050 = vmatprep.subr.msk.bf16.mxu1 %vm7141_vm1, %v7197_v52 }
0x1462   : > { %5053 = vmatpush3.bf16.xpose.msk.msra.mxu1 %vm7141_vm1, %v7197_v52 }
0x1463   : > { %5056 = vmatprep.subr.msk.bf16.mxu1 %vm7141_vm1, %v7207_v55 }
0x146a   : > { %5059 = vmatpush3.bf16.xpose.msk.msra.mxu1 %vm7141_vm1, %v7207_v55 }
0x146b   : > { %5062 = vmatprep.subr.msk.bf16.mxu1 %vm7141_vm1, %v7217_v58 }
0x1472   : > { %5065 = vmatpush3.bf16.xpose.msk.msra.mxu1 %vm7141_vm1, %v7217_v58 }
0x1473   : > { %5068 = vmatprep.subr.msk.bf16.mxu1 %vm7141_vm1, %v5066_v46 }
0x1479   : > { %4662 = vmatmul.mubr.msk.f32.vlgmr.msra.gmra.mrb[14].mxu1 %vm1692_vm0, %v2747_v49 }
0x147a   : > { %5071 = vmatpush3.bf16.xpose.msk.msra.mxu1 %vm7141_vm1, %v5066_v46  ;;  %4668 = vmatprep.mubr.msk.f32.mxu1 %vm1692_vm0, %v2745_v14  ;;  %v3104_v14 = vld [vmem:[%s7063_s14 + $0x18] sm:$0xff]  ;;  %v5084_v46 = vpack.c.bf16 %v3106_v43, %v3105_v40  ;;  %v3249_v40 = vld [vmem:[%s7045_s9 + $0x40] sm:$0xff] }
0x147b   : > { %v5080_v20 = vpack.c.bf16 %v3104_v14, %v3103_v62  ;;  %v3250_v62 = vld [vmem:[%s7045_s9 + $0x48] sm:$0xff]  ;;  %v3251_v43 = vld [vmem:[%s7045_s9 + $0x50] sm:$0xff] }
0x1481   : > { %4669 = vmatmul.mubr.msk.f32.vlgmr.msra.gmra.mrb[16].mxu1 %vm1692_vm0, %v2747_v49  ;;  %v3107_v49 = vld [vmem:[%s7063_s14 + $0x30] sm:$0xff] }
0x1482   : > { %3349 = vmatprep.mubr.f32.mxu1 %v6219_v3 }
0x1508   : > { %v4628_v52 = vpop.f32.mrb[12].mxu1 }
0x1509   : > { %v2735_v55 = vpop.f32.mrb[13].mxu1 }
0x150a   : > { %v5478_v15 = vpack.i.bf16 %v4628_v52, %v2735_v55  ;;  %v3108_v52 = vld [vmem:[%s7063_s14 + $0x38] sm:$0xff] }
0x150b   : > { %v5088_v55 = vpack.c.bf16 %v3108_v52, %v3107_v49 }
0x154c   : > { %v4663_v16 = vpop.f32.mrb[14].mxu1 }
0x154d   : > { %2831 = vrot.lane.b32.xlu1 %v4663_v16, %s6220_s26  ;;  %v2818_v58 = vpop.f32.mrb[15].mxu1  ;;  %v3110_v16 = vld [vmem:[%s7063_s14 + $0x48] sm:$0xff] }
0x1551   : > { %2829 = vrot.lane.b32.xlu1 %v2818_v58, %s6220_s26 }
0x1554   : > { %v4670_v17 = vpop.f32.mrb[16].mxu1 }
0x1555   : > { %v2949_v18 = vpop.f32.mrb[17].mxu1 }
0x15bf   : > { %v2832_v23 = vpop.permute.xlu1 %2831 }
0x15c0   : > { %2839 = vrot.lane.b32.xlu0 %v2832_v23, %s6221_s0 }
0x15c3   : > { %v2830_v21 = vpop.permute.xlu1 %2829 }
0x15c4   : > { %2837 = vrot.lane.b32.xlu1 %v2830_v21, %s6221_s0 }
0x1632   : > { %v2840_v24 = vpop.permute.xlu0 %2839 }
0x1633   : > { %v2844_v25 = vsel %vm7266_vm2, %v2840_v24, %v2832_v23  ;;  %v3114_v24 = vld [vmem:[%s7063_s14 + $0x68] sm:$0xff] }
0x1634   : > { %2849 = vrot.lane.b32.xlu0 %v2844_v25, %s6222_s23 }
0x1636   : > { %v2838_v26 = vpop.permute.xlu1 %2837 }
0x1637   : > { %v2843_v28 = vsel %vm7274_vm3, %v2838_v26, %v2830_v21  ;;  %v3113_v21 = vld [vmem:[%s7063_s14 + $0x60] sm:$0xff]  ;;  %v3115_v26 = vld [vmem:[%s7063_s14 + $0x70] sm:$0xff] }
0x1638   : > { %2847 = vrot.lane.b32.xlu1 %v2843_v28, %s6222_s23 }
0x16a6   : > { %v2850_v29 = vpop.permute.xlu0 %2849 }
0x16a7   : > { %v2854_v30 = vsel %vm7281_vm4, %v2850_v29, %v2844_v25  ;;  %v5100_v25 = vpack.c.bf16 %v3114_v24, %v3113_v21  ;;  %v3256_v21 = vld [vmem:[%s7045_s9 + $0x78] sm:$0xff] }
0x16a8   : > { %2859 = vrot.lane.b32.xlu0 %v2854_v30, %s6223_s5 }
0x16aa   : > { %v2848_v32 = vpop.permute.xlu1 %2847 }
0x16ab   : > { %v2853_v34 = vsel %vm7289_vm5, %v2848_v32, %v2843_v28  ;;  %v3116_v28 = vld [vmem:[%s7063_s14 + $0x78] sm:$0xff] }
0x16ac   : > { %2857 = vrot.lane.b32.xlu1 %v2853_v34, %s6223_s5  ;;  %v5104_v29 = vpack.c.bf16 %v3116_v28, %v3115_v26  ;;  %v3255_v26 = vld [vmem:[%s7045_s9 + $0x70] sm:$0xff] }
0x171a   : > { %v2860_v33 = vpop.permute.xlu0 %2859 }
0x171b   : > { %v2864_v38 = vsel %vm7296_vm6, %v2860_v33, %v2854_v30 }
0x171c   : > { %2869 = vrot.lane.b32.xlu0 %v2864_v38, %s6224_s12 }
0x171e   : > { %v2858_v37 = vpop.permute.xlu1 %2857 }
0x171f   : > { %v2863_v39 = vsel %vm7304_vm7, %v2858_v37, %v2853_v34 }
0x1720   : > { %v2950_v27 = vadd.f32 %v2949_v18, %v2863_v39  ;;  %v3112_v18 = vld [vmem:[%s7063_s14 + $0x58] sm:$0xff] }
0x1722   : > { %v2958_v41 = vmul.f32 0.17677669, %v2950_v27 }
0x1724   : > { %v2960_v31 = vsel %vm1988_vm8, %v2958_v41, -inf }
0x1725   : > { %2961 = vmax.xlane.f32.xlu1 %v2960_v31 }
0x1736   : > { %5469 = vrot.lane.b32.xlu1 %v7250_v22, %s6227_s1 }
0x173a   : > { %5479 = vrot.lane.b32.xlu1 %v5478_v15, %s6226_s21  ;;  %v3109_v15 = vld [vmem:[%s7063_s14 + $0x40] sm:$0xff] }
0x173b   : > { %v5092_v58 = vpack.c.bf16 %v3110_v16, %v3109_v15 }
0x178e   : > { %v2870_v45 = vpop.permute.xlu0 %2869 }
0x178f   : > { %v2955_v42 = vadd.f32 %v4670_v17, %v2870_v45  ;;  %v3111_v17 = vld [vmem:[%s7063_s14 + $0x50] sm:$0xff]  ;;  %s8071_s14 = scalar_lea.vmem [#allocation21], %s7015_s16 }
0x1790   : > { %v5096_v23 = vpack.c.bf16 %v3112_v18, %v3111_v17 }
0x1791   : > { %v2959_v51 = vmul.f32 0.17677669, %v2955_v42 }
0x1793   : > { %v2963_v44 = vsel %vm1988_vm8, %v2959_v51, -inf }
0x1794   : > { %2964 = vmax.xlane.f32.xlu0 %v2963_v44 }
0x17b2   : > { %v2962_v47 = vpop.xlane.xlu1 %2961 }
0x17b3   : > { %v2966_v48 = vsub.f32 %v2958_v41, %v2962_v47 }
0x17b5   : > { %v2968_v57 = vmul.f32 1.442695, %v2966_v48 }
0x17b6   : > { %v5470_v50 = vpop.permute.xlu1 %5469 }
0x17b7   : > { %5516 = vpow2.f32 %v2968_v57  ;;  %v5472_v53 = vunpack.i.h.bf16 %v5470_v50  ;;  %v5471_v54 = vunpack.i.l.bf16 %v5470_v50 }
0x17b9   : > { %v5072_v56 = vpack.c.bf16 %v5472_v53, %v5471_v54 }
0x17ba   : > { %v5480_v39 = vpop.permute.xlu1 %5479 }
0x17bb   : > { %5073 = vmatprep.subr.bf16.mxu0 %v5072_v56  ;;  %v5482_v31 = vunpack.i.h.bf16 %v5480_v39  ;;  %v5481_v45 = vunpack.i.l.bf16 %v5480_v39  ;;  %v3264_v39 = vld [vmem:[%s7045_s9 + $0xb8] sm:$0xff] }
0x17bc   : > { %5075 = vmatpush3.bf16.msra.mxu0 %v5072_v56 }
0x17c1   : > { %v5517_v0 = vpop.eup %5516 }
0x17c2   : > { %v2972_v22 = vsel %vm1988_vm8, %v5517_v0, 0.0 }
0x17c3   : > { %2973 = vadd.xlane.f32.xlu0 %v2972_v22 }
0x1821   : > { %v2965_v2 = vpop.xlane.xlu0 %2964 }
0x1822   : > { %v2967_v5 = vsub.f32 %v2959_v51, %v2965_v2  ;;  %v5529_v2 = vld [vmem:[#allocation2] sm:$0xff] }
0x1824   : > { %v2970_v4 = vmul.f32 1.442695, %v2967_v5 }
0x1826   : > { %5518 = vpow2.f32 %v2970_v4  ;;  %v3242_v4 = vld [vmem:[%s7045_s9 + $0x8] sm:$0xff] }
0x1830   : > { %v5519_v10 = vpop.eup %5518 }
0x1831   : > { %v2975_v6 = vsel %vm1988_vm8, %v5519_v10, 0.0 }
0x1832   : > { %2976 = vadd.xlane.f32.xlu0 %v2975_v6  ;;  %v3241_v6 = vld [vmem:[%s7045_s9] sm:$0xff] }
0x1848   : > { %5474 = vrot.lane.b32.xlu0 %v5473_v63, %s6227_s1  ;;  %v5076_v63 = vpack.c.bf16 %v3102_v59, %v3101_v19  ;;  %v3245_v19 = vld [vmem:[%s7045_s9 + $0x20] sm:$0xff]  ;;  %v3247_v59 = vld [vmem:[%s7045_s9 + $0x30] sm:$0xff] }
0x1849   : > { %v5114_v14 = vpack.c.bf16 %v3247_v59, %v3245_v19  ;;  %v3386_v19 = vld [vmem:[%s7047_s8 + $0xa0] sm:$0xff]  ;;  %v3387_v59 = vld [vmem:[%s7047_s8 + $0xa8] sm:$0xff] }
0x184a   : > { %5077 = vmatprep.subr.bf16.mxu0 %v5076_v63 }
0x1850   : > { %v2974_v7 = vpop.xlane.xlu0 %2973 }
0x1851   : > { %5520 = vrcp.f32 %v2974_v7 }
0x185b   : > { %v5521_v8 = vpop.eup %5520 }
0x185c   : > { %v2980_v9 = vmul.f32 %v5521_v8, %v5517_v0  ;;  %v5528_v0 = vld [vmem:[#allocation2 + $0x8] sm:$0xff]  ;;  %v3243_v8 = vld [vmem:[%s7045_s9 + $0x10] sm:$0xff] }
0x185e   : > { %4675 = vmatprep.mubr.msk.f32.mxu0 %vm1988_vm8, %v2980_v9  ;;  %v3246_v9 = vld [vmem:[%s7045_s9 + $0x28] sm:$0xff] }
0x18bf   : > { %v2977_v11 = vpop.xlane.xlu0 %2976 }
0x18c0   : > { %5522 = vrcp.f32 %v2977_v11  ;;  %v3248_v11 = vld [vmem:[%s7045_s9 + $0x38] sm:$0xff] }
0x18c3   : > { %v5475_v33 = vpop.permute.xlu0 %5474 }
0x18c4   : > { %v5477_v38 = vunpack.i.h.bf16 %v5475_v33  ;;  %v5476_v37 = vunpack.i.l.bf16 %v5475_v33  ;;  %v3259_v33 = vld [vmem:[%s7045_s9 + $0x90] sm:$0xff] }
0x18c6   : > { %v3094_v27 = vsel %vm1692_vm0, %v7368_v35, %v5477_v38  ;;  %v3093_v41 = vsel %vm1692_vm0, %v7370_v36, %v5476_v37  ;;  %v4177_v35 = vld [vmem:[%s8071_s14] ss:$0 sm:$0xff]  ;;  %v3262_v37 = vld [vmem:[%s7045_s9 + $0xa8] sm:$0xff] }
0x18c7   : > { %v3096_v47 = vsel %vm3095_vm9, %v3093_v41, %v5481_v45  ;;  %v3097_v48 = vsel %vm3095_vm9, %v3094_v27, %v5482_v31  ;;  %v5128_v27 = vpack.c.bf16 %v3264_v39, %v3262_v37  ;;  %v3261_v41 = vld [vmem:[%s7045_s9 + $0xa0] sm:$0xff]  ;;  %v3263_v31 = vld [vmem:[%s7045_s9 + $0xb0] sm:$0xff] }
0x18c8   : > { %v5130_v45 = vpack.c.bf16 %v3263_v31, %v3261_v41 }
0x18ca   : > { %v5523_v12 = vpop.eup %5522 }
0x18cb   : > { %v2981_v13 = vmul.f32 %v5523_v12, %v5519_v10  ;;  %v3244_v10 = vld [vmem:[%s7045_s9 + $0x18] sm:$0xff]  ;;  %v5110_v12 = vpack.c.bf16 %v3243_v8, %v3241_v6  ;;  %v3367_v6 = vld [vmem:[%s7047_s8 + $0x8] sm:$0xff] }
0x18cc   : > { %v5108_v7 = vpack.c.bf16 %v3244_v10, %v3242_v4  ;;  %v3366_v4 = vld [vmem:[%s7047_s8] sm:$0xff]  ;;  %v3385_v8 = vld [vmem:[%s7047_s8 + $0x98] sm:$0xff] }
0x18cd   : > { %4676 = vmatmul.mubr.msk.f32.vlgmr.msra.gmra.mrb[10].mxu0 %vm1988_vm8, %v2981_v13  ;;  %v5112_v13 = vpack.c.bf16 %v3248_v11, %v3246_v9  ;;  %v5142_v9 = vpack.c.bf16 %v3367_v6, %v3366_v4  ;;  %v3397_v4 = vld [vmem:[%s7047_s8 + $0xf8] sm:$0xff]  ;;  %v3380_v6 = vld [vmem:[%s7047_s8 + $0x70] sm:$0xff] }
0x18ce   : > { %5079 = vmatpush3.bf16.msra.mxu0 %v5076_v63  ;;  %5109 = vmatprep.subr.bf16.mxu1 %v5108_v7  ;;  %v3252_v63 = vld [vmem:[%s7045_s9 + $0x58] sm:$0xff]  ;;  %v3384_v7 = vld [vmem:[%s7047_s8 + $0x90] sm:$0xff] }
0x18cf   : > { %5081 = vmatprep.subr.bf16.mxu0 %v5080_v20  ;;  %5111 = vmatpush1.bf16.msra.mxu1 %v5110_v12  ;;  %v5144_v11 = vpack.c.bf16 %v3385_v8, %v3384_v7  ;;  %v3368_v12 = vld [vmem:[%s7047_s8 + $0x10] sm:$0xff]  ;;  %v3381_v7 = vld [vmem:[%s7047_s8 + $0x78] sm:$0xff] }
0x18d0   : > { %5113 = vmatprep.subr.bf16.mxu1 %v5112_v13  ;;  %v3369_v13 = vld [vmem:[%s7047_s8 + $0x18] sm:$0xff]  ;;  %v5170_v8 = vpack.c.bf16 %v3381_v7, %v3380_v6 }
0x18d2   : > { %5083 = vmatpush3.bf16.msra.mxu0 %v5080_v20  ;;  %v5116_v20 = vpack.c.bf16 %v3252_v63, %v3250_v62  ;;  %v5146_v62 = vpack.c.bf16 %v3369_v13, %v3368_v12  ;;  %v5148_v63 = vpack.c.bf16 %v3387_v59, %v3386_v19 }
0x18d3   : > { %5085 = vmatprep.subr.bf16.mxu0 %v5084_v46  ;;  %5115 = vmatpush1.bf16.msra.mxu1 %v5114_v14  ;;  %v3370_v14 = vld [vmem:[%s7047_s8 + $0x20] sm:$0xff] }
0x18d4   : > { %5117 = vmatprep.subr.bf16.mxu1 %v5116_v20  ;;  %v3371_v20 = vld [vmem:[%s7047_s8 + $0x28] sm:$0xff] }
0x18d6   : > { %5087 = vmatpush3.bf16.msra.mxu0 %v5084_v46  ;;  %v5118_v46 = vpack.c.bf16 %v3251_v43, %v3249_v40  ;;  %v3388_v40 = vld [vmem:[%s7047_s8 + $0xb0] sm:$0xff]  ;;  %v3389_v43 = vld [vmem:[%s7047_s8 + $0xb8] sm:$0xff] }
0x18d7   : > { %5089 = vmatprep.subr.bf16.mxu0 %v5088_v55 }
0x18d8   : > { %5119 = vmatpush1.bf16.msra.mxu1 %v5118_v46  ;;  %v5150_v46 = vpack.c.bf16 %v3371_v20, %v3370_v14 }
0x18da   : > { %5091 = vmatpush3.bf16.msra.mxu0 %v5088_v55 }
0x18db   : > { %5093 = vmatprep.subr.bf16.mxu0 %v5092_v58 }
0x18de   : > { %5095 = vmatpush3.bf16.msra.mxu0 %v5092_v58 }
0x18df   : > { %5097 = vmatprep.subr.bf16.mxu0 %v5096_v23 }
0x18e2   : > { %5099 = vmatpush3.bf16.msra.mxu0 %v5096_v23  ;;  %v3254_v23 = vld [vmem:[%s7045_s9 + $0x68] sm:$0xff] }
0x18e3   : > { %5101 = vmatprep.subr.bf16.mxu0 %v5100_v25  ;;  %v5120_v24 = vpack.c.bf16 %v3256_v21, %v3254_v23  ;;  %v3374_v21 = vld [vmem:[%s7047_s8 + $0x40] sm:$0xff] }
0x18e5   : > { %5121 = vmatprep.subr.bf16.mxu1 %v5120_v24  ;;  %v3375_v24 = vld [vmem:[%s7047_s8 + $0x48] sm:$0xff] }
0x18e6   : > { %5103 = vmatpush3.bf16.msra.mxu0 %v5100_v25  ;;  %v3253_v25 = vld [vmem:[%s7045_s9 + $0x60] sm:$0xff] }
0x18e7   : > { %5105 = vmatprep.subr.bf16.mxu0 %v5104_v29  ;;  %v5122_v28 = vpack.c.bf16 %v3255_v26, %v3253_v25  ;;  %v3392_v25 = vld [vmem:[%s7047_s8 + $0xd0] sm:$0xff]  ;;  %v3393_v26 = vld [vmem:[%s7047_s8 + $0xd8] sm:$0xff] }
0x18e9   : > { %5123 = vmatpush1.bf16.msra.mxu1 %v5122_v28  ;;  %v5158_v28 = vpack.c.bf16 %v3375_v24, %v3374_v21 }
0x18ea   : > { %5107 = vmatpush3.bf16.msra.mxu0 %v5104_v29  ;;  %v3258_v29 = vld [vmem:[%s7045_s9 + $0x88] sm:$0xff] }
0x19a0   : > { %v4677_v30 = vpop.f32.mrb[10].mxu0 }
0x19a1   : > { %v3060_v32 = vpop.f32.mrb[11].mxu0 }
0x19a2   : > { %v5483_v34 = vpack.i.bf16 %v4677_v30, %v3060_v32  ;;  %v3260_v30 = vld [vmem:[%s7045_s9 + $0x98] sm:$0xff] }
0x19a3   : > { %v5124_v32 = vpack.c.bf16 %v3260_v30, %v3258_v29  ;;  %v5160_v29 = vpack.c.bf16 %v3393_v26, %v3392_v25  ;;  %v3376_v30 = vld [vmem:[%s7047_s8 + $0x50] sm:$0xff] }
0x19a4   : > { %5484 = vrot.lane.b32.xlu1 %v5483_v34, %s6225_s11  ;;  %v3257_v34 = vld [vmem:[%s7045_s9 + $0x80] sm:$0xff] }
0x19a5   : > { %v5126_v38 = vpack.c.bf16 %v3259_v33, %v3257_v34  ;;  %5125 = vmatprep.subr.bf16.mxu1 %v5124_v32  ;;  %v3377_v32 = vld [vmem:[%s7047_s8 + $0x58] sm:$0xff]  ;;  %v3394_v34 = vld [vmem:[%s7047_s8 + $0xe0] sm:$0xff]  ;;  %v3395_v33 = vld [vmem:[%s7047_s8 + $0xe8] sm:$0xff] }
0x19a6   : > { %v5164_v37 = vpack.c.bf16 %v3395_v33, %v3394_v34 }
0x19a7   : > { %5127 = vmatpush1.bf16.msra.mxu1 %v5126_v38  ;;  %v5162_v38 = vpack.c.bf16 %v3377_v32, %v3376_v30 }
0x19a8   : > { %5129 = vmatprep.subr.bf16.mxu1 %v5128_v27 }
0x19ab   : > { %5131 = vmatpush1.bf16.msra.mxu1 %v5130_v45 }
0x1a16   : > { %v5485_v42 = vpop.permute.xlu1 %5484 }
0x1a17   : > { %v5487_v51 = vunpack.i.h.bf16 %v5485_v42  ;;  %v5486_v44 = vunpack.i.l.bf16 %v5485_v42  ;;  %v3266_v42 = vld [vmem:[%s7045_s9 + $0xc8] sm:$0xff] }
0x1a19   : > { %v3099_v57 = vsel %vm3098_vm10, %v3096_v47, %v5486_v44  ;;  %v3100_v50 = vsel %vm3098_vm10, %v3097_v48, %v5487_v51  ;;  %v3268_v51 = vld [vmem:[%s7045_s9 + $0xd8] sm:$0xff]  ;;  %v3265_v44 = vld [vmem:[%s7045_s9 + $0xc0] sm:$0xff]  ;;  %v3267_v48 = vld [vmem:[%s7045_s9 + $0xd0] sm:$0xff] }
0x1a1a   : > { %4710 = vmatprep.mubr.f32.mxu0 %v3099_v57  ;;  %v5132_v47 = vpack.c.bf16 %v3268_v51, %v3266_v42  ;;  %v3270_v57 = vld [vmem:[%s7045_s9 + $0xe8] sm:$0xff] }
0x1a1b   : > { %4711 = vmatmul.mubr.f32.vlgmr.msra.gmra.mrb[12].mxu0 %v3100_v50  ;;  %v3272_v50 = vld [vmem:[%s7045_s9 + $0xf8] sm:$0xff] }
0x1a1c   : > { %5133 = vmatprep.subr.bf16.mxu1 %v5132_v47 }
0x1aee   : > { %v4712_v36 = vpop.f32.mrb[12].mxu0 }
0x1aef   : > { %v3196_v53 = vadd.f32 %v4712_v36, %v4177_v35  ;;  %v3190_v54 = vpop.f32.mrb[13].mxu0  ;;  %v5136_v36 = vpack.c.bf16 %v3272_v50, %v3270_v57 }
0x1af0   : > { %v3191_v56 = vadd.f32 %v4177_v35, %v3190_v54  ;;  %v5134_v35 = vpack.c.bf16 %v3267_v48, %v3265_v44  ;;  %v3271_v54 = vld [vmem:[%s7045_s9 + $0xf0] sm:$0xff] }
0x1af1   : > { %v7625_v22 = vadd.f32 %v5528_v0, %v3196_v53  ;;  %v3269_v53 = vld [vmem:[%s7045_s9 + $0xe0] sm:$0xff]  ;;  %s8072_s9 = scalar_lea.vmem [#allocation23], %s7015_s16  ;;  %v4179_v48 = vld [vmem:[%s8073_s30] ss:$0 sm:$0xff] }
0x1af2   : > { %v7627_v5 = vadd.f32 %v5529_v2, %v3191_v56  ;;  %5135 = vmatpush1.bf16.msra.mxu1 %v5134_v35  ;;  %v5138_v56 = vpack.c.bf16 %v3271_v54, %v3269_v53  ;;  %v3382_v0 = vld [vmem:[%s7047_s8 + $0x80] sm:$0xff]  ;;  %v3383_v2 = vld [vmem:[%s7047_s8 + $0x88] sm:$0xff]  ;;  %v4178_v44 = vld [vmem:[%s8072_s9] ss:$0 sm:$0xff] }
0x1af3   : > { %3205 = vadd.xlane.f32.xlu0 %v7625_v22  ;;  %5137 = vmatprep.subr.bf16.mxu1 %v5136_v36  ;;  %v5140_v10 = vpack.c.bf16 %v3383_v2, %v3382_v0  ;;  %v3379_v0 = vld [vmem:[%s7047_s8 + $0x68] sm:$0xff]  ;;  %v3396_v2 = vld [vmem:[%s7047_s8 + $0xf0] sm:$0xff] }
0x1af4   : > { %3203 = vadd.xlane.f32.xlu1 %v7627_v5 }
0x1af5   : > { %5141 = vmatprep.subr.bf16.mxu0 %v5140_v10  ;;  %v5168_v10 = vpack.c.bf16 %v3397_v4, %v3396_v2 }
0x1af6   : > { %5139 = vmatpush1.bf16.msra.mxu1 %v5138_v56  ;;  %5143 = vmatpush3.bf16.msra.mxu0 %v5142_v9  ;;  %v3378_v56 = vld [vmem:[%s7047_s8 + $0x60] sm:$0xff] }
0x1af7   : > { %5145 = vmatprep.subr.bf16.mxu0 %v5144_v11 }
0x1afa   : > { %5147 = vmatpush3.bf16.msra.mxu0 %v5146_v62 }
0x1afb   : > { %5149 = vmatprep.subr.bf16.mxu0 %v5148_v63 }
0x1afe   : > { %5151 = vmatpush3.bf16.msra.mxu0 %v5150_v46 }
0x1b80   : > { %v3206_v49 = vpop.xlane.xlu0 %3205 }
0x1b81   : > { %v3204_v52 = vpop.xlane.xlu1 %3203  ;;  %v3208_v55 = vmul.f32 0.0078125, %v3206_v49  ;;  %v5152_v49 = vpack.c.bf16 %v3389_v43, %v3388_v40 }
0x1b82   : > { %v3207_v15 = vmul.f32 0.0078125, %v3204_v52  ;;  %v3372_v52 = vld [vmem:[%s7047_s8 + $0x30] sm:$0xff] }
0x1b83   : > { %v7647_v58 = vsub.f32 %v7625_v22, %v3208_v55  ;;  %v3373_v55 = vld [vmem:[%s7047_s8 + $0x38] sm:$0xff]  ;;  %5153 = vmatprep.subr.bf16.mxu0 %v5152_v49  ;;  %v4180_v49 = vld [vmem:[%s1112_s19] ss:$0 sm:$0xff] }
0x1b84   : > { %v7644_v16 = vsub.f32 %v7627_v5, %v3207_v15  ;;  %v3390_v15 = vld [vmem:[%s7047_s8 + $0xc0] sm:$0xff] }
0x1b85   : > { %v3212_v18 = vmul.f32 %v7647_v58, %v7647_v58 }
0x1b86   : > { %v3211_v17 = vmul.f32 %v7644_v16, %v7644_v16 }
0x1b88   : > { %3213 = vadd.xlane.f32.xlu0 %v3211_v17  ;;  %v3391_v17 = vld [vmem:[%s7047_s8 + $0xc8] sm:$0xff] }
0x1b89   : > { %v5156_v23 = vpack.c.bf16 %v3391_v17, %v3390_v15 }
0x1b8c   : > { %3215 = vadd.xlane.f32.xlu0 %v3212_v18  ;;  %v5154_v18 = vpack.c.bf16 %v3373_v55, %v3372_v52 }
0x1b8e   : > { %5155 = vmatpush3.bf16.msra.mxu0 %v5154_v18 }
0x1b8f   : > { %5157 = vmatprep.subr.bf16.mxu0 %v5156_v23 }
0x1b92   : > { %5159 = vmatpush3.bf16.msra.mxu0 %v5158_v28 }
0x1b93   : > { %5161 = vmatprep.subr.bf16.mxu0 %v5160_v29 }
0x1b96   : > { %5163 = vmatpush3.bf16.msra.mxu0 %v5162_v38 }
0x1b97   : > { %5165 = vmatprep.subr.bf16.mxu0 %v5164_v37 }
0x1c15   : > { %v3214_v39 = vpop.xlane.xlu0 %3213 }
0x1c16   : > { %v3217_v27 = vmul.f32 0.0078125, %v3214_v39 }
0x1c18   : > { %v3219_v41 = vadd.f32 1e-12, %v3217_v27 }
0x1c19   : > { %v3216_v31 = vpop.xlane.xlu0 %3215 }
0x1c1a   : > { %5524 = vrsqrt.f32 %v3219_v41  ;;  %v3218_v45 = vmul.f32 0.0078125, %v3216_v31 }
0x1c1c   : > { %v3220_v42 = vadd.f32 1e-12, %v3218_v45 }
0x1c1e   : > { %5526 = vrsqrt.f32 %v3220_v42 }
0x1c24   : > { %v5525_v51 = vpop.eup %5524 }
0x1c25   : > { %v3223_v47 = vmul.f32 %v5525_v51, %v7644_v16  ;;  %v5166_v16 = vpack.c.bf16 %v3379_v0, %v3378_v56 }
0x1c27   : > { %v3231_v57 = vmul.f32 %v4178_v44, %v3223_v47  ;;  %5167 = vmatpush3.bf16.msra.mxu0 %v5166_v16 }
0x1c28   : > { %v5527_v50 = vpop.eup %5526  ;;  %5169 = vmatprep.subr.bf16.mxu0 %v5168_v10 }
0x1c29   : > { %v3239_v35 = vadd.f32 %v4179_v48, %v3231_v57  ;;  %v3224_v36 = vmul.f32 %v5527_v50, %v7647_v58  ;;  %v3273_v58 = vld [vmem:[%s7068_s17] sm:$0x3]  ;;  %s8074_s17 = sld [smem:[#allocation44_spill]] }
0x1c2a   : > { %v3278_v9 = vrot.slane %v3273_v58, %v1511_v61 }
0x1c2b   : > { %3350 = vmatmul.mubr.f32.vlgmr.msra.gmra.mrb[18].mxu1 %v3239_v35  ;;  %v3232_v53 = vmul.f32 %v4178_v44, %v3224_v36  ;;  %5171 = vmatpush3.bf16.msra.mxu0 %v5170_v8 }
0x1c2c   : > { %3355 = vmatprep.mubr.f32.mxu1 %v6219_v3  ;;  %v3282_v3 = vrot.slane %v3273_v58, %v1515_v1 }
0x1c2d   : > { %v3240_v54 = vadd.f32 %v4179_v48, %v3232_v53 }
0x1c2f   : > { %3356 = vmatmul.mubr.f32.gmra.mrb[20].mxu1 %v3240_v54  ;;  %p4181_p11 = scmp.ne.s32.totalorder %s8074_s17, 1 }
0x1c30   : > { %s8075_s16 = sld [smem:[#allocation78_spill]] (!%p4181_p11)  ;;  %s8076_s0 = sld [smem:[#allocation76_spill]] (!%p4181_p11) }
0x1c31   : > { %s8077_s11 = sld [smem:[#allocation77_spill]] (!%p4181_p11)  ;;  %s8078_s14 = sld [smem:[#allocation79_spill]] (!%p4181_p11) }
0x1c36   : > { %v3530_v24 = vld [vmem:[%s8075_s16] sm:$0xff] (!%p4181_p11)  ;;  %v3532_v25 = vld [vmem:[%s8075_s16 + $0x10] sm:$0xff] (!%p4181_p11)  ;;  %v3533_v26 = vld [vmem:[%s8075_s16 + $0x18] sm:$0xff] (!%p4181_p11) }
0x1c37   : > { %v5176_v28 = vpack.c.bf16 (!%p4181_p11), %v3533_v26, %v3532_v25  ;;  %v3534_v27 = vld [vmem:[%s8075_s16 + $0x20] sm:$0xff] (!%p4181_p11)  ;;  %v3535_v41 = vld [vmem:[%s8075_s16 + $0x28] sm:$0xff] (!%p4181_p11)  ;;  %v3536_v45 = vld [vmem:[%s8075_s16 + $0x30] sm:$0xff] (!%p4181_p11) }
0x1c38   : > { %v5180_v31 = vpack.c.bf16 (!%p4181_p11), %v3535_v41, %v3534_v27  ;;  %v3537_v42 = vld [vmem:[%s8075_s16 + $0x38] sm:$0xff] (!%p4181_p11)  ;;  %v3538_v44 = vld [vmem:[%s8075_s16 + $0x40] sm:$0xff] (!%p4181_p11)  ;;  %v3539_v47 = vld [vmem:[%s8075_s16 + $0x48] sm:$0xff] (!%p4181_p11) }
0x1c39   : > { %v5184_v51 = vpack.c.bf16 (!%p4181_p11), %v3537_v42, %v3536_v45  ;;  %v5188_v48 = vpack.c.bf16 (!%p4181_p11), %v3539_v47, %v3538_v44  ;;  %v3540_v57 = vld [vmem:[%s8075_s16 + $0x50] sm:$0xff] (!%p4181_p11)  ;;  %v3541_v50 = vld [vmem:[%s8075_s16 + $0x58] sm:$0xff] (!%p4181_p11)  ;;  %v3542_v35 = vld [vmem:[%s8075_s16 + $0x60] sm:$0xff] (!%p4181_p11) }
0x1c3a   : > { %v5192_v36 = vpack.c.bf16 (!%p4181_p11), %v3541_v50, %v3540_v57  ;;  %v3543_v53 = vld [vmem:[%s8075_s16 + $0x68] sm:$0xff] (!%p4181_p11)  ;;  %v3544_v56 = vld [vmem:[%s8075_s16 + $0x70] sm:$0xff] (!%p4181_p11)  ;;  %v3545_v0 = vld [vmem:[%s8075_s16 + $0x78] sm:$0xff] (!%p4181_p11) }
0x1c3b   : > { %v5196_v54 = vpack.c.bf16 (!%p4181_p11), %v3543_v53, %v3542_v35  ;;  %v5200_v16 = vpack.c.bf16 (!%p4181_p11), %v3545_v0, %v3544_v56 }
0x1cfe   : > { %v3351_v11 = vpop.f32.mrb[18].mxu1 }
0x1cff   : > { %v3352_v12 = vadd.f32 %v3351_v11, %v3278_v9  ;;  %v3353_v13 = vpop.f32.mrb[19].mxu1  ;;  %v4183_v11 = vld [vmem:[%s8077_s11] ss:$0 sm:$0xff] (!%p4181_p11) }
0x1d00   : > { %v3354_v19 = vadd.f32 %v3353_v13, %v3282_v3 }
0x1d01   : > { %v3362_v63 = vmax.f32 %v3352_v12, 0.0 }
0x1d02   : > { %v3363_v59 = vmax.f32 %v3354_v19, 0.0  ;;  %v3357_v62 = vpop.f32.mrb[20].mxu1 }
0x1d03   : > { %v3358_v14 = vadd.f32 %v3357_v62, %v3278_v9  ;;  %v3359_v20 = vpop.f32.mrb[21].mxu1  ;;  %v4182_v9 = vld [vmem:[%s8076_s0] ss:$0 sm:$0xff] (!%p4181_p11) }
0x1d04   : > { %v3360_v40 = vadd.f32 %v3359_v20, %v3282_v3  ;;  %3462 = vmatprep.mubr.f32.mxu0 %v3363_v59 }
0x1d05   : > { %3463 = vmatmul.mubr.f32.vlgmr.msra.gmra.mrb[14].mxu0 %v3362_v63  ;;  %v3364_v46 = vmax.f32 %v3358_v14, 0.0  ;;  %v4184_v14 = vld [vmem:[%s8078_s14] ss:$0 sm:$0xff] (!%p4181_p11) }
0x1d06   : > { %v3365_v43 = vmax.f32 %v3360_v40, 0.0 }
0x1d08   : > { %3467 = vmatprep.mubr.f32.mxu0 %v3365_v43 }
0x1d09   : > { %3468 = vmatmul.mubr.f32.gmra.mrb[16].mxu0 %v3364_v46 }
0x1dd8   : > { %v4388_v61 = vpop.f32.mrb[14].mxu0 }
0x1dd9   : > { %v4389_v60 = vpop.f32.mrb[15].mxu0 }
0x1dda   : > { %v4390_v1 = vadd.f32 %v4389_v60, %v4388_v61 }
0x1ddc   : > { %v3473_v52 = vadd.f32 %v4390_v1, %v7627_v5  ;;  %v4391_v55 = vpop.f32.mrb[16].mxu0  ;;  %v3531_v5 = vld [vmem:[%s8075_s16 + $0x8] sm:$0xff] (!%p4181_p11) }
0x1ddd   : > { %v4392_v15 = vpop.f32.mrb[17].mxu0 }
0x1dde   : > { %v3482_v17 = vadd.f32 %v4180_v49, %v3473_v52  ;;  %v4393_v18 = vadd.f32 %v4392_v15, %v4391_v55  ;;  %3489 = sbr.rel (%p4181_p11) target bundleno = 8205 (0x200d), region = 192 }
0x1de0   : > { %3484 = vst [vmem:[#allocation2] sm:$0xff] %v3482_v17  ;;  %v3474_v23 = vadd.f32 %v4393_v18, %v7625_v22  ;;  %3492 = vadd.xlane.f32.xlu0 (!%p4181_p11), %v3482_v17  ;;  %v5172_v22 = vpack.c.bf16 (!%p4181_p11), %v3531_v5, %v3530_v24 }
0x1de2   : > { %v3483_v21 = vadd.f32 %v4180_v49, %v3474_v23  ;;  %5173 = vmatprep.subr.bf16.mxu0 (!%p4181_p11), %v5172_v22 }
0x1de3   : > { %5175 = vmatpush3.bf16.msra.mxu0 (!%p4181_p11), %v5172_v22 }
0x1de4   : > { %3485 = vst [vmem:[#allocation2 + $0x8] sm:$0xff] %v3483_v21  ;;  %3494 = vadd.xlane.f32.xlu0 (!%p4181_p11), %v3483_v21  ;;  %5177 = vmatprep.subr.bf16.mxu0 (!%p4181_p11), %v5176_v28 }
0x1de7   : > { %5179 = vmatpush3.bf16.msra.mxu0 %v5176_v28 }
0x1de8   : > { %5181 = vmatprep.subr.bf16.mxu0 %v5180_v31 }
0x1deb   : > { %5183 = vmatpush3.bf16.msra.mxu0 %v5180_v31 }
0x1dec   : > { %5185 = vmatprep.subr.bf16.mxu0 %v5184_v51 }
0x1def   : > { %5187 = vmatpush3.bf16.msra.mxu0 %v5184_v51 }
0x1df0   : > { %5189 = vmatprep.subr.bf16.mxu0 %v5188_v48 }
0x1df3   : > { %5191 = vmatpush3.bf16.msra.mxu0 %v5188_v48 }
0x1df4   : > { %5193 = vmatprep.subr.bf16.mxu0 %v5192_v36 }
0x1df7   : > { %5195 = vmatpush3.bf16.msra.mxu0 %v5192_v36 }
0x1df8   : > { %5197 = vmatprep.subr.bf16.mxu0 %v5196_v54 }
0x1dfb   : > { %5199 = vmatpush3.bf16.msra.mxu0 %v5196_v54 }
0x1dfc   : > { %5201 = vmatprep.subr.bf16.mxu0 %v5200_v16 }
0x1dff   : > { %5203 = vmatpush3.bf16.msra.mxu0 %v5200_v16 }
0x1e6d   : > { %v3493_v29 = vpop.xlane.xlu0 %3492 }
0x1e6e   : > { %v3496_v30 = vmul.f32 0.0078125, %v3493_v29 }
0x1e70   : > { %v3498_v32 = vsub.f32 %v3482_v17, %v3496_v30 }
0x1e71   : > { %v3495_v34 = vpop.xlane.xlu0 %3494 }
0x1e72   : > { %v3497_v33 = vmul.f32 0.0078125, %v3495_v34  ;;  %v3500_v38 = vmul.f32 %v3498_v32, %v3498_v32 }
0x1e74   : > { %v3499_v37 = vsub.f32 %v3483_v21, %v3497_v33  ;;  %3502 = vadd.xlane.f32.xlu1 %v3500_v38 }
0x1e76   : > { %v3501_v39 = vmul.f32 %v3499_v37, %v3499_v37 }
0x1e78   : > { %3504 = vadd.xlane.f32.xlu1 %v3501_v39 }
0x1f01   : > { %v3503_v2 = vpop.xlane.xlu1 %3502 }
0x1f02   : > { %v3506_v4 = vmul.f32 0.0078125, %v3503_v2 }
0x1f04   : > { %v3508_v10 = vadd.f32 1e-12, %v3506_v4 }
0x1f05   : > { %v3505_v6 = vpop.xlane.xlu1 %3504 }
0x1f06   : > { %5530 = vrsqrt.f32 %v3508_v10  ;;  %v3507_v7 = vmul.f32 0.0078125, %v3505_v6 }
0x1f08   : > { %v3509_v8 = vadd.f32 1e-12, %v3507_v7 }
0x1f0a   : > { %5532 = vrsqrt.f32 %v3509_v8 }
0x1f10   : > { %v5531_v58 = vpop.eup %5530 }
0x1f11   : > { %v3512_v3 = vmul.f32 %v5531_v58, %v3498_v32 }
0x1f13   : > { %v3520_v12 = vmul.f32 %v4182_v9, %v3512_v3 }
0x1f14   : > { %v5533_v13 = vpop.eup %5532 }
0x1f15   : > { %v3513_v19 = vmul.f32 %v5533_v13, %v3499_v37  ;;  %v3528_v59 = vadd.f32 %v4183_v11, %v3520_v12 }
0x1f17   : > { %v3521_v62 = vmul.f32 %v4182_v9, %v3513_v19  ;;  %4745 = vmatprep.mubr.f32.mxu0 %v3528_v59 }
0x1f19   : > { %v3529_v63 = vadd.f32 %v4183_v11, %v3521_v62 }
0x1f1b   : > { %4746 = vmatmul.mubr.f32.vlgmr.msra.gmra.mrb[0].mxu0 %v3529_v63 }
0x1fee   : > { %v4747_v20 = vpop.f32.mrb[0].mxu0 }
0x1fef   : > { %v3625_v40 = vadd.f32 %v4747_v20, %v4184_v14  ;;  %v3619_v43 = vpop.f32.mrb[1].mxu0 }
0x1ff0   : > { %v3620_v46 = vadd.f32 %v4184_v14, %v3619_v43 }
0x1ff1   : > { %v4186_v61 = vmul.f32 -1.442695, %v3625_v40 }
0x1ff2   : > { %v4185_v60 = vmul.f32 -1.442695, %v3620_v46 }
0x1ff3   : > { %5534 = vpow2.f32 %v4186_v61 }
0x1ff4   : > { %5536 = vpow2.f32 %v4185_v60 }
0x1ffd   : > { %v5535_v1 = vpop.eup %5534 }
0x1ffe   : > { %v5537_v49 = vpop.eup %5536  ;;  %v3635_v52 = vadd.f32 1.0, %v5535_v1 }
0x1fff   : > { %v3634_v55 = vadd.f32 1.0, %v5537_v49 }
0x2000   : > { %5538 = vrcp.f32 %v3635_v52 }
0x2001   : > { %5540 = vrcp.f32 %v3634_v55 }
0x200a   : > { %v5539_v15 = vpop.eup %5538 }
0x200b   : > { %v5541_v17 = vpop.eup %5540  ;;  %3641 = vst [vmem:[%s7073_s7 + $0x8] sm:$0xff] %v5539_v15 }
0x200c   : > { %3640 = vst [vmem:[%s7073_s7] sm:$0xff] %v5541_v17 }
0x200d PF: > { %s8079_s9 = sld [smem:[#allocation45_spill]]  ;;  %s8080_s25 = sld [smem:[#allocation80_spill]] }
0x200e   : > { %s3656_s4 = sshll.u32 %s7073_s7, 4  ;;  %s3643_s2 = scalar_lea.sflag [#allocation5], %s6989_s22  ;;  %s7788_s4 = int_to_ptr.vmem [resolvable:$true] %s3656_s4 }
0x200f   : > { %s6040_s27 = scalar_lea.vmem %s7788_s4, 256  ;;  %p8081_p7 = scmp.ne.s32.totalorder %s8014_s24, 0 }
0x2010   : > { %p6041_p5 = scmp.ne.s32.totalorder %s7788_s4, %s6040_s27  ;;  %s6228_s13 = smov [#allocation30]  }
0x2011   : > { %s6044_s29 = sshll.u32 %s6228_s13, 4  ;;  %s6045_s29 = int_to_ptr.vmem [resolvable:$false] %s6044_s29 }
0x2012   : > { %p6042_p4 = pnand %p6041_p5, %p8081_p7  ;;  %s6046_s10 = scalar_lea.vmem %s6045_s29, 512 }
0x2013   : > { %s4197_s30 = sshll.u32 %s8079_s9, 8  ;;  %p6047_p10 = scmp.lt.s32.totalorder %s7788_s4, %s6045_s29 }
0x2014   : > { %s7785_s19 = scalar_lea.hbm %s8080_s25, %s4197_s30  ;;  %p6043_p1 = pneg %p6042_p4 }
0x2015   : > { %p6048_p13 = scmp.lt.s32.totalorder %s6046_s10, %s6040_s27 }
0x2017   : > { %p6049_p0 = por %p6048_p13, %p6047_p10 }
0x2019   : > { %p6050_p3 = pnand %p6049_p0, %p6043_p1 }
0x201b   : > { %6053 = shalt.err (!%p6050_p3)
}
0x201c   : > { %s6054_s7 = scalar_lea.hbm %s7785_s19, 256  ;;  %s6058_s26 = scalar_lea.hbm %s8080_s25, 512 }
0x201d   : > { %p6055_p8 = scmp.ne.s32.totalorder %s7785_s19, %s6054_s7  ;;  %p6059_p6 = scmp.lt.u32.totalorder %s7785_s19, %s8080_s25 }
0x201e   : > { %p6060_p9 = scmp.lt.u32.totalorder %s6058_s26, %s6054_s7  ;;  %p6062_p5 = scmp.lt.u32.totalorder %s6054_s7, %s7785_s19 }
0x201f   : > { %p6056_p2 = pnand %p6055_p8, %p8081_p7 }
0x2020   : > { %p6061_p11 = por %p6060_p9, %p6059_p6 }
0x2021   : > { %p6057_p12 = pneg %p6056_p2 }
0x2022   : > { %p6063_p4 = por %p6062_p5, %p6061_p11 }
0x2024   : > { %p6064_p1 = pnand %p6063_p4, %p6057_p12 }
0x2026   : > { %6067 = shalt.err (!%p6064_p1)
}
0x2027   : > { %s6229_s5 = smov 128  }
0x2028   : > { %5256 = dma.vmem_to_hbm [thread:$0]  (%p8081_p7), %s7788_s4, 256, %s7785_s19, %s3643_s2, %s6229_s5, %s6229_s5, %s6224_s12  }
0x2029 PF: > { %p5328_p10 = scmp.ge.s32.totalorder %s6194_s3, 2  ;;  %s3671_s11 = sand.u32 1, %s6166_s28  }
0x202a   : > { %p8082_p13 = scmp.ne.s32.totalorder %s8017_s18, 0  ;;  %s3672_s21 = scalar_lea.sflag [#allocation5], %s3671_s11 }
0x202c   : > { %p5312_p0 = pnand %p5328_p10, %p8082_p13 }
0x202e   : > { %6149 = dma.done.wait (!%p5312_p0), %s3672_s21, 256  }
0x202f   : > { %6151 = vsyncadd (!%p5312_p0), %s3672_s21, 4294967040  ;;  %s58_s3 = sadd.s32 1, %s6194_s3   ;;  %s8083_s5 = sld [smem:[#allocation41_spill]] }
0x2030   : > { %p55_p3 = scmp.ge.s32.totalorder %s58_s3, 6   ;;  %s8084_s26 = sld [smem:[#allocation42_spill]] }
0x2031   : > { %s8085_s27 = sld [smem:[#allocation54_spill]]  ;;  %s8086_s24 = sld [smem:[#allocation43_spill]] }
0x2032   : > { %s8087_s2 = sld [smem:[#allocation55_spill]]  ;;  %s8088_s29 = sld [smem:[#allocation46_spill]] }
0x2033   : > { %s8089_s0 = sld [smem:[#allocation47_spill]]  ;;  %s8090_s7 = sld [smem:[#allocation52_spill]] }
0x2034   : > { %s8091_s30 = sld [smem:[#allocation53_spill]]  ;;  %s8092_s28 = smov %s6170_s6 }
0x2035   :  { %57 = sbr.rel (!%p55_p3) target bundleno = 48 (0x30), region = 322 }
0x2037   : > { %s8093_s6 = smov %s8086_s24 }
0x203c   :  { %3677 = vsyncpa [#allocation4], 1 }
0x203d   :  { %3679 = vsyncpa [#allocation4 + $0x1], 1 }
0x203e   :  { %3680 = vsyncpa [#allocation7], 1 }
0x203f   :  { %3681 = vsyncpa [#allocation10], 1 }
0x2040   :  { %3682 = vsyncpa [#allocation13], 1 }
0x2041   :  { %3683 = vsyncpa [#allocation16], 1 }
0x2042   :  { %3685 = vsyncpa [#allocation16 + $0x1], 1 }
0x2043   :  { %3686 = vsyncpa [#allocation19], 1 }
0x2044   :  { %3688 = vsyncpa [#allocation19 + $0x1], 1 }
0x2045   :  { %3689 = vsyncpa [#allocation22], 1 }
0x2046   :  { %3691 = vsyncpa [#allocation22 + $0x1], 1 }
0x2047   :  { %3692 = vsyncpa [#allocation25], 1 }
0x2048   :  { %3694 = vsyncpa [#allocation25 + $0x1], 1 }
0x2049   :  { %3695 = vsyncpa [#allocation28], 1 }
0x204a   :  { %3697 = vsyncpa [#allocation28 + $0x1], 1 }
0x204b   :  { %3698 = vsyncpa [#allocation5], 1 }
0x204c   :  { %3700 = vsyncpa [#allocation5 + $0x1], 1 }

</bundles_post_ra>
